<compile_context>
chip_gen: v5e
topology: v5e:2x2
jax: 0.10.0
libtpu: 0.0.40
codegen_flags: <defaults>
</compile_context>

<pallas_src>
import functools
import numpy as np
import jax
import jax.numpy as jnp
from jax import lax
from jax.experimental import pallas as pl
from jax.experimental.pallas import tpu as pltpu


# ----------------------------- helpers -----------------------------

def _make_activation(name):
    """Static activation selection (mirrors get_activation; eval-mode semantics)."""
    name = name.lower()
    if name == 'gelu':
        # TODO(synk): PyTorch nn.GELU default is the exact erf form; tanh approx used here.
        c = 0.7978845608028654
        return lambda z: 0.5 * z * (1.0 + jnp.tanh(c * (z + 0.044715 * z * z * z)))
    if name == 'rrelu':
        slope = (1.0 / 8.0 + 1.0 / 3.0) / 2.0  # eval-mode RReLU = leaky with mean slope
        return lambda z: jnp.where(z >= 0, z, slope * z)
    if name == 'selu':
        a, s = 1.6732632423543772, 1.0507009873554805
        return lambda z: s * jnp.where(z >= 0, z, a * (jnp.exp(z) - 1.0))
    if name == 'silu':
        return lambda z: z * (1.0 / (1.0 + jnp.exp(-z)))
    if name == 'hardswish':
        return lambda z: z * jnp.clip(z + 3.0, 0.0, 6.0) * (1.0 / 6.0)
    if name == 'leakyrelu':
        return lambda z: jnp.where(z >= 0, z, 0.01 * z)
    return lambda z: jnp.maximum(z, 0.0)  # default: ReLU


def _shift(h, delta, fill):
    """s[..., l, :] = h[..., l+delta, :]; positions shifted past the edge get `fill`.

    Works on plain values both inside the Pallas kernel (2-D) and in the JAX
    reference (3-D). Uses static slices + concatenate only.
    """
    if delta == 0:
        return h
    L = h.shape[-2]
    d = abs(delta)
    pad = jnp.full(h.shape[:-2] + (d, h.shape[-1]), fill, h.dtype)
    if delta > 0:
        return jnp.concatenate([h[..., d:, :], pad], axis=-2)
    return jnp.concatenate([pad, h[..., :L - d, :]], axis=-2)


# ----------------------------- Pallas kernel -----------------------------

def _inception_kernel(x_ref, w1_ref, b1_ref, w2a_ref, b2a_ref, w2b_ref, b2b_ref,
                      w3a_ref, b3a_ref, w3b_ref, b3b_ref, w4_ref, b4_ref,
                      o_ref, *, act):
    f32 = jnp.float32
    bf16 = jnp.bfloat16

    x_bf = x_ref[0]                                # (L, Cin) bf16

    def conv(a_bf, w_ref, b_ref):
        # bf16 x bf16 -> f32 accumulate on the MXU, f32 epilogue (bias + act).
        acc = jnp.dot(a_bf, w_ref[...], preferred_element_type=f32)
        return act(acc + b_ref[...])

    # branch 1: 1x1 conv + act
    p1 = conv(x_bf, w1_ref, b1_ref)

    # branch 2: 1x1 conv + act -> k=3 conv (pad=1) + act
    h2 = conv(x_bf, w2a_ref, b2a_ref)              # (L, C2) f32
    h2cat = jnp.concatenate(
        [_shift(h2, -1, 0.0), h2, _shift(h2, 1, 0.0)], axis=-1)   # (L, 3*C2)
    p2 = conv(h2cat.astype(bf16), w2b_ref, b2b_ref)

    # branch 3: 1x1 conv + act -> k=5 conv (pad=2) + act
    h3 = conv(x_bf, w3a_ref, b3a_ref)              # (L, C3) f32
    h3cat = jnp.concatenate(
        [_shift(h3, d, 0.0) for d in (-2, -1, 0, 1, 2)], axis=-1)  # (L, 5*C3)
    p3 = conv(h3cat.astype(bf16), w3b_ref, b3b_ref)

    # branch 4: MaxPool1d(k=3, s=1, pad=1) -> 1x1 conv + act
    x32 = x_bf.astype(f32)
    pooled = jnp.maximum(jnp.maximum(_shift(x32, -1, -jnp.inf), x32),
                         _shift(x32, 1, -jnp.inf))
    p4 = conv(pooled.astype(bf16), w4_ref, b4_ref)

    o_ref[0] = p1 + p2 + p3 + p4                   # f32, lane-dense (L, Cout)


# ----------------------------- wrapper -----------------------------

def inception_forward(x_ncl, P, activation='relu'):
    """x_ncl: (B, Cin, L) f32  ->  (B, Cout, L) f32  (PyTorch NCL layout)."""
    B, Cin, L = x_ncl.shape
    Cout = P['w1'].shape[1]

    # single layout change at the module boundary; bf16 operands for the MXU
    xl = jnp.transpose(x_ncl, (0, 2, 1)).astype(jnp.bfloat16)    # (B, L, Cin)

    def wspec(arr):
        return pl.BlockSpec(arr.shape, lambda b: (0, 0))

    out = pl.pallas_call(
        functools.partial(_inception_kernel, act=_make_activation(activation)),
        out_shape=jax.ShapeDtypeStruct((B, L, Cout), jnp.float32),
        grid=(B,),
        in_specs=[
            pl.BlockSpec((1, L, Cin), lambda b: (b, 0, 0)),
            wspec(P['w1']), wspec(P['b1']),
            wspec(P['w2a']), wspec(P['b2a']),
            wspec(P['w2b']), wspec(P['b2b']),
            wspec(P['w3a']), wspec(P['b3a']),
            wspec(P['w3b']), wspec(P['b3b']),
            wspec(P['w4']), wspec(P['b4']),
        ],
        out_specs=pl.BlockSpec((1, L, Cout), lambda b: (b, 0, 0)),
        compiler_params=pltpu.CompilerParams(dimension_semantics=("parallel",)),
    )(xl, P['w1'], P['b1'], P['w2a'], P['b2a'], P['w2b'], P['b2b'],
      P['w3a'], P['b3a'], P['w3b'], P['b3b'], P['w4'], P['b4'])

    return jnp.transpose(out, (0, 2, 1))                          # back to (B, Cout, L)


# ----------------------------- parameters -----------------------------

def init_inception_params(key, in_c, c1, c2, c3, c4):
    """Random PyTorch-style Conv1d params, prepared ONCE into kernel layout:
    1x1 convs   -> (Cin, Cout) bf16 weight, (1, Cout) f32 bias
    k-tap convs -> (k*Cin, Cout) bf16 weight (tap-major rows), (1, Cout) f32 bias
    """
    assert c1 == c2[1] == c3[1] == c4, "branch outputs must have equal channels to sum"
    ks = jax.random.split(key, 12)

    def conv_wb(kw, kb, cout, cin, ksz):
        bound = 1.0 / np.sqrt(cin * ksz)
        w = jax.random.uniform(kw, (cout, cin, ksz), jnp.float32, -bound, bound)
        b = jax.random.uniform(kb, (cout,), jnp.float32, -bound, bound)
        return w, b

    p1_1 = conv_wb(ks[0], ks[1], c1, in_c, 1)
    p2_1 = conv_wb(ks[2], ks[3], c2[0], in_c, 1)
    p2_2 = conv_wb(ks[4], ks[5], c2[1], c2[0], 3)
    p3_1 = conv_wb(ks[6], ks[7], c3[0], in_c, 1)
    p3_2 = conv_wb(ks[8], ks[9], c3[1], c3[0], 5)
    p4_2 = conv_wb(ks[10], ks[11], c4, in_c, 1)

    def prep_1x1(w, b):
        return (w[:, :, 0].T.astype(jnp.bfloat16),
                b.reshape(1, -1).astype(jnp.float32))

    def prep_k(w, b):
        cout, cin, k = w.shape
        # tap-major rows: row index = t*cin + c  <->  hcat = [h[l-..], ..., h[l+..]]
        wk = jnp.transpose(w, (2, 1, 0)).reshape(k * cin, cout).astype(jnp.bfloat16)
        return wk, b.reshape(1, -1).astype(jnp.float32)

    P = {}
    P['w1'], P['b1'] = prep_1x1(*p1_1)
    P['w2a'], P['b2a'] = prep_1x1(*p2_1)
    P['w2b'], P['b2b'] = prep_k(*p2_2)
    P['w3a'], P['b3a'] = prep_1x1(*p3_1)
    P['w3b'], P['b3b'] = prep_k(*p3_2)
    P['w4'], P['b4'] = prep_1x1(*p4_2)
    return P


# ----------------------------- pure-JAX reference -----------------------------

def reference_forward(x_ncl, P, activation='relu'):
    """Mirrors the kernel's math (same bf16 operand rounding, f32 accumulate)."""
    f32, bf16 = jnp.float32, jnp.bfloat16
    act = _make_activation(activation)
    xl = jnp.transpose(x_ncl, (0, 2, 1)).astype(bf16)

    def conv(a_bf, w_bf, b):
        return act(jnp.einsum('blk,kn->bln', a_bf.astype(f32), w_bf.astype(f32)) + b)

    p1 = conv(xl, P['w1'], P['b1'])
    h2 = conv(xl, P['w2a'], P['b2a'])
    h2cat = jnp.concatenate([_shift(h2, -1, 0.0), h2, _shift(h2, 1, 0.0)], axis=-1)
    p2 = conv(h2cat.astype(bf16), P['w2b'], P['b2b'])
    h3 = conv(xl, P['w3a'], P['b3a'])
    h3cat = jnp.concatenate([_shift(h3, d, 0.0) for d in (-2, -1, 0, 1, 2)], axis=-1)
    p3 = conv(h3cat.astype(bf16), P['w3b'], P['b3b'])
    x32 = xl.astype(f32)
    pooled = jnp.maximum(jnp.maximum(_shift(x32, -1, -jnp.inf), x32),
                         _shift(x32, 1, -jnp.inf))
    p4 = conv(pooled.astype(bf16), P['w4'], P['b4'])
    return jnp.transpose(p1 + p2 + p3 + p4, (0, 2, 1))


# ----------------------------- main -----------------------------

if __name__ == "__main__":
    # small, TPU-friendly shapes: batch=2, in_c=64, length=256, out channels=128
    B, in_c, L = 2, 64, 256
    c1, c2, c3, c4 = 128, (32, 128), (32, 128), 128
    activation = 'relu'

    key = jax.random.PRNGKey(0)
    kx, kp = jax.random.split(key)
    x = jax.random.normal(kx, (B, in_c, L), jnp.float32)
    P = init_inception_params(kp, in_c, c1, c2, c3, c4)

    fwd = jax.jit(lambda inp: inception_forward(inp, P, activation))
    y = fwd(x)
    jax.block_until_ready(y)

    assert y.shape == (B, c1, L)
    assert bool(jnp.all(jnp.isfinite(y)))

    y_ref = reference_forward(x, P, activation)
    err = float(jnp.max(jnp.abs(y - y_ref)))
    assert err < 2e-2, f"max abs error vs reference: {err}"

    print("KERNEL_OK")
</pallas_src>

<mosaic_0001>
module attributes {stable_mosaic.version = 11 : i64} {
  func.func @_inception_kernel(%arg0: i32, %arg1: memref<1x256x64xbf16, #tpu.memory_space<vmem>>, %arg2: memref<64x128xbf16, #tpu.memory_space<vmem>>, %arg3: memref<1x128xf32, #tpu.memory_space<vmem>>, %arg4: memref<64x32xbf16, #tpu.memory_space<vmem>>, %arg5: memref<1x32xf32, #tpu.memory_space<vmem>>, %arg6: memref<96x128xbf16, #tpu.memory_space<vmem>>, %arg7: memref<1x128xf32, #tpu.memory_space<vmem>>, %arg8: memref<64x32xbf16, #tpu.memory_space<vmem>>, %arg9: memref<1x32xf32, #tpu.memory_space<vmem>>, %arg10: memref<160x128xbf16, #tpu.memory_space<vmem>>, %arg11: memref<1x128xf32, #tpu.memory_space<vmem>>, %arg12: memref<64x128xbf16, #tpu.memory_space<vmem>>, %arg13: memref<1x128xf32, #tpu.memory_space<vmem>>, %arg14: memref<1x256x128xf32, #tpu.memory_space<vmem>>) attributes {dimension_semantics = [#tpu.dimension_semantics<parallel>], iteration_bounds = array<i64: 2>, scalar_prefetch = 0 : i64, scratch_operands = 0 : i64, tpu.core_type = #tpu.core_type<tc>, window_params = [{transform_indices = @transform_0, window_bounds = array<i64: 1, 256, 64>}, {pipeline_mode = #tpu.pipeline_mode<synchronous>, transform_indices = @transform_1, window_bounds = array<i64: 64, 128>}, {pipeline_mode = #tpu.pipeline_mode<synchronous>, transform_indices = @transform_2, window_bounds = array<i64: 1, 128>}, {pipeline_mode = #tpu.pipeline_mode<synchronous>, transform_indices = @transform_3, window_bounds = array<i64: 64, 32>}, {pipeline_mode = #tpu.pipeline_mode<synchronous>, transform_indices = @transform_4, window_bounds = array<i64: 1, 32>}, {pipeline_mode = #tpu.pipeline_mode<synchronous>, transform_indices = @transform_5, window_bounds = array<i64: 96, 128>}, {pipeline_mode = #tpu.pipeline_mode<synchronous>, transform_indices = @transform_6, window_bounds = array<i64: 1, 128>}, {pipeline_mode = #tpu.pipeline_mode<synchronous>, transform_indices = @transform_7, window_bounds = array<i64: 64, 32>}, {pipeline_mode = #tpu.pipeline_mode<synchronous>, transform_indices = @transform_8, window_bounds = array<i64: 1, 32>}, {pipeline_mode = #tpu.pipeline_mode<synchronous>, transform_indices = @transform_9, window_bounds = array<i64: 160, 128>}, {pipeline_mode = #tpu.pipeline_mode<synchronous>, transform_indices = @transform_10, window_bounds = array<i64: 1, 128>}, {pipeline_mode = #tpu.pipeline_mode<synchronous>, transform_indices = @transform_11, window_bounds = array<i64: 64, 128>}, {pipeline_mode = #tpu.pipeline_mode<synchronous>, transform_indices = @transform_12, window_bounds = array<i64: 1, 128>}, {transform_indices = @transform_13, window_bounds = array<i64: 1, 256, 128>}]} {
    %c0 = arith.constant 0 : index
    %c0_0 = arith.constant 0 : index
    %c0_1 = arith.constant 0 : index
    %0 = vector.load %arg1[%c0, %c0_0, %c0_1] : memref<1x256x64xbf16, #tpu.memory_space<vmem>>, vector<1x256x64xbf16>
    %1 = vector.shape_cast %0 : vector<1x256x64xbf16> to vector<256x64xbf16>
    %c0_2 = arith.constant 0 : index
    %c0_3 = arith.constant 0 : index
    %2 = vector.load %arg2[%c0_2, %c0_3] : memref<64x128xbf16, #tpu.memory_space<vmem>>, vector<64x128xbf16>
    %cst = arith.constant dense<0.000000e+00> : vector<256x128xf32>
    %3 = tpu.matmul %1, %2, %cst {dimension_numbers = #tpu.dot_dimension_numbers<[1], [0], [0], [1], [0, 0, 1, 1], [], []>} : vector<256x64xbf16>, vector<64x128xbf16>, vector<256x128xf32> -> vector<256x128xf32>
    %c0_4 = arith.constant 0 : index
    %c0_5 = arith.constant 0 : index
    %4 = vector.load %arg3[%c0_4, %c0_5] : memref<1x128xf32, #tpu.memory_space<vmem>>, vector<1x128xf32>
    %5 = vector.broadcast %4 : vector<1x128xf32> to vector<256x128xf32>
    %6 = arith.addf %3, %5 : vector<256x128xf32>
    %cst_6 = arith.constant 0.000000e+00 : f32
    %7 = vector.broadcast %cst_6 : f32 to vector<256x128xf32>
    %8 = arith.maximumf %6, %7 : vector<256x128xf32>
    %c0_7 = arith.constant 0 : index
    %c0_8 = arith.constant 0 : index
    %9 = vector.load %arg4[%c0_7, %c0_8] : memref<64x32xbf16, #tpu.memory_space<vmem>>, vector<64x32xbf16>
    %cst_9 = arith.constant dense<0.000000e+00> : vector<256x32xf32>
    %10 = tpu.matmul %1, %9, %cst_9 {dimension_numbers = #tpu.dot_dimension_numbers<[1], [0], [0], [1], [0, 0, 1, 1], [], []>} : vector<256x64xbf16>, vector<64x32xbf16>, vector<256x32xf32> -> vector<256x32xf32>
    %c0_10 = arith.constant 0 : index
    %c0_11 = arith.constant 0 : index
    %11 = vector.load %arg5[%c0_10, %c0_11] : memref<1x32xf32, #tpu.memory_space<vmem>>, vector<1x32xf32>
    %12 = vector.broadcast %11 : vector<1x32xf32> to vector<256x32xf32>
    %13 = arith.addf %10, %12 : vector<256x32xf32>
    %cst_12 = arith.constant 0.000000e+00 : f32
    %14 = vector.broadcast %cst_12 : f32 to vector<256x32xf32>
    %15 = arith.maximumf %13, %14 : vector<256x32xf32>
    %cst_13 = arith.constant 0.000000e+00 : f32
    %16 = vector.broadcast %cst_13 : f32 to vector<1x32xf32>
    %17 = vector.extract_strided_slice %15 {offsets = [0, 0], sizes = [255, 32], strides = [1, 1]} : vector<256x32xf32> to vector<255x32xf32>
    %18 = tpu.concatenate %16, %17 in 0 : vector<1x32xf32>, vector<255x32xf32> -> vector<256x32xf32>
    %cst_14 = arith.constant 0.000000e+00 : f32
    %19 = vector.broadcast %cst_14 : f32 to vector<1x32xf32>
    %20 = vector.extract_strided_slice %15 {offsets = [1, 0], sizes = [255, 32], strides = [1, 1]} : vector<256x32xf32> to vector<255x32xf32>
    %21 = tpu.concatenate %20, %19 in 0 : vector<255x32xf32>, vector<1x32xf32> -> vector<256x32xf32>
    %22 = tpu.concatenate %18, %15, %21 in 1 : vector<256x32xf32>, vector<256x32xf32>, vector<256x32xf32> -> vector<256x96xf32>
    %23 = arith.truncf %22 : vector<256x96xf32> to vector<256x96xbf16>
    %c0_15 = arith.constant 0 : index
    %c0_16 = arith.constant 0 : index
    %24 = vector.load %arg6[%c0_15, %c0_16] : memref<96x128xbf16, #tpu.memory_space<vmem>>, vector<96x128xbf16>
    %cst_17 = arith.constant dense<0.000000e+00> : vector<256x128xf32>
    %25 = tpu.matmul %23, %24, %cst_17 {dimension_numbers = #tpu.dot_dimension_numbers<[1], [0], [0], [1], [0, 0, 1, 1], [], []>} : vector<256x96xbf16>, vector<96x128xbf16>, vector<256x128xf32> -> vector<256x128xf32>
    %c0_18 = arith.constant 0 : index
    %c0_19 = arith.constant 0 : index
    %26 = vector.load %arg7[%c0_18, %c0_19] : memref<1x128xf32, #tpu.memory_space<vmem>>, vector<1x128xf32>
    %27 = vector.broadcast %26 : vector<1x128xf32> to vector<256x128xf32>
    %28 = arith.addf %25, %27 : vector<256x128xf32>
    %cst_20 = arith.constant 0.000000e+00 : f32
    %29 = vector.broadcast %cst_20 : f32 to vector<256x128xf32>
    %30 = arith.maximumf %28, %29 : vector<256x128xf32>
    %c0_21 = arith.constant 0 : index
    %c0_22 = arith.constant 0 : index
    %31 = vector.load %arg8[%c0_21, %c0_22] : memref<64x32xbf16, #tpu.memory_space<vmem>>, vector<64x32xbf16>
    %cst_23 = arith.constant dense<0.000000e+00> : vector<256x32xf32>
    %32 = tpu.matmul %1, %31, %cst_23 {dimension_numbers = #tpu.dot_dimension_numbers<[1], [0], [0], [1], [0, 0, 1, 1], [], []>} : vector<256x64xbf16>, vector<64x32xbf16>, vector<256x32xf32> -> vector<256x32xf32>
    %c0_24 = arith.constant 0 : index
    %c0_25 = arith.constant 0 : index
    %33 = vector.load %arg9[%c0_24, %c0_25] : memref<1x32xf32, #tpu.memory_space<vmem>>, vector<1x32xf32>
    %34 = vector.broadcast %33 : vector<1x32xf32> to vector<256x32xf32>
    %35 = arith.addf %32, %34 : vector<256x32xf32>
    %cst_26 = arith.constant 0.000000e+00 : f32
    %36 = vector.broadcast %cst_26 : f32 to vector<256x32xf32>
    %37 = arith.maximumf %35, %36 : vector<256x32xf32>
    %cst_27 = arith.constant 0.000000e+00 : f32
    %38 = vector.broadcast %cst_27 : f32 to vector<2x32xf32>
    %39 = vector.extract_strided_slice %37 {offsets = [0, 0], sizes = [254, 32], strides = [1, 1]} : vector<256x32xf32> to vector<254x32xf32>
    %40 = tpu.concatenate %38, %39 in 0 : vector<2x32xf32>, vector<254x32xf32> -> vector<256x32xf32>
    %cst_28 = arith.constant 0.000000e+00 : f32
    %41 = vector.broadcast %cst_28 : f32 to vector<1x32xf32>
    %42 = vector.extract_strided_slice %37 {offsets = [0, 0], sizes = [255, 32], strides = [1, 1]} : vector<256x32xf32> to vector<255x32xf32>
    %43 = tpu.concatenate %41, %42 in 0 : vector<1x32xf32>, vector<255x32xf32> -> vector<256x32xf32>
    %cst_29 = arith.constant 0.000000e+00 : f32
    %44 = vector.broadcast %cst_29 : f32 to vector<1x32xf32>
    %45 = vector.extract_strided_slice %37 {offsets = [1, 0], sizes = [255, 32], strides = [1, 1]} : vector<256x32xf32> to vector<255x32xf32>
    %46 = tpu.concatenate %45, %44 in 0 : vector<255x32xf32>, vector<1x32xf32> -> vector<256x32xf32>
    %cst_30 = arith.constant 0.000000e+00 : f32
    %47 = vector.broadcast %cst_30 : f32 to vector<2x32xf32>
    %48 = vector.extract_strided_slice %37 {offsets = [2, 0], sizes = [254, 32], strides = [1, 1]} : vector<256x32xf32> to vector<254x32xf32>
    %49 = tpu.concatenate %48, %47 in 0 : vector<254x32xf32>, vector<2x32xf32> -> vector<256x32xf32>
    %50 = tpu.concatenate %40, %43, %37, %46, %49 in 1 : vector<256x32xf32>, vector<256x32xf32>, vector<256x32xf32>, vector<256x32xf32>, vector<256x32xf32> -> vector<256x160xf32>
    %51 = arith.truncf %50 : vector<256x160xf32> to vector<256x160xbf16>
    %c0_31 = arith.constant 0 : index
    %c0_32 = arith.constant 0 : index
    %52 = vector.load %arg10[%c0_31, %c0_32] : memref<160x128xbf16, #tpu.memory_space<vmem>>, vector<160x128xbf16>
    %cst_33 = arith.constant dense<0.000000e+00> : vector<256x128xf32>
    %53 = tpu.matmul %51, %52, %cst_33 {dimension_numbers = #tpu.dot_dimension_numbers<[1], [0], [0], [1], [0, 0, 1, 1], [], []>} : vector<256x160xbf16>, vector<160x128xbf16>, vector<256x128xf32> -> vector<256x128xf32>
    %c0_34 = arith.constant 0 : index
    %c0_35 = arith.constant 0 : index
    %54 = vector.load %arg11[%c0_34, %c0_35] : memref<1x128xf32, #tpu.memory_space<vmem>>, vector<1x128xf32>
    %55 = vector.broadcast %54 : vector<1x128xf32> to vector<256x128xf32>
    %56 = arith.addf %53, %55 : vector<256x128xf32>
    %cst_36 = arith.constant 0.000000e+00 : f32
    %57 = vector.broadcast %cst_36 : f32 to vector<256x128xf32>
    %58 = arith.maximumf %56, %57 : vector<256x128xf32>
    %59 = arith.extf %1 : vector<256x64xbf16> to vector<256x64xf32>
    %cst_37 = arith.constant 0xFF800000 : f32
    %60 = vector.broadcast %cst_37 : f32 to vector<1x64xf32>
    %61 = vector.extract_strided_slice %59 {offsets = [0, 0], sizes = [255, 64], strides = [1, 1]} : vector<256x64xf32> to vector<255x64xf32>
    %62 = tpu.concatenate %60, %61 in 0 : vector<1x64xf32>, vector<255x64xf32> -> vector<256x64xf32>
    %63 = arith.maximumf %62, %59 : vector<256x64xf32>
    %cst_38 = arith.constant 0xFF800000 : f32
    %64 = vector.broadcast %cst_38 : f32 to vector<1x64xf32>
    %65 = vector.extract_strided_slice %59 {offsets = [1, 0], sizes = [255, 64], strides = [1, 1]} : vector<256x64xf32> to vector<255x64xf32>
    %66 = tpu.concatenate %65, %64 in 0 : vector<255x64xf32>, vector<1x64xf32> -> vector<256x64xf32>
    %67 = arith.maximumf %63, %66 : vector<256x64xf32>
    %68 = arith.truncf %67 : vector<256x64xf32> to vector<256x64xbf16>
    %c0_39 = arith.constant 0 : index
    %c0_40 = arith.constant 0 : index
    %69 = vector.load %arg12[%c0_39, %c0_40] : memref<64x128xbf16, #tpu.memory_space<vmem>>, vector<64x128xbf16>
    %cst_41 = arith.constant dense<0.000000e+00> : vector<256x128xf32>
    %70 = tpu.matmul %68, %69, %cst_41 {dimension_numbers = #tpu.dot_dimension_numbers<[1], [0], [0], [1], [0, 0, 1, 1], [], []>} : vector<256x64xbf16>, vector<64x128xbf16>, vector<256x128xf32> -> vector<256x128xf32>
    %c0_42 = arith.constant 0 : index
    %c0_43 = arith.constant 0 : index
    %71 = vector.load %arg13[%c0_42, %c0_43] : memref<1x128xf32, #tpu.memory_space<vmem>>, vector<1x128xf32>
    %72 = vector.broadcast %71 : vector<1x128xf32> to vector<256x128xf32>
    %73 = arith.addf %70, %72 : vector<256x128xf32>
    %cst_44 = arith.constant 0.000000e+00 : f32
    %74 = vector.broadcast %cst_44 : f32 to vector<256x128xf32>
    %75 = arith.maximumf %73, %74 : vector<256x128xf32>
    %76 = arith.addf %8, %30 : vector<256x128xf32>
    %77 = arith.addf %76, %58 : vector<256x128xf32>
    %78 = arith.addf %77, %75 : vector<256x128xf32>
    %c0_45 = arith.constant 0 : index
    %c0_46 = arith.constant 0 : index
    %c0_47 = arith.constant 0 : index
    %79 = vector.load %arg14[%c0_45, %c0_46, %c0_47] : memref<1x256x128xf32, #tpu.memory_space<vmem>>, vector<1x256x128xf32>
    %80 = vector.shape_cast %79 : vector<1x256x128xf32> to vector<256x128xf32>
    %81 = vector.shape_cast %78 : vector<256x128xf32> to vector<1x256x128xf32>
    tpu.vector_store %arg14[%c0_45, %c0_46, %c0_47], %81 {strides = array<i32>} : memref<1x256x128xf32, #tpu.memory_space<vmem>>, vector<1x256x128xf32>,
    return
  }
  func.func @transform_0(%arg0: i32) -> (i32, i32, i32) {
    %c0_i32 = arith.constant 0 : i32
    %c0_i32_0 = arith.constant 0 : i32
    %c0_i32_1 = arith.constant 0 : i32
    return %arg0, %c0_i32, %c0_i32_0 : i32, i32, i32
  }
  func.func @transform_1(%arg0: i32) -> (i32, i32) {
    %c0_i32 = arith.constant 0 : i32
    %c0_i32_0 = arith.constant 0 : i32
    %c0_i32_1 = arith.constant 0 : i32
    return %c0_i32, %c0_i32_0 : i32, i32
  }
  func.func @transform_2(%arg0: i32) -> (i32, i32) {
    %c0_i32 = arith.constant 0 : i32
    %c0_i32_0 = arith.constant 0 : i32
    %c0_i32_1 = arith.constant 0 : i32
    return %c0_i32, %c0_i32_0 : i32, i32
  }
  func.func @transform_3(%arg0: i32) -> (i32, i32) {
    %c0_i32 = arith.constant 0 : i32
    %c0_i32_0 = arith.constant 0 : i32
    %c0_i32_1 = arith.constant 0 : i32
    return %c0_i32, %c0_i32_0 : i32, i32
  }
  func.func @transform_4(%arg0: i32) -> (i32, i32) {
    %c0_i32 = arith.constant 0 : i32
    %c0_i32_0 = arith.constant 0 : i32
    %c0_i32_1 = arith.constant 0 : i32
    return %c0_i32, %c0_i32_0 : i32, i32
  }
  func.func @transform_5(%arg0: i32) -> (i32, i32) {
    %c0_i32 = arith.constant 0 : i32
    %c0_i32_0 = arith.constant 0 : i32
    %c0_i32_1 = arith.constant 0 : i32
    return %c0_i32, %c0_i32_0 : i32, i32
  }
  func.func @transform_6(%arg0: i32) -> (i32, i32) {
    %c0_i32 = arith.constant 0 : i32
    %c0_i32_0 = arith.constant 0 : i32
    %c0_i32_1 = arith.constant 0 : i32
    return %c0_i32, %c0_i32_0 : i32, i32
  }
  func.func @transform_7(%arg0: i32) -> (i32, i32) {
    %c0_i32 = arith.constant 0 : i32
    %c0_i32_0 = arith.constant 0 : i32
    %c0_i32_1 = arith.constant 0 : i32
    return %c0_i32, %c0_i32_0 : i32, i32
  }
  func.func @transform_8(%arg0: i32) -> (i32, i32) {
    %c0_i32 = arith.constant 0 : i32
    %c0_i32_0 = arith.constant 0 : i32
    %c0_i32_1 = arith.constant 0 : i32
    return %c0_i32, %c0_i32_0 : i32, i32
  }
  func.func @transform_9(%arg0: i32) -> (i32, i32) {
    %c0_i32 = arith.constant 0 : i32
    %c0_i32_0 = arith.constant 0 : i32
    %c0_i32_1 = arith.constant 0 : i32
    return %c0_i32, %c0_i32_0 : i32, i32
  }
  func.func @transform_10(%arg0: i32) -> (i32, i32) {
    %c0_i32 = arith.constant 0 : i32
    %c0_i32_0 = arith.constant 0 : i32
    %c0_i32_1 = arith.constant 0 : i32
    return %c0_i32, %c0_i32_0 : i32, i32
  }
  func.func @transform_11(%arg0: i32) -> (i32, i32) {
    %c0_i32 = arith.constant 0 : i32
    %c0_i32_0 = arith.constant 0 : i32
    %c0_i32_1 = arith.constant 0 : i32
    return %c0_i32, %c0_i32_0 : i32, i32
  }
  func.func @transform_12(%arg0: i32) -> (i32, i32) {
    %c0_i32 = arith.constant 0 : i32
    %c0_i32_0 = arith.constant 0 : i32
    %c0_i32_1 = arith.constant 0 : i32
    return %c0_i32, %c0_i32_0 : i32, i32
  }
  func.func @transform_13(%arg0: i32) -> (i32, i32, i32) {
    %c0_i32 = arith.constant 0 : i32
    %c0_i32_0 = arith.constant 0 : i32
    %c0_i32_1 = arith.constant 0 : i32
    return %arg0, %c0_i32, %c0_i32_0 : i32, i32, i32
  }
}

</mosaic_0001>

<bundles_post_ra>
// kernel: _lambda_.1
= control target key start
LH: loop header
LB: loop body
LE: loop exit
PB: predicated region body
PF: predicated region fallthrough
CT: control target
= control target key end

     0   :  { %s4486_s25 = smov 0   ;;  %s6741_s0 = inlined_call_operand.vmem [shape: bf16[2,256,64], index: 0, kind: input, shape index: {}]   ;;  %s6742_s1 = inlined_call_operand.vmem [shape: bf16[64,128], index: 1, kind: input, shape index: {}]   ;;  %s6743_s2 = inlined_call_operand.vmem [shape: f32[1,128], index: 2, kind: input, shape index: {}]   ;;  %s6744_s3 = inlined_call_operand.vmem [shape: bf16[64,32], index: 3, kind: input, shape index: {}]   ;;  %s6745_s4 = inlined_call_operand.vmem [shape: f32[1,32], index: 4, kind: input, shape index: {}]   ;;  %s6746_s5 = inlined_call_operand.vmem [shape: bf16[96,128], index: 5, kind: input, shape index: {}]   ;;  %s6747_s6 = inlined_call_operand.vmem [shape: f32[1,128], index: 6, kind: input, shape index: {}]   ;;  %s6748_s7 = inlined_call_operand.vmem [shape: bf16[64,32], index: 7, kind: input, shape index: {}]   ;;  %s6749_s8 = inlined_call_operand.vmem [shape: f32[1,32], index: 8, kind: input, shape index: {}]   ;;  %s6750_s9 = inlined_call_operand.vmem [shape: bf16[160,128], index: 9, kind: input, shape index: {}]   ;;  %s6751_s10 = inlined_call_operand.vmem [shape: f32[1,128], index: 10, kind: input, shape index: {}]   ;;  %s6752_s11 = inlined_call_operand.vmem [shape: bf16[64,128], index: 11, kind: input, shape index: {}]   ;;  %s6753_s12 = inlined_call_operand.vmem [shape: f32[1,128], index: 12, kind: input, shape index: {}]   ;;  %s6754_s13 = inlined_call_operand.vmem [shape: f32[2,256,128], index: 13, kind: output, shape index: {}]  }
   0x1 LB: > { %s3605_s26 = sadd.s32 4294967295, %s4411_s25   ;;  %p3609_p0 = scmp.ge.s32.totalorder %s4411_s25, 1  ;;  %s4411_s25 = sphi %s4486_s25, %s23_s25  }
   0x2   : > { %p387_p1 = scmp.lt.s32.totalorder %s4411_s25, 3 }
   0x4   : > { %p388_p2 = pnand %p3609_p0, %p387_p1 }
   0x6   : > { %391 = sbr.rel (%p388_p2) target bundleno = 1217 (0x4c1), region = 72 }
   0xb   : > { %v3929_v0 = vld [vmem:[%s6744_s3 + $0x18] sm:$0xff]  ;;  %p431_p3 = scmp.lt.s32.totalorder %s3605_s26, 1  ;;  %v3928_v1 = vld [vmem:[%s6744_s3 + $0x10] sm:$0xff]  ;;  %v3927_v2 = vld [vmem:[%s6744_s3 + $0x8] sm:$0xff]  ;;  %vm590_vm0 = vcmask 523264   ;;  %vm949_vm1 = vcmask 1040384  }
   0xc   : > { %800 = vmatpush.bf16.msra.mxu1 %v3929_v0  ;;  %v3926_v3 = vld [vmem:[%s6744_s3] sm:$0xff]  ;;  %v3925_v6 = vld [vmem:[%s6742_s1 + $0x18] sm:$0xff]  ;;  %v3924_v8 = vld [vmem:[%s6742_s1 + $0x10] sm:$0xff]  ;;  %s4413_s17 = smov 32   ;;  %vm1046_vm2 = vcmask 1046528   ;;  %s4414_s18 = smov 64  }
   0xd   : > { %s6917_s26 = smov (!%p431_p3, %s3605_s26), 1  ;;  %3954 = vmatpush.bf16.msra.mxu2 %v3925_v6  ;;  %643 = vmatpush.bf16.msra.mxu0 %v3925_v6  ;;  %v3923_v9 = vld [vmem:[%s6742_s1 + $0x8] sm:$0xff]  ;;  %v3922_v10 = vld [vmem:[%s6742_s1] sm:$0xff]  ;;  %vm1305_vm3 = vcmask 261120   ;;  %vm1438_vm4 = vcmask 785408   ;;  %vm1797_vm5 = vcmask 1041408  }
   0xe   : > { %s3904_s16 = sshll.u32 %s6917_s26, 7  ;;  %v4564_v22 = vld [vmem:[%s6745_s4] ss:$0 sm:$0xff]  ;;  %vm2024_vm6 = vcmask 1045504   ;;  %s4415_s15 = smov 96  }
   0xf   : > { %s4512_s21 = scalar_lea.vmem %s6741_s0, %s3904_s16  ;;  %s3905_s20 = sshll.u32 %s6917_s26, 8 }
  0x10   : > { %801 = vmatpush.bf16.msra.mxu1 %v3928_v1  ;;  %v3906_v4 = vld [vmem:[%s4512_s21] sm:$0xff]  ;;  %v3907_v5 = vld [vmem:[%s4512_s21 + $0x8] sm:$0xff]  ;;  %v3908_v7 = vld [vmem:[%s4512_s21 + $0x10] sm:$0xff]  ;;  %s6391_s24 = scalar_lea.vmem %s6754_s13, %s3905_s20 }
  0x11   : > { %3955 = vmatpush.bf16.msra.mxu2 %v3924_v8  ;;  %644 = vmatpush.bf16.msra.mxu0 %v3924_v8  ;;  %v3918_v11 = vld [vmem:[%s4512_s21 + $0x60] sm:$0xff]  ;;  %v3909_v12 = vld [vmem:[%s4512_s21 + $0x18] sm:$0xff]  ;;  %v3919_v13 = vld [vmem:[%s4512_s21 + $0x68] sm:$0xff] }
  0x12   : > { %v3910_v14 = vld [vmem:[%s4512_s21 + $0x20] sm:$0xff]  ;;  %v3920_v15 = vld [vmem:[%s4512_s21 + $0x70] sm:$0xff]  ;;  %v3911_v16 = vld [vmem:[%s4512_s21 + $0x28] sm:$0xff] }
  0x13   : > { %v3921_v17 = vld [vmem:[%s4512_s21 + $0x78] sm:$0xff]  ;;  %v3912_v18 = vld [vmem:[%s4512_s21 + $0x30] sm:$0xff]  ;;  %v4557_v20 = vld [vmem:[%s4512_s21 + $0x40] sm:$0xff] }
  0x14   : > { %802 = vmatpush.bf16.msra.mxu1 %v3927_v2  ;;  %v3913_v19 = vld [vmem:[%s4512_s21 + $0x38] sm:$0xff]  ;;  %v4576_v31 = vld [vmem:[%s4512_s21 + $0x48] sm:$0xff]  ;;  %v4598_v49 = vld [vmem:[%s4512_s21 + $0x50] sm:$0xff] }
  0x15   : > { %3956 = vmatpush.bf16.msra.mxu2 %v3923_v9  ;;  %645 = vmatpush.bf16.msra.mxu0 %v3923_v9 }
  0x18   : > { %803 = vmatpush.bf16.msra.mxu1 %v3926_v3 }
  0x19   : > { %3957 = vmatpush.bf16.msra.mxu2 %v3922_v10  ;;  %646 = vmatpush.bf16.msra.mxu0 %v3922_v10 }
  0x1b   : > { %3726 = vmatmul.msk.bf16.vlgmr.msra.gmra.mxu1 %vm590_vm0, %v3906_v4 }
  0x1c   : > { %3706 = vmatmul.msk.bf16.vlgmr.msra.gmra.mxu2 %vm590_vm0, %v3918_v11  ;;  %3694 = vmatmul.msk.bf16.vlgmr.msra.gmra.mxu0 %vm590_vm0, %v3906_v4 }
  0x1d   : > { %3958 = vmatpush.bf16.msrb.mxu2 %v3929_v0 }
  0x21   : > { %3959 = vmatpush.bf16.msrb.mxu2 %v3928_v1 }
  0x25   : > { %3960 = vmatpush.bf16.msrb.mxu2 %v3927_v2  ;;  %v4617_v2 = vld [vmem:[%s4512_s21 + $0x58] sm:$0xff] }
  0x29   : > { %3961 = vmatpush.bf16.msrb.mxu2 %v3926_v3 }
  0x2b   : > { %3727 = vmatmul.msk.bf16.gmra.mxu1 %vm590_vm0, %v3907_v5 }
  0x2c   : > { %3707 = vmatmul.msk.bf16.gmra.mxu2 %vm590_vm0, %v3919_v13  ;;  %3695 = vmatmul.msk.bf16.gmra.mxu0 %vm590_vm0, %v3907_v5 }
  0x3b   : > { %3728 = vmatmul.msk.bf16.gmra.mxu1 %vm590_vm0, %v3908_v7 }
  0x3c   : > { %3708 = vmatmul.msk.bf16.gmra.mxu2 %vm590_vm0, %v3920_v15  ;;  %3696 = vmatmul.msk.bf16.gmra.mxu0 %vm590_vm0, %v3908_v7 }
  0x4b   : > { %3729 = vmatmul.msk.bf16.gmra.mxu1 %vm590_vm0, %v3909_v12 }
  0x4c   : > { %3709 = vmatmul.msk.bf16.gmra.mxu2 %vm590_vm0, %v3921_v17  ;;  %3697 = vmatmul.msk.bf16.gmra.mxu0 %vm590_vm0, %v3909_v12 }
  0x5b   : > { %3730 = vmatmul.msk.bf16.gmra.mxu1 %vm590_vm0, %v3910_v14 }
  0x5c   : > { %3738 = vmatmul.msk.bf16.vlgmr.msrb.gmra.mxu2 %vm590_vm0, %v3918_v11  ;;  %3698 = vmatmul.msk.bf16.gmra.mxu0 %vm590_vm0, %v3910_v14  ;;  %v3935_v11 = vld [vmem:[%s6746_s5 + $0x28] sm:$0xff] }
  0x5d   : > { %1489 = vmatpush.bf16.msra.mxu2 %v3935_v11 }
  0x6b   : > { %3731 = vmatmul.msk.bf16.gmra.mxu1 %vm590_vm0, %v3911_v16 }
  0x6c   : > { %3739 = vmatmul.msk.bf16.gmra.mxu2 %vm590_vm0, %v3919_v13  ;;  %3699 = vmatmul.msk.bf16.gmra.mxu0 %vm590_vm0, %v3911_v16 }
  0x7b   : > { %3732 = vmatmul.msk.bf16.gmra.mxu1 %vm590_vm0, %v3912_v18 }
  0x7c   : > { %3740 = vmatmul.msk.bf16.gmra.mxu2 %vm590_vm0, %v3920_v15  ;;  %3700 = vmatmul.msk.bf16.gmra.mxu0 %vm590_vm0, %v3912_v18 }
  0x8b   : > { %3733 = vmatmul.msk.bf16.gmra.mxu1 %vm590_vm0, %v3913_v19 }
  0x8c   : > { %3741 = vmatmul.msk.bf16.gmra.mxu2 %vm590_vm0, %v3921_v17  ;;  %3701 = vmatmul.msk.bf16.gmra.mxu0 %vm590_vm0, %v3913_v19 }
  0x98   : > { %v805_v21 = vpop.f32.mrf.mxu1 }
  0x99   : > { %v806_v23 = vadd.f32 %v4564_v22, %v805_v21 }
  0x9b   : > { %3734 = vmatmul.msk.bf16.gmra.mxu1 %vm590_vm0, %v4557_v20  ;;  %v4569_v25 = vmax.f32 %v806_v23, 0.0  ;;  %v3934_v23 = vld [vmem:[%s6746_s5 + $0x20] sm:$0xff] }
  0x9c   : > { %3702 = vmatmul.msk.bf16.gmra.mxu0 %vm590_vm0, %v4557_v20  ;;  %1490 = vmatpush.bf16.msra.mxu2 %v3934_v23 }
  0x9d   : > { %v950_v28 = vrot.slane %v4569_v25, 7  ;;  %v1047_v37 = vrot.slane %v4569_v25, 1 }
  0x9f   : > { %v4627_v8 = vpop.f32.mrf.mxu2 }
  0xa0   : > { %v807_v24 = vpop.f32.mrf.mxu1 }
  0xa1   : > { %v808_v26 = vadd.f32 %v4564_v22, %v807_v24 }
  0xa3   : > { %v886_v27 = vmax.f32 %v808_v26, 0.0 }
  0xa5   : > { %v951_v29 = vrot.slane %v886_v27, 7  ;;  %v3977_v30 = vpack.i.bf16 %v886_v27, %v4569_v25  ;;  %v1048_v35 = vrot.slane %v886_v27, 1 }
  0xa7   : > { %3978 = vrot.lane.b32.xlu0 %v3977_v30, %s4413_s17  ;;  %v4581_v32 = vsel %vm949_vm1, %v950_v28, %v951_v29  ;;  %v1049_v40 = vsel %vm1046_vm2, %v1047_v37, %v1048_v35  ;;  %v4639_v19 = vpop.f32.mrf.mxu2 }
  0xa8   : > { %v810_v33 = vpop.f32.mrf.mxu1  ;;  %6773 = vst [vmem:[#allocation2_spill] sm:$0xff] %v4639_v19 }
  0xa9   : > { %v811_v34 = vadd.f32 %v4564_v22, %v810_v33 }
  0xab   : > { %v887_v36 = vmax.f32 %v811_v34, 0.0  ;;  %3735 = vmatmul.msk.bf16.gmra.mxu1 %vm590_vm0, %v4576_v31 }
  0xac   : > { %3703 = vmatmul.msk.bf16.gmra.mxu0 %vm590_vm0, %v4576_v31 }
  0xad   : > { %v953_v38 = vrot.slane %v887_v36, 7  ;;  %v1050_v39 = vrot.slane %v887_v36, 1 }
  0xaf   : > { %v1051_v41 = vsel %vm1046_vm2, %v1048_v35, %v1050_v39  ;;  %v4592_v42 = vsel %vm949_vm1, %v951_v29, %v953_v38  ;;  %v4651_v33 = vpop.f32.mrf.mxu2 }
  0xb0   : > { %v812_v43 = vpop.f32.mrf.mxu1  ;;  %v3982_v44 = vpack.i.bf16 %v1051_v41, %v1049_v40 }
  0xb1   : > { %v813_v45 = vadd.f32 %v4564_v22, %v812_v43 }
  0xb2   : > { %3983 = vrot.lane.b32.xlu0 %v3982_v44, %s4414_s18 }
  0xb3   : > { %v888_v46 = vmax.f32 %v813_v45, 0.0 }
  0xb5   : > { %v955_v47 = vrot.slane %v888_v46, 7  ;;  %v3987_v48 = vpack.i.bf16 %v888_v46, %v887_v36  ;;  %v1052_v53 = vrot.slane %v888_v46, 1  ;;  %v3933_v46 = vld [vmem:[%s6746_s5 + $0x18] sm:$0xff] }
  0xb6   : > { %1491 = vmatpush.bf16.msra.mxu2 %v3933_v46 }
  0xb7   : > { %3988 = vrot.lane.b32.xlu1 %v3987_v48, %s4413_s17  ;;  %v4601_v50 = vsel %vm949_vm1, %v953_v38, %v955_v47  ;;  %v1053_v57 = vsel %vm1046_vm2, %v1050_v39, %v1052_v53  ;;  %v4660_v43 = vpop.f32.mrf.mxu2 }
  0xb8   : > { %v815_v51 = vpop.f32.mrf.mxu1  ;;  %6774 = vst [vmem:[#allocation3_spill] sm:$0xff] %v4660_v43 }
  0xb9   : > { %v816_v52 = vadd.f32 %v4564_v22, %v815_v51 }
  0xbb   : > { %v889_v54 = vmax.f32 %v816_v52, 0.0  ;;  %3736 = vmatmul.msk.bf16.gmra.mxu1 %vm590_vm0, %v4598_v49 }
  0xbc   : > { %3704 = vmatmul.msk.bf16.gmra.mxu0 %vm590_vm0, %v4598_v49 }
  0xbd   : > { %v957_v55 = vrot.slane %v889_v54, 7  ;;  %v1054_v56 = vrot.slane %v889_v54, 1 }
  0xbf   : > { %v1055_v58 = vsel %vm1046_vm2, %v1052_v53, %v1054_v56  ;;  %v4611_v59 = vsel %vm949_vm1, %v955_v47, %v957_v55 }
  0xc0   : > { %v817_v60 = vpop.f32.mrf.mxu1  ;;  %v3992_v61 = vpack.i.bf16 %v1055_v58, %v1053_v57  ;;  %v4675_v57 = vpop.f32.mrf.mxu2 }
  0xc1   : > { %v818_v62 = vadd.f32 %v4564_v22, %v817_v60 }
  0xc2   : > { %3993 = vrot.lane.b32.xlu1 %v3992_v61, %s4414_s18 }
  0xc3   : > { %v890_v63 = vmax.f32 %v818_v62, 0.0 }
  0xc5   : > { %v959_v0 = vrot.slane %v890_v63, 7  ;;  %v3997_v1 = vpack.i.bf16 %v890_v63, %v889_v54  ;;  %v1056_v6 = vrot.slane %v890_v63, 1 }
  0xc7   : > { %3998 = vrot.lane.b32.xlu2 %v3997_v1, %s4413_s17  ;;  %v4620_v3 = vsel %vm949_vm1, %v957_v55, %v959_v0  ;;  %v1057_v12 = vsel %vm1046_vm2, %v1054_v56, %v1056_v6  ;;  %v3932_v56 = vld [vmem:[%s6746_s5 + $0x10] sm:$0xff] }
  0xc8   : > { %v820_v4 = vpop.f32.mrf.mxu1  ;;  %1492 = vmatpush.bf16.msra.mxu2 %v3932_v56 }
  0xc9   : > { %v821_v5 = vadd.f32 %v4564_v22, %v820_v4 }
  0xcb   : > { %v891_v7 = vmax.f32 %v821_v5, 0.0  ;;  %3737 = vmatmul.msk.bf16.gmra.mxu1 %vm590_vm0, %v4617_v2  ;;  %v3931_v5 = vld [vmem:[%s6746_s5 + $0x8] sm:$0xff] }
  0xcc   : > { %1493 = vmatpush.bf16.msra.mxu2 %v3931_v5  ;;  %3705 = vmatmul.msk.bf16.gmra.mxu0 %vm590_vm0, %v4617_v2 }
  0xcd   : > { %v961_v9 = vrot.slane %v891_v7, 7  ;;  %v1058_v10 = vrot.slane %v891_v7, 1 }
  0xcf   : > { %v1059_v13 = vsel %vm1046_vm2, %v1056_v6, %v1058_v10  ;;  %v4635_v14 = vsel %vm949_vm1, %v959_v0, %v961_v9  ;;  %v4688_v6 = vpop.f32.mrf.mxu2 }
  0xd0   : > { %v822_v15 = vpop.f32.mrf.mxu1  ;;  %v4002_v16 = vpack.i.bf16 %v1059_v13, %v1057_v12  ;;  %6775 = vst [vmem:[#allocation4_spill] sm:$0xff] %v4688_v6 }
  0xd1   : > { %v823_v17 = vadd.f32 %v4564_v22, %v822_v15 }
  0xd2   : > { %4003 = vrot.lane.b32.xlu2 %v4002_v16, %s4414_s18 }
  0xd3   : > { %v892_v18 = vmax.f32 %v823_v17, 0.0 }
  0xd5   : > { %v963_v20 = vrot.slane %v892_v18, 7  ;;  %v4007_v21 = vpack.i.bf16 %v892_v18, %v891_v7  ;;  %v1060_v29 = vrot.slane %v892_v18, 1 }
  0xd7   : > { %4008 = vrot.lane.b32.xlu0 %v4007_v21, %s4413_s17  ;;  %v4646_v24 = vsel %vm949_vm1, %v961_v9, %v963_v20  ;;  %v1061_v36 = vsel %vm1046_vm2, %v1058_v10, %v1060_v29 }
  0xd8   : > { %v825_v26 = vpop.f32.mrf.mxu1 }
  0xd9   : > { %v826_v27 = vadd.f32 %v4564_v22, %v825_v26  ;;  %v4702_v26 = vpop.f32.mrf.mxu2 }
  0xdb   : > { %v893_v30 = vmax.f32 %v826_v27, 0.0 }
  0xdd   : > { %v965_v34 = vrot.slane %v893_v30, 7  ;;  %v1062_v35 = vrot.slane %v893_v30, 1 }
  0xdf   : > { %v1063_v37 = vsel %vm1046_vm2, %v1060_v29, %v1062_v35  ;;  %v4656_v38 = vsel %vm949_vm1, %v963_v20, %v965_v34 }
  0xe0   : > { %v827_v39 = vpop.f32.mrf.mxu1  ;;  %v4012_v40 = vpack.i.bf16 %v1063_v37, %v1061_v36 }
  0xe1   : > { %v828_v41 = vadd.f32 %v4564_v22, %v827_v39 }
  0xe2   : > { %4013 = vrot.lane.b32.xlu1 %v4012_v40, %s4414_s18  ;;  %v4713_v40 = vpop.f32.mrf.mxu2 }
  0xe3   : > { %v894_v31 = vmax.f32 %v828_v41, 0.0  ;;  %6776 = vst [vmem:[#allocation5_spill] sm:$0xff] %v4713_v40 }
  0xe5   : > { %v967_v44 = vrot.slane %v894_v31, 7  ;;  %v4017_v45 = vpack.i.bf16 %v894_v31, %v893_v30  ;;  %v1064_v52 = vrot.slane %v894_v31, 1  ;;  %v3930_v30 = vld [vmem:[%s6746_s5] sm:$0xff] }
  0xe6   : > { %1494 = vmatpush.bf16.msra.mxu2 %v3930_v30 }
  0xe7   : > { %4018 = vrot.lane.b32.xlu2 %v4017_v45, %s4413_s17  ;;  %v4667_v47 = vsel %vm949_vm1, %v965_v34, %v967_v44  ;;  %v1065_v58 = vsel %vm1046_vm2, %v1062_v35, %v1064_v52 }
  0xe8   : > { %v830_v48 = vpop.f32.mrf.mxu1 }
  0xe9   : > { %v831_v51 = vadd.f32 %v4564_v22, %v830_v48 }
  0xeb   : > { %v895_v53 = vmax.f32 %v831_v51, 0.0 }
  0xed   : > { %v969_v54 = vrot.slane %v895_v53, 7  ;;  %v1066_v55 = vrot.slane %v895_v53, 1 }
  0xef   : > { %v1067_v60 = vsel %vm1046_vm2, %v1064_v52, %v1066_v55  ;;  %v4680_v61 = vsel %vm949_vm1, %v967_v44, %v969_v54  ;;  %v3939_v44 = vld [vmem:[%s6748_s7 + $0x18] sm:$0xff] }
  0xf0   : > { %v832_v49 = vpop.f32.mrf.mxu1  ;;  %v4022_v62 = vpack.i.bf16 %v1067_v60, %v1065_v58  ;;  %1648 = vmatpush.bf16.msrb.mxu2 %v3939_v44  ;;  %3962 = vmatpush.bf16.msra.mxu3 %v3939_v44  ;;  %v4725_v58 = vpop.f32.mrf.mxu2 }
  0xf1   : > { %v833_v63 = vadd.f32 %v4564_v22, %v832_v49 }
  0xf2   : > { %4023 = vrot.lane.b32.xlu0 %v4022_v62, %s4414_s18 }
  0xf3   : > { %v896_v0 = vmax.f32 %v833_v63, 0.0 }
  0xf5   : > { %v971_v1 = vrot.slane %v896_v0, 7  ;;  %v4027_v4 = vpack.i.bf16 %v896_v0, %v895_v53  ;;  %v1068_v11 = vrot.slane %v896_v0, 1 }
  0xf7   : > { %4028 = vrot.lane.b32.xlu1 %v4027_v4, %s4413_s17  ;;  %v4691_v7 = vsel %vm949_vm1, %v969_v54, %v971_v1  ;;  %v1069_v16 = vsel %vm1046_vm2, %v1066_v55, %v1068_v11 }
  0xf8   : > { %v835_v9 = vpop.f32.mrf.mxu1 }
  0xf9   : > { %v836_v10 = vadd.f32 %v4564_v22, %v835_v9 }
  0xfb   : > { %v897_v12 = vmax.f32 %v836_v10, 0.0 }
  0xfd   : > { %v973_v13 = vrot.slane %v897_v12, 7  ;;  %v1070_v15 = vrot.slane %v897_v12, 1 }
  0xff   : > { %v1071_v17 = vsel %vm1046_vm2, %v1068_v11, %v1070_v15  ;;  %v4699_v18 = vsel %vm949_vm1, %v971_v1, %v973_v13  ;;  %v4734_v11 = vpop.f32.mrf.mxu2 }
 0x100   : > { %v837_v20 = vpop.f32.mrf.mxu1  ;;  %v4032_v21 = vpack.i.bf16 %v1071_v17, %v1069_v16 }
 0x101   : > { %v838_v23 = vadd.f32 %v4564_v22, %v837_v20 }
 0x102   : > { %4033 = vrot.lane.b32.xlu2 %v4032_v21, %s4414_s18 }
 0x103   : > { %v898_v2 = vmax.f32 %v838_v23, 0.0 }
 0x105   : > { %v975_v27 = vrot.slane %v898_v2, 7  ;;  %v4037_v29 = vpack.i.bf16 %v898_v2, %v897_v12  ;;  %v1072_v37 = vrot.slane %v898_v2, 1 }
 0x107   : > { %4038 = vrot.lane.b32.xlu0 %v4037_v29, %s4413_s17  ;;  %v4710_v34 = vsel %vm949_vm1, %v973_v13, %v975_v27  ;;  %v1073_v45 = vsel %vm1046_vm2, %v1070_v15, %v1072_v37 }
 0x108   : > { %v840_v35 = vpop.f32.mrf.mxu1 }
 0x109   : > { %v841_v36 = vadd.f32 %v4564_v22, %v840_v35 }
 0x10b   : > { %v899_v39 = vmax.f32 %v841_v36, 0.0 }
 0x10d   : > { %v977_v41 = vrot.slane %v899_v39, 7  ;;  %v1074_v31 = vrot.slane %v899_v39, 1 }
 0x10f   : > { %v1075_v46 = vsel %vm1046_vm2, %v1072_v37, %v1074_v31  ;;  %v4721_v48 = vsel %vm949_vm1, %v975_v27, %v977_v41  ;;  %v1045_v27 = vsel %vm949_vm1, 0.0, %v950_v28 }
 0x110   : > { %v842_v51 = vpop.f32.mrf.mxu1  ;;  %v4042_v52 = vpack.i.bf16 %v1075_v46, %v1073_v45  ;;  %v870_v46 = vpop.f32.mrf.mxu2 }
 0x111   : > { %v843_v53 = vadd.f32 %v4564_v22, %v842_v51 }
 0x112   : > { %4043 = vrot.lane.b32.xlu1 %v4042_v52, %s4414_s18 }
 0x113   : > { %v900_v54 = vmax.f32 %v843_v53, 0.0 }
 0x115   : > { %v979_v55 = vrot.slane %v900_v54, 7  ;;  %v4047_v56 = vpack.i.bf16 %v900_v54, %v899_v39  ;;  %v1076_v63 = vrot.slane %v900_v54, 1 }
 0x117   : > { %4048 = vrot.lane.b32.xlu2 %v4047_v56, %s4413_s17  ;;  %v4729_v60 = vsel %vm949_vm1, %v977_v41, %v979_v55  ;;  %v1077_v9 = vsel %vm1046_vm2, %v1074_v31, %v1076_v63 }
 0x118   : > { %v845_v49 = vpop.f32.mrf.mxu1 }
 0x119   : > { %v846_v62 = vadd.f32 %v4564_v22, %v845_v49  ;;  %v3979_v1 = vpop.permute.xlu0 %3978 }
 0x11a   : > { %v3981_v17 = vunpack.i.h.bf16 %v3979_v1  ;;  %v3980_v20 = vunpack.i.l.bf16 %v3979_v1 }
 0x11b   : > { %v901_v0 = vmax.f32 %v846_v62, 0.0 }
 0x11c   : > { %v1306_v36 = vsel %vm1305_vm3, %v1045_v27, %v3980_v20  ;;  %v1307_v37 = vsel %vm1305_vm3, %v4581_v32, %v3981_v17 }
 0x11d   : > { %v981_v4 = vrot.slane %v901_v0, 7  ;;  %v1078_v5 = vrot.slane %v901_v0, 1 }
 0x11f   : > { %v1079_v10 = vsel %vm1046_vm2, %v1076_v63, %v1078_v5  ;;  %v4737_v12 = vsel %vm949_vm1, %v979_v55, %v981_v4 }
 0x120   : > { %v847_v13 = vpop.f32.mrf.mxu1  ;;  %v4052_v15 = vpack.i.bf16 %v1079_v10, %v1077_v9 }
 0x121   : > { %v848_v16 = vadd.f32 %v4564_v22, %v847_v13  ;;  %v3999_v23 = vpop.permute.xlu2 %3998 }
 0x122   : > { %4053 = vrot.lane.b32.xlu0 %v4052_v15, %s4414_s18  ;;  %v4001_v52 = vunpack.i.h.bf16 %v3999_v23  ;;  %v4000_v53 = vunpack.i.l.bf16 %v3999_v23 }
 0x123   : > { %v902_v21 = vmax.f32 %v848_v16, 0.0 }
 0x124   : > { %v3984_v2 = vpop.permute.xlu0 %3983  ;;  %v1311_v1 = vsel %vm1305_vm3, %v4620_v3, %v4001_v52 }
 0x125   : > { %v983_v29 = vrot.slane %v902_v21, 7  ;;  %v3986_v30 = vunpack.i.h.bf16 %v3984_v2  ;;  %v3985_v35 = vunpack.i.l.bf16 %v3984_v2  ;;  %v4057_v39 = vpack.i.bf16 %v902_v21, %v901_v0 }
 0x126   : > { %v1080_v51 = vrot.slane %v902_v21, 1  ;;  %v1310_v0 = vsel %vm1305_vm3, %v4611_v59, %v4000_v53 }
 0x127   : > { %v1338_v41 = vsel %vm590_vm0, %v1306_v36, %v3985_v35  ;;  %v1339_v31 = vsel %vm590_vm0, %v1307_v37, %v3986_v30  ;;  %v4750_v44 = vsel %vm949_vm1, %v981_v4, %v983_v29  ;;  %4058 = vrot.lane.b32.xlu1 %v4057_v39, %s4413_s17 }
 0x128   : > { %v1370_v25 = vpack.c.bf16 %v1339_v31, %v1338_v41  ;;  %v850_v28 = vpop.f32.mrf.mxu1  ;;  %v1081_v4 = vsel %vm1046_vm2, %v1078_v5, %v1080_v51  ;;  %v872_v5 = vpop.f32.mrf.mxu2 }
 0x129   : > { %v851_v45 = vadd.f32 %v4564_v22, %v850_v28  ;;  %v3989_v54 = vpop.permute.xlu1 %3988  ;;  %v868_v28 = vadd.f32 %v4564_v22, %v4734_v11 }
 0x12a   : > { %3766 = vmatmul.msk.bf16.vlgmr.msra.gmra.mxu2 %vm1438_vm4, %v1370_v25  ;;  %v3991_v59 = vunpack.i.h.bf16 %v3989_v54  ;;  %v3990_v23 = vunpack.i.l.bf16 %v3989_v54  ;;  %v866_v25 = vadd.f32 %v4564_v22, %v4725_v58 }
 0x12b   : > { %v903_v32 = vmax.f32 %v851_v45, 0.0  ;;  %v4787_v54 = vmax.f32 %v868_v28, 0.0 }
 0x12c   : > { %v4004_v55 = vpop.permute.xlu2 %4003  ;;  %v1308_v36 = vsel %vm1305_vm3, %v4592_v42, %v3990_v23  ;;  %v873_v23 = vadd.f32 %v4564_v22, %v872_v5 }
 0x12d   : > { %v985_v56 = vrot.slane %v903_v32, 7  ;;  %v1082_v49 = vrot.slane %v903_v32, 1  ;;  %v4006_v62 = vunpack.i.h.bf16 %v4004_v55  ;;  %v4005_v63 = vunpack.i.l.bf16 %v4004_v55 }
 0x12f   : > { %v1083_v9 = vsel %vm1046_vm2, %v1080_v51, %v1082_v49  ;;  %v1342_v10 = vsel %vm590_vm0, %v1310_v0, %v4005_v63  ;;  %v1343_v13 = vsel %vm590_vm0, %v1311_v1, %v4006_v62  ;;  %v4764_v15 = vsel %vm949_vm1, %v983_v29, %v985_v56 }
 0x130   : > { %v852_v16 = vpop.f32.mrf.mxu1  ;;  %v4062_v17 = vpack.i.bf16 %v1083_v9, %v1081_v4  ;;  %v1372_v20 = vpack.c.bf16 %v1343_v13, %v1342_v10  ;;  %v1309_v29 = vsel %vm1305_vm3, %v4601_v50, %v3991_v59  ;;  %v871_v50 = vadd.f32 %v4564_v22, %v870_v46 }
 0x131   : > { %v853_v21 = vadd.f32 %v4564_v22, %v852_v16  ;;  %v999_v62 = vrot.slane %v4787_v54, 7 }
 0x132   : > { %4063 = vrot.lane.b32.xlu2 %v4062_v17, %s4414_s18  ;;  %v4789_v58 = vmax.f32 %v871_v50, 0.0 }
 0x133   : > { %v904_v3 = vmax.f32 %v853_v21, 0.0 }
 0x134   : > { %v3994_v2 = vpop.permute.xlu1 %3993  ;;  %v1001_v63 = vrot.slane %v4789_v58, 7 }
 0x135   : > { %v987_v27 = vrot.slane %v904_v3, 7  ;;  %v3996_v30 = vunpack.i.h.bf16 %v3994_v2  ;;  %v3995_v35 = vunpack.i.l.bf16 %v3994_v2  ;;  %v4067_v37 = vpack.i.bf16 %v904_v3, %v903_v32 }
 0x136   : > { %v1084_v52 = vrot.slane %v904_v3, 1  ;;  %v4785_v32 = vmax.f32 %v866_v25, 0.0  ;;  %v4802_v16 = vsel %vm949_vm1, %v999_v62, %v1001_v63  ;;  %v3938_v25 = vld [vmem:[%s6748_s7 + $0x10] sm:$0xff] }
 0x137   : > { %v1340_v39 = vsel %vm590_vm0, %v1308_v36, %v3995_v35  ;;  %v1341_v41 = vsel %vm590_vm0, %v1309_v29, %v3996_v30  ;;  %v4775_v31 = vsel %vm949_vm1, %v985_v56, %v987_v27  ;;  %4068 = vrot.lane.b32.xlu0 %v4067_v37, %s4413_s17  ;;  %v875_v56 = vpop.f32.mrf.mxu2  ;;  %v4816_v36 = vmax.f32 %v873_v23, 0.0  ;;  %1649 = vmatpush.bf16.msrb.mxu2 %v3938_v25 }
 0x138   : > { %v855_v42 = vpop.f32.mrf.mxu1  ;;  %v1371_v45 = vpack.c.bf16 %v1341_v41, %v1340_v39  ;;  %v1085_v46 = vsel %vm1046_vm2, %v1082_v49, %v1084_v52  ;;  %v997_v4 = vrot.slane %v4785_v32, 7  ;;  %v876_v3 = vadd.f32 %v4564_v22, %v875_v56  ;;  %3963 = vmatpush.bf16.msra.mxu3 %v3938_v25 }
 0x139   : > { %v856_v51 = vadd.f32 %v4564_v22, %v855_v42  ;;  %v1003_v5 = vrot.slane %v4816_v36, 7 }
 0x13a   : > { %3767 = vmatmul.msk.bf16.gmra.mxu2 %vm1438_vm4, %v1371_v45  ;;  %v4807_v49 = vsel %vm949_vm1, %v997_v4, %v999_v62  ;;  %v4819_v29 = vmax.f32 %v876_v3, 0.0  ;;  %v4097_v3 = vpack.i.bf16 %v4787_v54, %v4785_v32 }
 0x13b   : > { %v905_v53 = vmax.f32 %v856_v51, 0.0 }
 0x13c   : > { %v1005_v41 = vrot.slane %v4819_v29, 7 }
 0x13d   : > { %v989_v55 = vrot.slane %v905_v53, 7  ;;  %v1086_v11 = vrot.slane %v905_v53, 1 }
 0x13e   : > { %v4837_v56 = vsel %vm949_vm1, %v1003_v5, %v1005_v41 }
 0x13f   : > { %v1087_v0 = vsel %vm1046_vm2, %v1084_v52, %v1086_v11  ;;  %v4796_v1 = vsel %vm949_vm1, %v987_v27, %v989_v55  ;;  %v877_v2 = vpop.f32.mrf.mxu2 }
 0x140   : > { %v857_v9 = vpop.f32.mrf.mxu1  ;;  %v4072_v10 = vpack.i.bf16 %v1087_v0, %v1085_v46 }
 0x141   : > { %v858_v13 = vadd.f32 %v4564_v22, %v857_v9  ;;  %v1094_v9 = vrot.slane %v4785_v32, 1 }
 0x142   : > { %4073 = vrot.lane.b32.xlu1 %v4072_v10, %s4414_s18  ;;  %v1096_v10 = vrot.slane %v4787_v54, 1 }
 0x143   : > { %v906_v17 = vmax.f32 %v858_v13, 0.0  ;;  %v1098_v13 = vrot.slane %v4789_v58, 1 }
 0x145   : > { %v991_v21 = vrot.slane %v906_v17, 7  ;;  %v4077_v59 = vpack.i.bf16 %v906_v17, %v905_v53  ;;  %v1088_v37 = vrot.slane %v906_v17, 1  ;;  %v1100_v17 = vrot.slane %v4816_v36, 1 }
 0x147   : > { %4078 = vrot.lane.b32.xlu2 %v4077_v59, %s4413_s17  ;;  %v4813_v27 = vsel %vm949_vm1, %v989_v55, %v991_v21  ;;  %v1089_v50 = vsel %vm1046_vm2, %v1086_v11, %v1088_v37  ;;  %v4832_v55 = vsel %vm949_vm1, %v1001_v63, %v1003_v5  ;;  %v880_v46 = vpop.f32.mrf.mxu2  ;;  %v878_v59 = vadd.f32 %v4564_v22, %v877_v2 }
 0x148   : > { %v860_v30 = vpop.f32.mrf.mxu1 }
 0x149   : > { %v861_v35 = vadd.f32 %v4564_v22, %v860_v30  ;;  %v4009_v45 = vpop.permute.xlu0 %4008 }
 0x14a   : > { %3768 = vmatmul.msk.bf16.gmra.mxu2 %vm1438_vm4, %v1372_v20  ;;  %v4011_v0 = vunpack.i.h.bf16 %v4009_v45  ;;  %v4010_v11 = vunpack.i.l.bf16 %v4009_v45 }
 0x14b   : > { %v907_v39 = vmax.f32 %v861_v35, 0.0 }
 0x14c   : > { %v1313_v25 = vsel %vm1305_vm3, %v4646_v24, %v4011_v0  ;;  %v1312_v45 = vsel %vm1305_vm3, %v4635_v14, %v4010_v11 }
 0x14d   : > { %v993_v28 = vrot.slane %v907_v39, 7  ;;  %v1090_v42 = vrot.slane %v907_v39, 1 }
 0x14f   : > { %v1091_v20 = vsel %vm1046_vm2, %v1088_v37, %v1090_v42  ;;  %v4829_v51 = vsel %vm949_vm1, %v991_v21, %v993_v28  ;;  %v1102_v21 = vrot.slane %v4819_v29, 1  ;;  %v882_v32 = vpop.f32.mrf.mxu2 }
 0x150   : > { %v862_v52 = vpop.f32.mrf.mxu1  ;;  %v4082_v53 = vpack.i.bf16 %v1091_v20, %v1089_v50  ;;  %v881_v20 = vadd.f32 %v4564_v22, %v880_v46  ;;  %v914_v46 = vmax.f32 %v878_v59, 0.0  ;;  %v883_v59 = vadd.f32 %v4564_v22, %v882_v32 }
 0x151   : > { %v863_v62 = vadd.f32 %v4564_v22, %v862_v52  ;;  %v1103_v11 = vsel %vm1046_vm2, %v1100_v17, %v1102_v21 }
 0x152   : > { %4083 = vrot.lane.b32.xlu0 %v4082_v53, %s4414_s18  ;;  %v915_v0 = vmax.f32 %v881_v20, 0.0  ;;  %v916_v22 = vmax.f32 %v883_v59, 0.0 }
 0x153   : > { %v908_v63 = vmax.f32 %v863_v62, 0.0 }
 0x154   : > { %v4014_v23 = vpop.permute.xlu1 %4013 }
 0x155   : > { %v995_v30 = vrot.slane %v908_v63, 7  ;;  %v1092_v35 = vrot.slane %v908_v63, 1  ;;  %v4016_v37 = vunpack.i.h.bf16 %v4014_v23  ;;  %v4015_v5 = vunpack.i.l.bf16 %v4014_v23 }
 0x156   : > { %v4087_v50 = vpack.i.bf16 %v908_v63, %v907_v39  ;;  %v1097_v39 = vsel %vm1046_vm2, %v1094_v9, %v1096_v10  ;;  %v1007_v63 = vrot.slane %v914_v46, 7 }
 0x157   : > { %v1093_v52 = vsel %vm1046_vm2, %v1090_v42, %v1092_v35  ;;  %v1095_v2 = vsel %vm1046_vm2, %v1092_v35, %v1094_v9  ;;  %v1344_v53 = vsel %vm590_vm0, %v1312_v45, %v4015_v5  ;;  %v1345_v54 = vsel %vm590_vm0, %v1313_v25, %v4016_v37  ;;  %v4019_v35 = vpop.permute.xlu2 %4018 }
 0x158   : > { %4088 = vrot.lane.b32.xlu1 %v4087_v50, %s4413_s17  ;;  %v4092_v62 = vpack.i.bf16 %v1095_v2, %v1093_v52  ;;  %v1373_v23 = vpack.c.bf16 %v1345_v54, %v1344_v53  ;;  %v4860_v24 = vsel %vm949_vm1, %v993_v28, %v995_v30  ;;  %v4865_v14 = vsel %vm949_vm1, %v995_v30, %v997_v4 }
 0x159   : > { %v1099_v42 = vsel %vm1046_vm2, %v1096_v10, %v1098_v13  ;;  %v1101_v28 = vsel %vm1046_vm2, %v1098_v13, %v1100_v17  ;;  %v1009_v4 = vrot.slane %v915_v0, 7  ;;  %v4107_v9 = vpack.i.bf16 %v4816_v36, %v4789_v58 }
 0x15a   : > { %4093 = vrot.lane.b32.xlu2 %v4092_v62, %s4414_s18  ;;  %4098 = vrot.lane.b32.xlu0 %v4097_v3, %s4413_s17  ;;  %v4102_v30 = vpack.i.bf16 %v1099_v42, %v1097_v39  ;;  %v4112_v10 = vpack.i.bf16 %v1103_v11, %v1101_v28  ;;  %v1104_v37 = vrot.slane %v914_v46, 1  ;;  %v4881_v13 = vsel %vm949_vm1, %v1005_v41, %v1007_v63 }
 0x15b   : > { %3769 = vmatmul.msk.bf16.gmra.mxu2 %vm1438_vm4, %v1373_v23  ;;  %v4884_v17 = vsel %vm949_vm1, %v1007_v63, %v1009_v4  ;;  %v1106_v3 = vrot.slane %v915_v0, 1  ;;  %v4021_v5 = vunpack.i.h.bf16 %v4019_v35  ;;  %v4020_v25 = vunpack.i.l.bf16 %v4019_v35 }
 0x15c   : > { %v1105_v58 = vsel %vm1046_vm2, %v1102_v21, %v1104_v37  ;;  %v4117_v50 = vpack.i.bf16 %v914_v46, %v4819_v29  ;;  %v1108_v41 = vrot.slane %v916_v22, 1  ;;  %v4127_v54 = vpack.i.bf16 %v916_v22, %v915_v0 }
 0x15d   : > { %v1107_v36 = vsel %vm1046_vm2, %v1104_v37, %v1106_v3  ;;  %v1315_v2 = vsel %vm1305_vm3, %v4667_v47, %v4021_v5  ;;  %v1314_v53 = vsel %vm1305_vm3, %v4656_v38, %v4020_v25  ;;  %v1011_v35 = vrot.slane %v916_v22, 7 }
 0x15e   : > { %v4122_v62 = vpack.i.bf16 %v1107_v36, %v1105_v58  ;;  %v1109_v46 = vsel %vm1046_vm2, %v1106_v3, %v1108_v41  ;;  %v1111_v28 = vsel %vm1046_vm2, %v1108_v41, 0.0  ;;  %v3937_v41 = vld [vmem:[%s6748_s7 + $0x8] sm:$0xff] }
 0x15f   : > { %v4034_v39 = vpop.permute.xlu2 %4033  ;;  %v4911_v37 = vsel %vm949_vm1, %v1009_v4, %v1011_v35  ;;  %1650 = vmatpush.bf16.msrb.mxu2 %v3937_v41  ;;  %3964 = vmatpush.bf16.msra.mxu3 %v3937_v41 }
 0x160   : > { %4103 = vrot.lane.b32.xlu1 %v4102_v30, %s4414_s18  ;;  %v4036_v38 = vunpack.i.h.bf16 %v4034_v39  ;;  %v4035_v0 = vunpack.i.l.bf16 %v4034_v39  ;;  %v4132_v30 = vpack.i.bf16 %v1111_v28, %v1109_v46 }
 0x162   : > { %4108 = vrot.lane.b32.xlu2 %v4107_v9, %s4413_s17  ;;  %4113 = vrot.lane.b32.xlu0 %v4112_v10, %s4414_s18 }
 0x164   : > { %v4024_v45 = vpop.permute.xlu0 %4023 }
 0x165   : > { %v4026_v20 = vunpack.i.h.bf16 %v4024_v45  ;;  %v4025_v52 = vunpack.i.l.bf16 %v4024_v45 }
 0x167   : > { %v1347_v23 = vsel %vm590_vm0, %v1315_v2, %v4026_v20  ;;  %v1346_v21 = vsel %vm590_vm0, %v1314_v53, %v4025_v52  ;;  %v648_v20 = vpop.f32.mrf.mxu0 }
 0x168   : > { %v1374_v42 = vpack.c.bf16 %v1347_v23, %v1346_v21  ;;  %4118 = vrot.lane.b32.xlu1 %v4117_v50, %s4413_s17 }
 0x169   : > { %v4029_v29 = vpop.permute.xlu1 %4028 }
 0x16a   : > { %v4031_v11 = vunpack.i.h.bf16 %v4029_v29  ;;  %v4030_v47 = vunpack.i.l.bf16 %v4029_v29  ;;  %4128 = vrot.lane.b32.xlu0 %v4127_v54, %s4413_s17  ;;  %4123 = vrot.lane.b32.xlu2 %v4122_v62, %s4414_s18 }
 0x16b   : > { %3770 = vmatmul.msk.bf16.gmra.mxu2 %vm1438_vm4, %v1374_v42 }
 0x16c   : > { %v1317_v32 = vsel %vm1305_vm3, %v4691_v7, %v4031_v11  ;;  %v1316_v63 = vsel %vm1305_vm3, %v4680_v61, %v4030_v47 }
 0x16d   : > { %v1348_v9 = vsel %vm590_vm0, %v1316_v63, %v4035_v0  ;;  %v1349_v10 = vsel %vm590_vm0, %v1317_v32, %v4036_v38 }
 0x16e   : > { %v1375_v59 = vpack.c.bf16 %v1349_v10, %v1348_v9 }
 0x16f   : > { %v4928_v21 = vpop.f32.mrf.mxu0 }
 0x170   : > { %4133 = vrot.lane.b32.xlu1 %v4132_v30, %s4414_s18  ;;  %6777 = vst [vmem:[#allocation6_spill] sm:$0xff] %v4928_v21 }
 0x171   : > { %v4049_v52 = vpop.permute.xlu2 %4048 }
 0x172   : > { %v4051_v2 = vunpack.i.h.bf16 %v4049_v52 }
 0x174   : > { %v1321_v62 = vsel %vm1305_vm3, %v4729_v60, %v4051_v2 }
 0x177   : > { %v653_v30 = vpop.f32.mrf.mxu0 }
 0x179   : > { %v4039_v3 = vpop.permute.xlu0 %4038 }
 0x17a   : > { %v4041_v5 = vunpack.i.h.bf16 %v4039_v3  ;;  %v4040_v7 = vunpack.i.l.bf16 %v4039_v3 }
 0x17b   : > { %3771 = vmatmul.msk.bf16.gmra.mxu2 %vm1438_vm4, %v1375_v59  ;;  %v4944_v59 = vld [vmem:[%s6743_s2] ss:$0 sm:$0xff] }
 0x17c   : > { %v1319_v36 = vsel %vm1305_vm3, %v4710_v34, %v4041_v5  ;;  %v1318_v45 = vsel %vm1305_vm3, %v4699_v18, %v4040_v7  ;;  %v4050_v34 = vunpack.i.l.bf16 %v4049_v52  ;;  %v649_v35 = vadd.f32 %v4944_v59, %v648_v20 }
 0x17e   : > { %v1320_v23 = vsel %vm1305_vm3, %v4721_v48, %v4050_v34  ;;  %v728_v3 = vmax.f32 %v649_v35, 0.0 }
 0x17f   : > { %v4939_v10 = vpop.f32.mrf.mxu0 }
 0x180   : > { %6778 = vst [vmem:[#allocation7_spill] sm:$0xff] %v4939_v10 }
 0x184   : > { %v4044_v25 = vpop.permute.xlu1 %4043 }
 0x185   : > { %v4046_v58 = vunpack.i.h.bf16 %v4044_v25  ;;  %v4045_v61 = vunpack.i.l.bf16 %v4044_v25 }
 0x187   : > { %v1350_v50 = vsel %vm590_vm0, %v1318_v45, %v4045_v61  ;;  %v1351_v22 = vsel %vm590_vm0, %v1319_v36, %v4046_v58  ;;  %v658_v7 = vpop.f32.mrf.mxu0 }
 0x188   : > { %v1376_v4 = vpack.c.bf16 %v1351_v22, %v1350_v50 }
 0x18b   : > { %3772 = vmatmul.msk.bf16.gmra.mxu2 %vm1438_vm4, %v1376_v4 }
 0x18c   : > { %v4064_v46 = vpop.permute.xlu2 %4063 }
 0x18d   : > { %v4066_v38 = vunpack.i.h.bf16 %v4064_v46  ;;  %v4065_v0 = vunpack.i.l.bf16 %v4064_v46 }
 0x18f   : > { %v4962_v2 = vpop.f32.mrf.mxu0 }
 0x190   : > { %6781 = vst [vmem:[#allocation10_spill] sm:$0xff] %v4962_v2 }
 0x194   : > { %v4054_v53 = vpop.permute.xlu0 %4053 }
 0x195   : > { %v4056_v54 = vunpack.i.h.bf16 %v4054_v53  ;;  %v4055_v18 = vunpack.i.l.bf16 %v4054_v53 }
 0x197   : > { %v1353_v39 = vsel %vm590_vm0, %v1321_v62, %v4056_v54  ;;  %v1352_v42 = vsel %vm590_vm0, %v1320_v23, %v4055_v18  ;;  %v654_v18 = vadd.f32 %v4944_v59, %v653_v30 }
 0x198   : > { %v1377_v29 = vpack.c.bf16 %v1353_v39, %v1352_v42 }
 0x199   : > { %v4059_v28 = vpop.permute.xlu1 %4058  ;;  %v730_v39 = vmax.f32 %v654_v18, 0.0 }
 0x19a   : > { %v4061_v11 = vunpack.i.h.bf16 %v4059_v28  ;;  %v4060_v47 = vunpack.i.l.bf16 %v4059_v28 }
 0x19b   : > { %3773 = vmatmul.msk.bf16.gmra.mxu2 %vm1438_vm4, %v1377_v29 }
 0x19c   : > { %v1323_v60 = vsel %vm1305_vm3, %v4750_v44, %v4061_v11  ;;  %v1322_v48 = vsel %vm1305_vm3, %v4737_v12, %v4060_v47  ;;  %v4950_v44 = vld [vmem:[%s6747_s6] ss:$0 sm:$0xff] }
 0x19d   : > { %v1354_v32 = vsel %vm590_vm0, %v1322_v48, %v4065_v0  ;;  %v1355_v63 = vsel %vm590_vm0, %v1323_v60, %v4066_v38 }
 0x19e   : > { %v1378_v9 = vpack.c.bf16 %v1355_v63, %v1354_v32 }
 0x1a1   : > { %v4079_v62 = vpop.permute.xlu2 %4078 }
 0x1a2   : > { %v4080_v46 = vunpack.i.l.bf16 %v4079_v62 }
 0x1a4   : > { %v1326_v32 = vsel %vm1305_vm3, %v4796_v1, %v4080_v46 }
 0x1a9   : > { %v4069_v25 = vpop.permute.xlu0 %4068 }
 0x1aa   : > { %v4071_v61 = vunpack.i.h.bf16 %v4069_v25  ;;  %v4070_v36 = vunpack.i.l.bf16 %v4069_v25 }
 0x1ab   : > { %3774 = vmatmul.msk.bf16.gmra.mxu2 %vm1438_vm4, %v1378_v9 }
 0x1ac   : > { %v1325_v20 = vsel %vm1305_vm3, %v4775_v31, %v4071_v61  ;;  %v1324_v52 = vsel %vm1305_vm3, %v4764_v15, %v4070_v36  ;;  %v4969_v31 = vpop.f32.mrf.mxu0  ;;  %v4081_v15 = vunpack.i.h.bf16 %v4079_v62 }
 0x1ad   : > { %v1496_v12 = vpop.f32.mrf.mxu2 }
 0x1ae   : > { %v1497_v5 = vadd.f32 %v4950_v44, %v1496_v12  ;;  %v1327_v48 = vsel %vm1305_vm3, %v4813_v27, %v4081_v15  ;;  %v3936_v27 = vld [vmem:[%s6748_s7] sm:$0xff] }
 0x1af   : > { %1651 = vmatpush.bf16.msrb.mxu2 %v3936_v27  ;;  %3965 = vmatpush.bf16.msra.mxu3 %v3936_v27 }
 0x1b0   : > { %v1576_v58 = vmax.f32 %v1497_v5, 0.0 }
 0x1b2   : > { %v4954_v45 = vadd.f32 %v1576_v58, %v728_v3  ;;  %v659_v3 = vadd.f32 %v4944_v59, %v658_v7 }
 0x1b4   : > { %6779 = vst [vmem:[#allocation8_spill] sm:$0xff] %v4954_v45  ;;  %v4074_v50 = vpop.permute.xlu1 %4073  ;;  %v4094_v47 = vpop.permute.xlu2 %4093  ;;  %v732_v7 = vmax.f32 %v659_v3, 0.0 }
 0x1b5   : > { %v4076_v22 = vunpack.i.h.bf16 %v4074_v50  ;;  %v4075_v4 = vunpack.i.l.bf16 %v4074_v50  ;;  %v4956_v41 = vpop.f32.mrf.mxu2  ;;  %v4979_v63 = vpop.f32.mrf.mxu0  ;;  %v4096_v58 = vunpack.i.h.bf16 %v4094_v47  ;;  %v4095_v1 = vunpack.i.l.bf16 %v4094_v47 }
 0x1b6   : > { %6780 = vst [vmem:[#allocation9_spill] sm:$0xff] %v4956_v41 }
 0x1b7   : > { %v1356_v34 = vsel %vm590_vm0, %v1324_v52, %v4075_v4  ;;  %v1357_v53 = vsel %vm590_vm0, %v1325_v20, %v4076_v22  ;;  %6784 = vst [vmem:[#allocation13_spill] sm:$0xff] %v4979_v63 }
 0x1b8   : > { %v1379_v54 = vpack.c.bf16 %v1357_v53, %v1356_v34 }
 0x1bb   : > { %3775 = vmatmul.msk.bf16.gmra.mxu2 %vm1438_vm4, %v1379_v54 }
 0x1bc   : > { %v4109_v53 = vpop.permute.xlu2 %4108 }
 0x1bd   : > { %v1501_v23 = vpop.f32.mrf.mxu2  ;;  %v4995_v34 = vpop.f32.mrf.mxu0 }
 0x1be   : > { %v1502_v42 = vadd.f32 %v4950_v44, %v1501_v23  ;;  %v4383_v23 = vld [vmem:[%s4512_s21 + $0x20] sm:$0xff] }
 0x1bf   : > { %3802 = vmatmul.msk.bf16.vlgmr.msra.gmra.mxu3 %vm590_vm0, %v4383_v23 }
 0x1c0   : > { %v1578_v29 = vmax.f32 %v1502_v42, 0.0 }
 0x1c2   : > { %v4971_v28 = vadd.f32 %v1578_v29, %v730_v39  ;;  %v4110_v39 = vunpack.i.l.bf16 %v4109_v53 }
 0x1c4   : > { %6782 = vst [vmem:[#allocation11_spill] sm:$0xff] %v4971_v28  ;;  %v4084_v11 = vpop.permute.xlu0 %4083 }
 0x1c5   : > { %v4086_v38 = vunpack.i.h.bf16 %v4084_v11  ;;  %v4085_v0 = vunpack.i.l.bf16 %v4084_v11  ;;  %v4973_v60 = vpop.f32.mrf.mxu2 }
 0x1c6   : > { %6783 = vst [vmem:[#allocation12_spill] sm:$0xff] %v4973_v60 }
 0x1c7   : > { %v1359_v30 = vsel %vm590_vm0, %v1327_v48, %v4086_v38  ;;  %v1358_v9 = vsel %vm590_vm0, %v1326_v32, %v4085_v0 }
 0x1c8   : > { %v1380_v35 = vpack.c.bf16 %v1359_v30, %v1358_v9 }
 0x1ca   : > { %v4089_v12 = vpop.permute.xlu1 %4088 }
 0x1cb   : > { %v4091_v5 = vunpack.i.h.bf16 %v4089_v12  ;;  %v4090_v25 = vunpack.i.l.bf16 %v4089_v12  ;;  %3776 = vmatmul.msk.bf16.gmra.mxu2 %vm1438_vm4, %v1380_v35  ;;  %v1332_v12 = vsel %vm1305_vm3, %v4802_v16, %v4110_v39  ;;  %v664_v16 = vadd.f32 %v4944_v59, %v4969_v31  ;;  %v4384_v31 = vld [vmem:[%s4512_s21 + $0x28] sm:$0xff] }
 0x1cc   : > { %v4099_v61 = vpop.permute.xlu0 %4098 }
 0x1cd   : > { %v1329_v36 = vsel %vm1305_vm3, %v4860_v24, %v4091_v5  ;;  %v1328_v50 = vsel %vm1305_vm3, %v4829_v51, %v4090_v25  ;;  %v1506_v22 = vpop.f32.mrf.mxu2  ;;  %v4101_v18 = vunpack.i.h.bf16 %v4099_v61  ;;  %v4100_v62 = vunpack.i.l.bf16 %v4099_v61  ;;  %v4124_v25 = vpop.permute.xlu2 %4123 }
 0x1ce   : > { %v1507_v4 = vadd.f32 %v4950_v44, %v1506_v22  ;;  %v1360_v20 = vsel %vm590_vm0, %v1328_v50, %v4095_v1  ;;  %v1361_v52 = vsel %vm590_vm0, %v1329_v36, %v4096_v58  ;;  %v4111_v51 = vunpack.i.h.bf16 %v4109_v53 }
 0x1cf   : > { %v1381_v54 = vpack.c.bf16 %v1361_v52, %v1360_v20  ;;  %v1331_v11 = vsel %vm1305_vm3, %v4807_v49, %v4101_v18  ;;  %v1330_v47 = vsel %vm1305_vm3, %v4865_v14, %v4100_v62  ;;  %v5013_v49 = vpop.f32.mrf.mxu0  ;;  %v4126_v1 = vunpack.i.h.bf16 %v4124_v25  ;;  %3803 = vmatmul.msk.bf16.gmra.mxu3 %vm590_vm0, %v4384_v31 }
 0x1d0   : > { %v1580_v24 = vmax.f32 %v1507_v4, 0.0  ;;  %v1333_v35 = vsel %vm1305_vm3, %v4832_v55, %v4111_v51  ;;  %6787 = vst [vmem:[#allocation16_spill] sm:$0xff] %v5013_v49  ;;  %v4125_v61 = vunpack.i.l.bf16 %v4124_v25  ;;  %v734_v18 = vmax.f32 %v664_v16, 0.0 }
 0x1d2   : > { %v4999_v42 = vadd.f32 %v1580_v24, %v732_v7  ;;  %v4104_v29 = vpop.permute.xlu1 %4103 }
 0x1d3   : > { %v4106_v15 = vunpack.i.h.bf16 %v4104_v29  ;;  %v4105_v46 = vunpack.i.l.bf16 %v4104_v29 }
 0x1d4   : > { %6785 = vst [vmem:[#allocation14_spill] sm:$0xff] %v4999_v42  ;;  %v4114_v38 = vpop.permute.xlu0 %4113 }
 0x1d5   : > { %v1362_v0 = vsel %vm590_vm0, %v1330_v47, %v4105_v46  ;;  %v1363_v48 = vsel %vm590_vm0, %v1331_v11, %v4106_v15  ;;  %v4116_v32 = vunpack.i.h.bf16 %v4114_v38  ;;  %v4115_v30 = vunpack.i.l.bf16 %v4114_v38  ;;  %v5007_v9 = vpop.f32.mrf.mxu2 }
 0x1d6   : > { %6786 = vst [vmem:[#allocation15_spill] sm:$0xff] %v5007_v9  ;;  %v1382_v3 = vpack.c.bf16 %v1363_v48, %v1362_v0 }
 0x1d7   : > { %v1365_v14 = vsel %vm590_vm0, %v1333_v35, %v4116_v32  ;;  %v1364_v5 = vsel %vm590_vm0, %v1332_v12, %v4115_v30  ;;  %v673_v23 = vpop.f32.mrf.mxu0  ;;  %v669_v32 = vadd.f32 %v4944_v59, %v4995_v34 }
 0x1d8   : > { %v1383_v27 = vpack.c.bf16 %v1365_v14, %v1364_v5 }
 0x1da   : > { %v4119_v58 = vpop.permute.xlu1 %4118 }
 0x1db   : > { %v4121_v36 = vunpack.i.h.bf16 %v4119_v58  ;;  %v4120_v50 = vunpack.i.l.bf16 %v4119_v58  ;;  %3777 = vmatmul.msk.bf16.gmra.mxu2 %vm1438_vm4, %v1381_v54 }
 0x1dc   : > { %v4129_v7 = vpop.permute.xlu0 %4128 }
 0x1dd   : > { %v1335_v55 = vsel %vm1305_vm3, %v4881_v13, %v4121_v36  ;;  %v1334_v22 = vsel %vm1305_vm3, %v4837_v56, %v4120_v50  ;;  %v4131_v54 = vunpack.i.h.bf16 %v4129_v7  ;;  %v4130_v24 = vunpack.i.l.bf16 %v4129_v7  ;;  %v4386_v36 = vld [vmem:[%s4512_s21 + $0x38] sm:$0xff] }
 0x1de   : > { %v1366_v4 = vsel %vm590_vm0, %v1334_v22, %v4125_v61  ;;  %v1367_v20 = vsel %vm590_vm0, %v1335_v55, %v4126_v1  ;;  %v1511_v52 = vpop.f32.mrf.mxu2 }
 0x1df   : > { %v1384_v53 = vpack.c.bf16 %v1367_v20, %v1366_v4  ;;  %v1512_v62 = vadd.f32 %v4950_v44, %v1511_v52  ;;  %v1337_v15 = vsel %vm1305_vm3, %v4911_v37, %v4131_v54  ;;  %v1336_v46 = vsel %vm1305_vm3, %v4884_v17, %v4130_v24  ;;  %v5039_v48 = vpop.f32.mrf.mxu0  ;;  %v4385_v17 = vld [vmem:[%s4512_s21 + $0x30] sm:$0xff]  ;;  %v4387_v52 = vld [vmem:[%s4512_s21 + $0x40] sm:$0xff] }
 0x1e0   : > { %6790 = vst [vmem:[#allocation19_spill] sm:$0xff] %v5039_v48  ;;  %v736_v37 = vmax.f32 %v669_v32, 0.0  ;;  %3804 = vmatmul.msk.bf16.gmra.mxu3 %vm590_vm0, %v4385_v17  ;;  %v4390_v17 = vld [vmem:[%s4512_s21 + $0x50] sm:$0xff] }
 0x1e1   : > { %v1582_v13 = vmax.f32 %v1512_v62, 0.0 }
 0x1e2   : > { %v4134_v51 = vpop.permute.xlu1 %4133 }
 0x1e3   : > { %v5029_v56 = vadd.f32 %v1582_v13, %v734_v18  ;;  %v4136_v39 = vunpack.i.h.bf16 %v4134_v51  ;;  %v4135_v29 = vunpack.i.l.bf16 %v4134_v51 }
 0x1e5   : > { %6788 = vst [vmem:[#allocation17_spill] sm:$0xff] %v5029_v56  ;;  %v1368_v11 = vsel %vm590_vm0, %v1336_v46, %v4135_v29  ;;  %v1369_v47 = vsel %vm590_vm0, %v1337_v15, %v4136_v39  ;;  %v4388_v39 = vld [vmem:[%s4512_s21 + $0x48] sm:$0xff] }
 0x1e6   : > { %v1385_v38 = vpack.c.bf16 %v1369_v47, %v1368_v11  ;;  %v5037_v0 = vpop.f32.mrf.mxu2  ;;  %v4389_v47 = vld [vmem:[%s4512_s21] sm:$0xff] }
 0x1e7   : > { %6789 = vst [vmem:[#allocation18_spill] sm:$0xff] %v5037_v0  ;;  %v678_v5 = vpop.f32.mrf.mxu0 }
 0x1eb   : > { %3778 = vmatmul.msk.bf16.gmra.mxu2 %vm1438_vm4, %v1382_v3  ;;  %v674_v3 = vadd.f32 %v4944_v59, %v673_v23 }
 0x1ed   : > { %v738_v1 = vmax.f32 %v674_v3, 0.0 }
 0x1ee   : > { %v1516_v30 = vpop.f32.mrf.mxu2 }
 0x1ef   : > { %v1517_v35 = vadd.f32 %v4950_v44, %v1516_v30  ;;  %v5053_v58 = vpop.f32.mrf.mxu0 }
 0x1f0   : > { %6793 = vst [vmem:[#allocation22_spill] sm:$0xff] %v5053_v58  ;;  %3805 = vmatmul.msk.bf16.gmra.mxu3 %vm590_vm0, %v4386_v36 }
 0x1f1   : > { %v1584_v12 = vmax.f32 %v1517_v35, 0.0 }
 0x1f3   : > { %v5047_v14 = vadd.f32 %v1584_v12, %v736_v37 }
 0x1f5   : > { %6791 = vst [vmem:[#allocation20_spill] sm:$0xff] %v5047_v14 }
 0x1f6   : > { %v5049_v25 = vpop.f32.mrf.mxu2 }
 0x1f7   : > { %6792 = vst [vmem:[#allocation21_spill] sm:$0xff] %v5049_v25  ;;  %v683_v22 = vpop.f32.mrf.mxu0 }
 0x1fb   : > { %3779 = vmatmul.msk.bf16.gmra.mxu2 %vm1438_vm4, %v1383_v27  ;;  %v679_v27 = vadd.f32 %v4944_v59, %v678_v5 }
 0x1fd   : > { %v740_v4 = vmax.f32 %v679_v27, 0.0  ;;  %v4392_v27 = vld [vmem:[%s4512_s21 + $0x58] sm:$0xff] }
 0x1fe   : > { %v1521_v34 = vpop.f32.mrf.mxu2 }
 0x1ff   : > { %v1522_v61 = vadd.f32 %v4950_v44, %v1521_v34  ;;  %v5067_v62 = vpop.f32.mrf.mxu0 }
 0x200   : > { %3806 = vmatmul.msk.bf16.gmra.mxu3 %vm590_vm0, %v4387_v52  ;;  %6796 = vst [vmem:[#allocation25_spill] sm:$0xff] %v5067_v62 }
 0x201   : > { %v1586_v50 = vmax.f32 %v1522_v61, 0.0 }
 0x203   : > { %v5058_v16 = vadd.f32 %v1586_v50, %v738_v1  ;;  %v4391_v1 = vld [vmem:[%s4512_s21 + $0x8] sm:$0xff] }
 0x205   : > { %6794 = vst [vmem:[#allocation23_spill] sm:$0xff] %v5058_v16 }
 0x206   : > { %v5060_v55 = vpop.f32.mrf.mxu2 }
 0x207   : > { %6795 = vst [vmem:[#allocation24_spill] sm:$0xff] %v5060_v55  ;;  %v688_v23 = vpop.f32.mrf.mxu0 }
 0x20b   : > { %3780 = vmatmul.msk.bf16.gmra.mxu2 %vm1438_vm4, %v1384_v53  ;;  %v684_v53 = vadd.f32 %v4944_v59, %v683_v22 }
 0x20d   : > { %v742_v13 = vmax.f32 %v684_v53, 0.0 }
 0x20e   : > { %v1526_v7 = vpop.f32.mrf.mxu2 }
 0x20f   : > { %v1527_v20 = vadd.f32 %v4950_v44, %v1526_v7  ;;  %v5082_v11 = vpop.f32.mrf.mxu0 }
 0x210   : > { %3807 = vmatmul.msk.bf16.gmra.mxu3 %vm590_vm0, %v4388_v39  ;;  %6801 = vst [vmem:[#allocation30_spill] sm:$0xff] %v5082_v11  ;;  %v4394_v39 = vld [vmem:[%s4512_s21 + $0x60] sm:$0xff] }
 0x211   : > { %v1588_v18 = vmax.f32 %v1527_v20, 0.0 }
 0x213   : > { %v5069_v54 = vadd.f32 %v1588_v18, %v740_v4  ;;  %v4393_v18 = vld [vmem:[%s4512_s21 + $0x10] sm:$0xff] }
 0x215   : > { %6797 = vst [vmem:[#allocation26_spill] sm:$0xff] %v5069_v54 }
 0x216   : > { %v5071_v24 = vpop.f32.mrf.mxu2 }
 0x217   : > { %6798 = vst [vmem:[#allocation27_spill] sm:$0xff] %v5071_v24  ;;  %v693_v35 = vpop.f32.mrf.mxu0 }
 0x218   : > { %v694_v61 = vadd.f32 %v4944_v59, %v693_v35 }
 0x21a   : > { %v746_v50 = vmax.f32 %v694_v61, 0.0 }
 0x21b   : > { %3781 = vmatmul.msk.bf16.gmra.mxu2 %vm1438_vm4, %v1385_v38  ;;  %v689_v38 = vadd.f32 %v4944_v59, %v688_v23 }
 0x21d   : > { %v744_v30 = vmax.f32 %v689_v38, 0.0 }
 0x21e   : > { %v1531_v31 = vpop.f32.mrf.mxu2 }
 0x21f   : > { %v1532_v51 = vadd.f32 %v4950_v44, %v1531_v31  ;;  %v5094_v34 = vpop.f32.mrf.mxu0 }
 0x220   : > { %3808 = vmatmul.msk.bf16.gmra.mxu3 %vm590_vm0, %v4390_v17  ;;  %6804 = vst [vmem:[#allocation33_spill] sm:$0xff] %v5094_v34 }
 0x221   : > { %v1590_v29 = vmax.f32 %v1532_v51, 0.0 }
 0x223   : > { %v5078_v15 = vadd.f32 %v1590_v29, %v742_v13 }
 0x225   : > { %6799 = vst [vmem:[#allocation28_spill] sm:$0xff] %v5078_v15 }
 0x226   : > { %v5080_v46 = vpop.f32.mrf.mxu2 }
 0x227   : > { %6800 = vst [vmem:[#allocation29_spill] sm:$0xff] %v5080_v46  ;;  %v698_v20 = vpop.f32.mrf.mxu0 }
 0x228   : > { %v699_v53 = vadd.f32 %v4944_v59, %v698_v20  ;;  %v709_v20 = vadd.f32 %v4944_v59, %v4627_v8  ;;  %v3946_v8 = vld [vmem:[%s6750_s9 + $0x30] sm:$0xff] }
 0x22a   : > { %v748_v13 = vmax.f32 %v699_v53, 0.0 }
 0x22b   : > { %3798 = vmatmul.msk.bf16.vlgmr.msrb.gmra.mxu2 %vm590_vm0, %v4389_v47 }
 0x22e   : > { %v1536_v32 = vpop.f32.mrf.mxu2 }
 0x22f   : > { %v1537_v37 = vadd.f32 %v4950_v44, %v1536_v32  ;;  %v5109_v31 = vpop.f32.mrf.mxu0 }
 0x230   : > { %3809 = vmatmul.msk.bf16.gmra.mxu3 %vm590_vm0, %v4392_v27  ;;  %6807 = vst [vmem:[#allocation36_spill] sm:$0xff] %v5109_v31  ;;  %v3949_v27 = vld [vmem:[%s6750_s9 + $0x48] sm:$0xff] }
 0x231   : > { %v1592_v12 = vmax.f32 %v1537_v37, 0.0  ;;  %2766 = vmatpush.bf16.msrb.mxu1 %v3949_v27 }
 0x233   : > { %v5090_v5 = vadd.f32 %v1592_v12, %v744_v30  ;;  %v4395_v30 = vld [vmem:[%s4512_s21 + $0x18] sm:$0xff] }
 0x235   : > { %6802 = vst [vmem:[#allocation31_spill] sm:$0xff] %v5090_v5 }
 0x236   : > { %v5092_v3 = vpop.f32.mrf.mxu2 }
 0x237   : > { %6803 = vst [vmem:[#allocation32_spill] sm:$0xff] %v5092_v3  ;;  %v703_v32 = vpop.f32.mrf.mxu0 }
 0x238   : > { %v704_v37 = vadd.f32 %v4944_v59, %v703_v32 }
 0x23a   : > { %v750_v17 = vmax.f32 %v704_v37, 0.0  ;;  %v714_v37 = vadd.f32 %v4944_v59, %v4651_v33  ;;  %v719_v33 = vadd.f32 %v4944_v59, %v4675_v57 }
 0x23b   : > { %3799 = vmatmul.msk.bf16.gmra.mxu2 %vm590_vm0, %v4391_v1  ;;  %v4396_v1 = vld [vmem:[%s4512_s21 + $0x68] sm:$0xff] }
 0x23e   : > { %v1541_v36 = vpop.f32.mrf.mxu2 }
 0x23f   : > { %v1542_v22 = vadd.f32 %v4950_v44, %v1541_v36 }
 0x240   : > { %3810 = vmatmul.msk.bf16.gmra.mxu3 %vm590_vm0, %v4394_v39 }
 0x241   : > { %v1594_v7 = vmax.f32 %v1542_v22, 0.0  ;;  %v3947_v22 = vld [vmem:[%s6750_s9 + $0x38] sm:$0xff] }
 0x242   : > { %2671 = vmatpush.bf16.msrb.mxu0 %v3947_v22  ;;  %v5139_v53 = vpop.f32.mrf.mxu3 }
 0x243   : > { %v5102_v4 = vadd.f32 %v1594_v7, %v746_v50  ;;  %v3953_v50 = vld [vmem:[%s6752_s11 + $0x18] sm:$0xff] }
 0x244   : > { %3305 = vmatpush.bf16.msrb.mxu3 %v3953_v50 }
 0x245   : > { %6805 = vst [vmem:[#allocation34_spill] sm:$0xff] %v5102_v4 }
 0x246   : > { %v5104_v52 = vpop.f32.mrf.mxu2  ;;  %2672 = vmatpush.bf16.msrb.mxu0 %v3946_v8 }
 0x247   : > { %6806 = vst [vmem:[#allocation35_spill] sm:$0xff] %v5104_v52 }
 0x24b   : > { %3800 = vmatmul.msk.bf16.gmra.mxu2 %vm590_vm0, %v4393_v18 }
 0x24e   : > { %v1546_v23 = vpop.f32.mrf.mxu2 }
 0x24f   : > { %v1547_v51 = vadd.f32 %v4950_v44, %v1546_v23 }
 0x250   : > { %3811 = vmatmul.msk.bf16.gmra.mxu3 %vm590_vm0, %v4396_v1  ;;  %v4398_v1 = vld [vmem:[%s4512_s21 + $0x78] sm:$0xff] }
 0x251   : > { %v1596_v29 = vmax.f32 %v1547_v51, 0.0  ;;  %v752_v51 = vmax.f32 %v709_v20, 0.0 }
 0x253   : > { %v5114_v47 = vadd.f32 %v1596_v29, %v748_v13  ;;  %v4397_v13 = vld [vmem:[%s4512_s21 + $0x70] sm:$0xff] }
 0x255   : > { %6808 = vst [vmem:[#allocation37_spill] sm:$0xff] %v5114_v47 }
 0x256   : > { %v5116_v38 = vpop.f32.mrf.mxu2 }
 0x257   : > { %6809 = vst [vmem:[#allocation38_spill] sm:$0xff] %v5116_v38 }
 0x25b   : > { %3801 = vmatmul.msk.bf16.gmra.mxu2 %vm590_vm0, %v4395_v30  ;;  %v5148_v30 = vpop.f32.mrf.mxu3 }
 0x25e   : > { %v1551_v35 = vpop.f32.mrf.mxu2 }
 0x25f   : > { %v1552_v12 = vadd.f32 %v4950_v44, %v1551_v35 }
 0x260   : > { %3812 = vmatmul.msk.bf16.gmra.mxu3 %vm590_vm0, %v4397_v13 }
 0x261   : > { %v1598_v61 = vmax.f32 %v1552_v12, 0.0 }
 0x263   : > { %v5124_v36 = vadd.f32 %v1598_v61, %v750_v17  ;;  %v5155_v17 = vpop.f32.mrf.mxu3  ;;  %v754_v61 = vmax.f32 %v714_v37, 0.0  ;;  %v3952_v37 = vld [vmem:[%s6752_s11 + $0x10] sm:$0xff] }
 0x264   : > { %3306 = vmatpush.bf16.msrb.mxu3 %v3952_v37 }
 0x265   : > { %6810 = vst [vmem:[#allocation39_spill] sm:$0xff] %v5124_v36 }
 0x266   : > { %v5135_v7 = vpop.f32.mrf.mxu2 }
 0x267   : > { %6811 = vst [vmem:[#allocation40_spill] sm:$0xff] %v5135_v7 }
 0x26b   : > { %v5164_v20 = vpop.f32.mrf.mxu3 }
 0x26e   : > { %v1556_v18 = vpop.f32.mrf.mxu2 }
 0x26f   : > { %v1557_v23 = vadd.f32 %v4950_v44, %v1556_v18 }
 0x270   : > { %3813 = vmatmul.msk.bf16.gmra.mxu3 %vm590_vm0, %v4398_v1  ;;  %v724_v1 = vadd.f32 %v4944_v59, %v4702_v26  ;;  %v3944_v26 = vld [vmem:[%s6750_s9 + $0x20] sm:$0xff] }
 0x271   : > { %v1600_v39 = vmax.f32 %v1557_v23, 0.0  ;;  %v5203_v59 = vld [vmem:[%s6749_s8] ss:$0 sm:$0xff] }
 0x273   : > { %v5144_v29 = vadd.f32 %v1600_v39, %v752_v51  ;;  %v5168_v23 = vpop.f32.mrf.mxu3  ;;  %v756_v51 = vmax.f32 %v719_v33, 0.0 }
 0x275   : > { %6812 = vst [vmem:[#allocation41_spill] sm:$0xff] %v5144_v29 }
 0x276   : > { %v5146_v32 = vpop.f32.mrf.mxu2 }
 0x277   : > { %6813 = vst [vmem:[#allocation42_spill] sm:$0xff] %v5146_v32 }
 0x27e   : > { %v1561_v35 = vpop.f32.mrf.mxu2 }
 0x27f   : > { %v1562_v12 = vadd.f32 %v4950_v44, %v1561_v35  ;;  %v3945_v35 = vld [vmem:[%s6750_s9 + $0x28] sm:$0xff] }
 0x280   : > { %2673 = vmatpush.bf16.msrb.mxu0 %v3945_v35 }
 0x281   : > { %v1602_v50 = vmax.f32 %v1562_v12, 0.0  ;;  %v5181_v12 = vpop.f32.mrf.mxu3 }
 0x283   : > { %v5160_v22 = vadd.f32 %v1602_v50, %v754_v61 }
 0x284   : > { %2674 = vmatpush.bf16.msrb.mxu0 %v3944_v26 }
 0x285   : > { %6814 = vst [vmem:[#allocation43_spill] sm:$0xff] %v5160_v22 }
 0x286   : > { %v5162_v27 = vpop.f32.mrf.mxu2 }
 0x287   : > { %6815 = vst [vmem:[#allocation44_spill] sm:$0xff] %v5162_v27 }
 0x289   : > { %v5185_v50 = vpop.f32.mrf.mxu3 }
 0x28e   : > { %v1566_v18 = vpop.f32.mrf.mxu2 }
 0x28f   : > { %v1567_v13 = vadd.f32 %v4950_v44, %v1566_v18  ;;  %v758_v18 = vmax.f32 %v724_v1, 0.0 }
 0x291   : > { %v1604_v39 = vmax.f32 %v1567_v13, 0.0  ;;  %v5195_v35 = vpop.f32.mrf.mxu3 }
 0x293   : > { %v5171_v8 = vadd.f32 %v1604_v39, %v756_v51  ;;  %v3948_v39 = vld [vmem:[%s6750_s9 + $0x40] sm:$0xff] }
 0x294   : > { %2767 = vmatpush.bf16.msrb.mxu1 %v3948_v39 }
 0x295   : > { %6816 = vst [vmem:[#allocation45_spill] sm:$0xff] %v5171_v8 }
 0x296   : > { %v5179_v57 = vpop.f32.mrf.mxu2 }
 0x297   : > { %6817 = vst [vmem:[#allocation46_spill] sm:$0xff] %v5179_v57 }
 0x299   : > { %v5205_v1 = vpop.f32.mrf.mxu3 }
 0x29e   : > { %v1571_v61 = vpop.f32.mrf.mxu2 }
 0x29f   : > { %v1572_v33 = vadd.f32 %v4950_v44, %v1571_v61 }
 0x2a1   : > { %v1606_v13 = vmax.f32 %v1572_v33, 0.0 }
 0x2a3   : > { %v5188_v51 = vadd.f32 %v1606_v13, %v758_v18  ;;  %v5210_v13 = vpop.f32.mrf.mxu3 }
 0x2a5   : > { %6818 = vst [vmem:[#allocation47_spill] sm:$0xff] %v5188_v51 }
 0x2a6   : > { %v5193_v37 = vpop.f32.mrf.mxu2 }
 0x2a7   : > { %6819 = vst [vmem:[#allocation48_spill] sm:$0xff] %v5193_v37 }
 0x2ab   : > { %v5219_v43 = vpop.f32.mrf.mxu3 }
 0x2ae   : > { %v1653_v44 = vpop.f32.mrf.mxu2 }
 0x2af   : > { %v1654_v61 = vadd.f32 %v5203_v59, %v1653_v44 }
 0x2b1   : > { %v5208_v33 = vmax.f32 %v1654_v61, 0.0 }
 0x2b3   : > { %v1894_v26 = vrot.slane %v5208_v33, 7  ;;  %v6755_v6 = vrot.slane %v5208_v33, 6  ;;  %v1959_v19 = vrot.slane %v5208_v33, 1  ;;  %v5240_v31 = vpop.f32.mrf.mxu3 }
 0x2b5   : > { %v1958_v61 = vsel %vm949_vm1, 0.0, %v1894_v26 }
 0x2b6   : > { %v1655_v18 = vpop.f32.mrf.mxu2 }
 0x2b7   : > { %v1656_v39 = vadd.f32 %v5203_v59, %v1655_v18 }
 0x2b9   : > { %v1734_v51 = vmax.f32 %v1656_v39, 0.0 }
 0x2bb   : > { %v4142_v40 = vpack.i.bf16 %v1734_v51, %v5208_v33  ;;  %v1895_v37 = vrot.slane %v1734_v51, 7  ;;  %v1799_v8 = vrot.slane %v1734_v51, 6  ;;  %v2026_v27 = vrot.slane %v1734_v51, 2 }
 0x2bc   : > { %v1960_v29 = vrot.slane %v1734_v51, 1 }
 0x2bd   : > { %4143 = vrot.lane.b32.xlu0 %v4142_v40, %s4414_s18  ;;  %v1896_v44 = vsel %vm949_vm1, %v1894_v26, %v1895_v37  ;;  %v5224_v18 = vsel %vm1797_vm5, %v6755_v6, %v1799_v8  ;;  %v3951_v26 = vld [vmem:[%s6752_s11 + $0x8] sm:$0xff] }
 0x2be   : > { %v1658_v57 = vpop.f32.mrf.mxu2  ;;  %v4137_v22 = vpack.i.bf16 %v1896_v44, %v1958_v61  ;;  %v3943_v44 = vld [vmem:[%s6750_s9 + $0x18] sm:$0xff]  ;;  %v2025_v61 = vrot.slane %v5208_v33, 2  ;;  %3307 = vmatpush.bf16.msrb.mxu3 %v3951_v26  ;;  %v1961_v32 = vsel %vm1046_vm2, %v1959_v19, %v1960_v29 }
 0x2bf   : > { %v1659_v39 = vadd.f32 %v5203_v59, %v1658_v57  ;;  %2675 = vmatpush.bf16.msrb.mxu0 %v3943_v44 }
 0x2c0   : > { %4138 = vrot.lane.b32.xlu2 %v4137_v22, %s4413_s17  ;;  %v2027_v51 = vsel %vm2024_vm6, %v2025_v61, %v2026_v27  ;;  %v5263_v61 = vpop.f32.mrf.mxu3 }
 0x2c1   : > { %v1735_v40 = vmax.f32 %v1659_v39, 0.0 }
 0x2c3   : > { %v2028_v6 = vrot.slane %v1735_v40, 2  ;;  %v1962_v57 = vrot.slane %v1735_v40, 1  ;;  %v1801_v22 = vrot.slane %v1735_v40, 6  ;;  %v1897_v19 = vrot.slane %v1735_v40, 7 }
 0x2c5   : > { %v2029_v39 = vsel %vm2024_vm6, %v2026_v27, %v2028_v6  ;;  %v1963_v36 = vsel %vm1046_vm2, %v1960_v29, %v1962_v57  ;;  %v5243_v4 = vsel %vm1797_vm5, %v1799_v8, %v1801_v22  ;;  %v1674_v29 = vadd.f32 %v5203_v59, %v5139_v53 }
 0x2c6   : > { %v1660_v7 = vpop.f32.mrf.mxu2  ;;  %v2508_v47 = vpack.c.bf16 %v2029_v39, %v2027_v51  ;;  %v4147_v38 = vpack.i.bf16 %v1963_v36, %v1961_v32  ;;  %v1679_v8 = vadd.f32 %v5203_v59, %v5155_v17 }
 0x2c7   : > { %v1661_v26 = vadd.f32 %v5203_v59, %v1660_v7  ;;  %v1676_v7 = vadd.f32 %v5203_v59, %v5148_v30  ;;  %v5266_v51 = vmax.f32 %v1674_v29, 0.0  ;;  %v1681_v29 = vadd.f32 %v5203_v59, %v5164_v20 }
 0x2c8   : > { %3854 = vmatmul.msk.bf16.vlgmr.msrb.gmra.mxu1 %vm1305_vm3, %v2508_v47  ;;  %4148 = vrot.lane.b32.xlu1 %v4147_v38, %s4415_s15  ;;  %v1898_v47 = vsel %vm949_vm1, %v1895_v37, %v1897_v19  ;;  %v5269_v39 = vmax.f32 %v1679_v8, 0.0  ;;  %v1684_v8 = vadd.f32 %v5203_v59, %v5168_v23  ;;  %v5303_v3 = vpop.f32.mrf.mxu3 }
 0x2c9   : > { %v5248_v27 = vmax.f32 %v1661_v26, 0.0  ;;  %v6820_v11 = vrot.slane %v5266_v51, 1 }
 0x2ca   : > { %v6830_v42 = vrot.slane %v5269_v39, 6 }
 0x2cb   : > { %v4157_v36 = vpack.i.bf16 %v5248_v27, %v1735_v40  ;;  %v6756_v32 = vrot.slane %v5248_v27, 7  ;;  %v1803_v40 = vrot.slane %v5248_v27, 6  ;;  %v2030_v37 = vrot.slane %v5248_v27, 2 }
 0x2cd   : > { %4158 = vrot.lane.b32.xlu0 %v4157_v36, %s4414_s18  ;;  %v1900_v38 = vsel %vm949_vm1, %v1897_v19, %v6756_v32  ;;  %v5274_v26 = vsel %vm1797_vm5, %v1801_v22, %v1803_v40  ;;  %v1964_v19 = vrot.slane %v5248_v27, 1  ;;  %v5279_v36 = vmax.f32 %v1676_v7, 0.0 }
 0x2ce   : > { %v1663_v44 = vpop.f32.mrf.mxu2  ;;  %v4152_v53 = vpack.i.bf16 %v1900_v38, %v1898_v47  ;;  %v2031_v22 = vsel %vm2024_vm6, %v2028_v6, %v2030_v37  ;;  %v3942_v6 = vld [vmem:[%s6750_s9 + $0x10] sm:$0xff] }
 0x2cf   : > { %v1664_v17 = vadd.f32 %v5203_v59, %v1663_v44  ;;  %v1965_v23 = vsel %vm1046_vm2, %v1962_v57, %v1964_v19  ;;  %v2042_v44 = vrot.slane %v5279_v36, 2  ;;  %2676 = vmatpush.bf16.msrb.mxu0 %v3942_v6 }
 0x2d0   : > { %4153 = vrot.lane.b32.xlu2 %v4152_v53, %s4413_s17  ;;  %v1976_v53 = vrot.slane %v5279_v36, 1  ;;  %v5365_v24 = vpop.f32.mrf.mxu3 }
 0x2d1   : > { %v5276_v30 = vmax.f32 %v1664_v17, 0.0  ;;  %v1978_v17 = vrot.slane %v5269_v39, 1 }
 0x2d3   : > { %v6758_v47 = vrot.slane %v5276_v30, 2  ;;  %v6757_v38 = vrot.slane %v5276_v30, 1  ;;  %v1805_v7 = vrot.slane %v5276_v30, 6  ;;  %v5311_v57 = vsel %vm1046_vm2, %v1976_v53, %v1978_v17 }
 0x2d5   : > { %v2033_v20 = vsel %vm2024_vm6, %v2030_v37, %v6758_v47  ;;  %v1967_v32 = vsel %vm1046_vm2, %v1964_v19, %v6757_v38  ;;  %v5308_v37 = vsel %vm1046_vm2, %v6820_v11, %v1976_v53  ;;  %v6759_v38 = vrot.slane %v5266_v51, 2 }
 0x2d6   : > { %v1665_v52 = vpop.f32.mrf.mxu2  ;;  %v2510_v34 = vpack.c.bf16 %v2033_v20, %v2031_v22  ;;  %v4162_v5 = vpack.i.bf16 %v1967_v32, %v1965_v23  ;;  %v5317_v22 = vmax.f32 %v1684_v8, 0.0  ;;  %v6760_v11 = vrot.slane %v5269_v39, 2 }
 0x2d7   : > { %v1666_v19 = vadd.f32 %v5203_v59, %v1665_v52  ;;  %v5323_v32 = vsel %vm1797_vm5, %v1803_v40, %v1805_v7  ;;  %v5325_v53 = vmax.f32 %v1681_v29, 0.0  ;;  %v1901_v20 = vrot.slane %v5276_v30, 7 }
 0x2d8   : > { %3855 = vmatmul.msk.bf16.gmra.mxu1 %vm1305_vm3, %v2510_v34  ;;  %4163 = vrot.lane.b32.xlu1 %v4162_v5, %s4415_s15  ;;  %v5333_v8 = vsel %vm2024_vm6, %v6759_v38, %v2042_v44  ;;  %v1686_v34 = vadd.f32 %v5203_v59, %v5181_v12  ;;  %v1689_v5 = vadd.f32 %v5203_v59, %v5185_v50  ;;  %v1815_v29 = vrot.slane %v5279_v36, 6  ;;  %v5401_v49 = vpop.f32.mrf.mxu3 }
 0x2d9   : > { %v5327_v52 = vmax.f32 %v1666_v19, 0.0  ;;  %v5342_v40 = vsel %vm2024_vm6, %v2042_v44, %v6760_v11  ;;  %v6761_v19 = vrot.slane %v5266_v51, 6  ;;  %v1980_v12 = vrot.slane %v5325_v53, 1 }
 0x2da   : > { %v1982_v50 = vrot.slane %v5317_v22, 1  ;;  %v6821_v11 = vrot.slane %v5248_v27, 7  ;;  %v1821_v63 = vrot.slane %v5317_v22, 6 }
 0x2db   : > { %v4172_v23 = vpack.i.bf16 %v5327_v52, %v5276_v30  ;;  %v1903_v6 = vrot.slane %v5327_v52, 7  ;;  %v1807_v44 = vrot.slane %v5327_v52, 6  ;;  %v5363_v47 = vsel %vm1797_vm5, %v6761_v19, %v1815_v29 }
 0x2dc   : > { %v1902_v15 = vsel %vm949_vm1, %v6821_v11, %v1901_v20  ;;  %v5368_v38 = vsel %vm1046_vm2, %v1978_v17, %v1980_v12  ;;  %v6822_v19 = vrot.slane %v5269_v39, 6  ;;  %v5386_v17 = vmax.f32 %v1689_v5, 0.0 }
 0x2dd   : > { %4173 = vrot.lane.b32.xlu0 %v4172_v23, %s4414_s18  ;;  %v1904_v46 = vsel %vm949_vm1, %v1901_v20, %v1903_v6  ;;  %v5371_v23 = vsel %vm1046_vm2, %v1980_v12, %v1982_v50  ;;  %v5374_v27 = vsel %vm1797_vm5, %v1805_v7, %v1807_v44  ;;  %v2034_v7 = vrot.slane %v5327_v52, 2 }
 0x2de   : > { %v1668_v62 = vpop.f32.mrf.mxu2  ;;  %v4167_v54 = vpack.i.bf16 %v1904_v46, %v1902_v15  ;;  %v5382_v15 = vsel %vm1797_vm5, %v1815_v29, %v6822_v19  ;;  %v5384_v46 = vmax.f32 %v1686_v34, 0.0  ;;  %v1968_v58 = vrot.slane %v5327_v52, 1 }
 0x2df   : > { %v1669_v11 = vadd.f32 %v5203_v59, %v1668_v62  ;;  %v6823_v29 = vrot.slane %v5276_v30, 2  ;;  %v6825_v56 = vrot.slane %v5386_v17, 1 }
 0x2e0   : > { %4168 = vrot.lane.b32.xlu2 %v4167_v54, %s4413_s17  ;;  %v1984_v20 = vrot.slane %v5384_v46, 1  ;;  %v6824_v54 = vrot.slane %v5276_v30, 1 }
 0x2e1   : > { %v1739_v12 = vmax.f32 %v1669_v11, 0.0  ;;  %v2035_v34 = vsel %vm2024_vm6, %v6823_v29, %v2034_v7 }
 0x2e2   : > { %v1969_v19 = vsel %vm1046_vm2, %v6824_v54, %v1968_v58  ;;  %v5404_v55 = vsel %vm1046_vm2, %v1982_v50, %v1984_v20  ;;  %v5409_v29 = vsel %vm1046_vm2, %v1984_v20, %v6825_v56  ;;  %v2048_v54 = vrot.slane %v5317_v22, 2 }
 0x2e3   : > { %v2036_v62 = vrot.slane %v1739_v12, 2  ;;  %v1970_v16 = vrot.slane %v1739_v12, 1  ;;  %v1809_v48 = vrot.slane %v1739_v12, 6  ;;  %v1905_v50 = vrot.slane %v1739_v12, 7 }
 0x2e5   : > { %v2037_v5 = vsel %vm2024_vm6, %v2034_v7, %v2036_v62  ;;  %v1971_v11 = vsel %vm1046_vm2, %v1968_v58, %v1970_v16  ;;  %v5417_v58 = vsel %vm1797_vm5, %v1807_v44, %v1809_v48  ;;  %v1906_v44 = vsel %vm949_vm1, %v1903_v6, %v1905_v50 }
 0x2e6   : > { %v1670_v52 = vpop.f32.mrf.mxu2  ;;  %v2512_v14 = vpack.c.bf16 %v2037_v5, %v2035_v34  ;;  %v4177_v25 = vpack.i.bf16 %v1971_v11, %v1969_v19  ;;  %v2046_v5 = vrot.slane %v5325_v53, 2 }
 0x2e7   : > { %v1671_v7 = vadd.f32 %v5203_v59, %v1670_v52 }
 0x2e8   : > { %3856 = vmatmul.msk.bf16.gmra.mxu1 %vm1305_vm3, %v2512_v14  ;;  %4178 = vrot.lane.b32.xlu1 %v4177_v25, %s4415_s15  ;;  %v6826_v14 = vrot.slane %v5266_v51, 1 }
 0x2e9   : > { %v1740_v34 = vmax.f32 %v1671_v7, 0.0  ;;  %v3950_v7 = vld [vmem:[%s6752_s11] sm:$0xff] }
 0x2ea   : > { %3308 = vmatpush.bf16.msrb.mxu3 %v3950_v7  ;;  %v6828_v7 = vrot.slane %v5266_v51, 6 }
 0x2eb   : > { %v4187_v56 = vpack.i.bf16 %v1740_v34, %v1739_v12  ;;  %v1972_v20 = vrot.slane %v1740_v34, 1  ;;  %v1907_v19 = vrot.slane %v1740_v34, 7  ;;  %v3941_v12 = vld [vmem:[%s6750_s9 + $0x8] sm:$0xff]  ;;  %v2038_v6 = vrot.slane %v1740_v34, 2 }
 0x2ec   : > { %2677 = vmatpush.bf16.msrb.mxu0 %v3941_v12 }
 0x2ed   : > { %4188 = vrot.lane.b32.xlu0 %v4187_v56, %s4414_s18  ;;  %v1973_v11 = vsel %vm1046_vm2, %v1970_v16, %v1972_v20  ;;  %v1975_v25 = vsel %vm1046_vm2, %v1972_v20, %v6826_v14  ;;  %v1908_v52 = vsel %vm949_vm1, %v1905_v50, %v1907_v19  ;;  %v6827_v16 = vrot.slane %v5269_v39, 2 }
 0x2ee   : > { %v4192_v30 = vpack.i.bf16 %v1975_v25, %v1973_v11  ;;  %v4182_v56 = vpack.i.bf16 %v1908_v52, %v1906_v44  ;;  %v5440_v20 = vsel %vm2024_vm6, %v2046_v5, %v2048_v54  ;;  %v1811_v50 = vrot.slane %v1740_v34, 6  ;;  %v5448_v44 = vpop.f32.mrf.mxu3 }
 0x2ef   : > { %v5437_v0 = vsel %vm2024_vm6, %v6827_v16, %v2046_v5  ;;  %v1819_v14 = vrot.slane %v5325_v53, 6  ;;  %v1909_v11 = vrot.slane %v5266_v51, 7  ;;  %v1911_v25 = vrot.slane %v5279_v36, 7 }
 0x2f0   : > { %4193 = vrot.lane.b32.xlu1 %v4192_v30, %s4415_s15  ;;  %4183 = vrot.lane.b32.xlu2 %v4182_v56, %s4413_s17  ;;  %v4202_v5 = vpack.i.bf16 %v5279_v36, %v5266_v51  ;;  %v5455_v52 = vsel %vm1797_vm5, %v1809_v48, %v1811_v50  ;;  %v5460_v30 = vsel %vm1797_vm5, %v1811_v50, %v6828_v7  ;;  %v6829_v56 = vrot.slane %v5266_v51, 2 }
 0x2f1   : > { %v2039_v12 = vsel %vm2024_vm6, %v2036_v62, %v2038_v6  ;;  %v5469_v36 = vsel %vm1797_vm5, %v6830_v42, %v1819_v14  ;;  %v5472_v34 = vsel %vm1797_vm5, %v1819_v14, %v1821_v63  ;;  %v1910_v48 = vsel %vm949_vm1, %v1907_v19, %v1909_v11 }
 0x2f2   : > { %v2041_v16 = vsel %vm2024_vm6, %v2038_v6, %v6829_v56  ;;  %v1912_v9 = vsel %vm949_vm1, %v1909_v11, %v1911_v25  ;;  %v2050_v62 = vrot.slane %v5384_v46, 2  ;;  %v6762_v51 = vrot.slane %v5386_v17, 2 }
 0x2f3   : > { %v2514_v50 = vpack.c.bf16 %v2041_v16, %v2039_v12  ;;  %v4197_v6 = vpack.i.bf16 %v1912_v9, %v1910_v48  ;;  %v1913_v7 = vrot.slane %v5269_v39, 7  ;;  %v6831_v19 = vpack.i.bf16 %v5311_v57, %v5308_v37 }
 0x2f4   : > { %v5481_v42 = vsel %vm2024_vm6, %v2048_v54, %v2050_v62  ;;  %v1915_v14 = vrot.slane %v5325_v53, 7  ;;  %v5492_v11 = vsel %vm2024_vm6, %v2050_v62, %v6762_v51  ;;  %v1823_v9 = vrot.slane %v5384_v46, 6 }
 0x2f5   : > { %4203 = vrot.lane.b32.xlu0 %v4202_v5, %s4414_s18  ;;  %v1825_v5 = vrot.slane %v5386_v17, 6  ;;  %v4217_v54 = vpack.i.bf16 %v5325_v53, %v5269_v39  ;;  %v1691_v16 = vadd.f32 %v5203_v59, %v5195_v35  ;;  %v1694_v48 = vadd.f32 %v5203_v59, %v5205_v1 }
 0x2f6   : > { %v5501_v57 = vpop.f32.mrf.mxu3  ;;  %v5504_v12 = vsel %vm1797_vm5, %v1821_v63, %v1823_v9  ;;  %v1914_v62 = vsel %vm949_vm1, %v1911_v25, %v1913_v7  ;;  %v1916_v39 = vsel %vm949_vm1, %v1913_v7, %v1915_v14  ;;  %v1917_v53 = vrot.slane %v5317_v22, 7 }
 0x2f7   : > { %v5507_v56 = vsel %vm1797_vm5, %v1823_v9, %v1825_v5  ;;  %v1919_v63 = vrot.slane %v5384_v46, 7  ;;  %v6832_v35 = vpack.i.bf16 %v5371_v23, %v5368_v38  ;;  %v4232_v1 = vpack.i.bf16 %v5384_v46, %v5317_v22  ;;  %v3940_v22 = vld [vmem:[%s6750_s9] sm:$0xff] }
 0x2f8   : > { %3857 = vmatmul.msk.bf16.gmra.mxu1 %vm1305_vm3, %v2514_v50  ;;  %4208 = vrot.lane.b32.xlu1 %v6831_v19, %s4415_s15  ;;  %v4212_v50 = vpack.i.bf16 %v1916_v39, %v1914_v62  ;;  %v5520_v19 = vmax.f32 %v1694_v48, 0.0  ;;  %v1918_v25 = vsel %vm949_vm1, %v1915_v14, %v1917_v53  ;;  %v1696_v9 = vadd.f32 %v5203_v59, %v5210_v13 }
 0x2f9   : > { %4198 = vrot.lane.b32.xlu2 %v4197_v6, %s4413_s17  ;;  %v5518_v6 = vmax.f32 %v1691_v16, 0.0  ;;  %v1920_v7 = vsel %vm949_vm1, %v1917_v53, %v1919_v63  ;;  %v1921_v46 = vrot.slane %v5386_v17, 7  ;;  %2678 = vmatpush.bf16.msrb.mxu0 %v3940_v22  ;;  %v6833_v62 = vpack.c.bf16 %v5342_v40, %v5333_v8 }
 0x2fa   : > { %v1990_v38 = vrot.slane %v5520_v19, 1  ;;  %v4227_v48 = vpack.i.bf16 %v1920_v7, %v1918_v25  ;;  %v5545_v14 = vmax.f32 %v1696_v9, 0.0  ;;  %v6834_v39 = vpack.i.bf16 %v5409_v29, %v5404_v55 }
 0x2fb   : > { %v1988_v16 = vrot.slane %v5518_v6, 1  ;;  %v1923_v13 = vrot.slane %v5518_v6, 7  ;;  %v6835_v53 = vrot.slane %v5386_v17, 1  ;;  %v6763_v25 = vrot.slane %v5520_v19, 6 }
 0x2fc   : > { %v4247_v8 = vpack.i.bf16 %v5518_v6, %v5386_v17  ;;  %v1922_v40 = vsel %vm949_vm1, %v1919_v63, %v1921_v46  ;;  %v1701_v9 = vadd.f32 %v5203_v59, %v5240_v31  ;;  %v1992_v63 = vrot.slane %v5545_v14, 1 }
 0x2fd   : > { %4218 = vrot.lane.b32.xlu0 %v4217_v54, %s4414_s18  ;;  %v1699_v54 = vadd.f32 %v5203_v59, %v5219_v43  ;;  %v1924_v55 = vsel %vm949_vm1, %v1921_v46, %v1923_v13  ;;  %v1925_v22 = vrot.slane %v5520_v19, 7 }
 0x2fe   : > { %v5537_v23 = vpop.f32.mrf.mxu3  ;;  %v4242_v46 = vpack.i.bf16 %v1924_v55, %v1922_v40  ;;  %v1706_v55 = vadd.f32 %v5203_v59, %v5303_v3 }
 0x2ff   : > { %v5547_v43 = vmax.f32 %v1699_v54, 0.0  ;;  %v1704_v54 = vadd.f32 %v5203_v59, %v5263_v61  ;;  %v5593_v61 = vld [vmem:[%s4512_s21 + $0x8] sm:$0xff]  }
 0x300   : > { %4223 = vrot.lane.b32.xlu1 %v6832_v35, %s4415_s15  ;;  %v1991_v35 = vsel %vm1046_vm2, %v1988_v16, %v1990_v38 }
 0x301   : > { %4213 = vrot.lane.b32.xlu2 %v4212_v50, %s4413_s17  ;;  %v1989_v50 = vsel %vm1046_vm2, %v6835_v53, %v1988_v16  ;;  %v5588_v53 = vmax.f32 %v1701_v9, 0.0  ;;  %v5590_v31 = vmax.f32 %v1704_v54, 0.0  ;;  %v4262_v9 = vpack.i.bf16 %v5545_v14, %v5520_v19 }
 0x302   : > { %v4252_v16 = vpack.i.bf16 %v1991_v35, %v1989_v50  ;;  %v5608_v54 = vunpack.c.l.bf16 %v5593_v61  ;;  %v1929_v60 = vrot.slane %v5547_v43, 7 }
 0x303   : > { %v1931_v10 = vrot.slane %v5588_v53, 7 }
 0x304   : > { %v3076_v3 = vrot.slane %v5608_v54, 1 }
 0x305   : > { %4233 = vrot.lane.b32.xlu0 %v4232_v1, %s4414_s18  ;;  %v1827_v1 = vrot.slane %v5518_v6, 6 }
 0x307   : > { %v5569_v29 = vsel %vm1797_vm5, %v1825_v5, %v1827_v1  ;;  %v5574_v7 = vsel %vm1797_vm5, %v1827_v1, %v6763_v25  ;;  %v1927_v5 = vrot.slane %v5545_v14, 7  ;;  %v1993_v1 = vsel %vm1046_vm2, %v1990_v38, %v1992_v63 }
 0x308   : > { %3858 = vmatmul.msk.bf16.gmra.mxu1 %vm1305_vm3, %v6833_v62  ;;  %4238 = vrot.lane.b32.xlu1 %v6834_v39, %s4415_s15  ;;  %v442_v62 = vld [vmem:[%s4512_s21] sm:$0xff]   ;;  %v5586_v39 = vpop.f32.mrf.mxu3  ;;  %v1709_v38 = vadd.f32 %v5203_v59, %v5365_v24  ;;  %v1998_v25 = vrot.slane %v5590_v31, 1 }
 0x309   : > { %4228 = vrot.lane.b32.xlu2 %v4227_v48, %s4413_s17  ;;  %v1994_v48 = vrot.slane %v5547_v43, 1  ;;  %v2881_v50 = vunpack.c.l.bf16 %v442_v62  ;;  %v5595_v35 = vunpack.c.h.bf16 %v442_v62  ;;  %v1928_v40 = vsel %vm949_vm1, %v1925_v22, %v1927_v5 }
 0x30b   : > { %v1995_v37 = vsel %vm1046_vm2, %v1992_v63, %v1994_v48  ;;  %v6764_v63 = vrot.slane %v5595_v35, 7  ;;  %v3074_v51 = vrot.slane %v5595_v35, 1 }
 0x30c   : > { %v4267_v62 = vpack.i.bf16 %v1995_v37, %v1993_v1 }
 0x30d   : > { %4248 = vrot.lane.b32.xlu0 %v4247_v8, %s4414_s18  ;;  %v1926_v8 = vsel %vm949_vm1, %v1923_v13, %v1925_v22  ;;  %v3073_v13 = vrot.slane %v2881_v50, 1 }
 0x30e   : > { %v4257_v22 = vpack.i.bf16 %v1928_v40, %v1926_v8  ;;  %v3077_v8 = vsel %vm1046_vm2, %v3074_v51, %v3076_v3  ;;  %v5627_v40 = vmax.f32 %v1706_v55, 0.0  ;;  %v4277_v55 = vpack.i.bf16 %v5588_v53, %v5547_v43 }
 0x30f   : > { %v3075_v1 = vsel %vm1046_vm2, %v3073_v13, %v3074_v51  ;;  %v1932_v13 = vsel %vm949_vm1, %v1929_v60, %v1931_v10 }
 0x310   : > { %4253 = vrot.lane.b32.xlu1 %v4252_v16, %s4415_s15  ;;  %v2945_v16 = vrot.slane %v2881_v50, 7  ;;  %v1723_v51 = vpop.f32.mrf.mxu3 }
 0x311   : > { %4243 = vrot.lane.b32.xlu2 %v4242_v46, %s4413_s17  ;;  %v1996_v46 = vrot.slane %v5588_v53, 1 }
 0x312   : > { %v2947_v2 = vsel %vm949_vm1, %v2945_v16, %v6764_v63  ;;  %v3040_v24 = vsel %vm949_vm1, -inf, %v2945_v16  ;;  %v5631_v63 = vmax.f32 %v1709_v38, 0.0 }
 0x313   : > { %v3041_v28 = vmax.f32 %v3040_v24, %v2881_v50  ;;  %v3042_v37 = vmax.f32 %v2947_v2, %v5595_v35  ;;  %v1711_v50 = vadd.f32 %v5203_v59, %v5401_v49  ;;  %v6836_v2 = vpack.c.bf16 %v5440_v20, %v5437_v0 }
 0x314   : > { %v1930_v49 = vsel %vm949_vm1, %v1927_v5, %v1929_v60  ;;  %v2000_v0 = vrot.slane %v5627_v40, 1  ;;  %v1831_v20 = vrot.slane %v5545_v14, 6  ;;  %v1935_v24 = vrot.slane %v5627_v40, 7 }
 0x315   : > { %4263 = vrot.lane.b32.xlu0 %v4262_v9, %s4414_s18  ;;  %v3169_v16 = vmax.f32 %v3041_v28, %v3075_v1  ;;  %v3170_v45 = vmax.f32 %v3042_v37, %v3077_v8  ;;  %v1997_v9 = vsel %vm1046_vm2, %v1994_v48, %v1996_v46  ;;  %v1999_v28 = vsel %vm1046_vm2, %v1996_v46, %v1998_v25 }
 0x316   : > { %v6765_v48 = vrot.slane %v5547_v43, 6  ;;  %v1716_v60 = vadd.f32 %v5203_v59, %v5501_v57  ;;  %v4282_v5 = vpack.i.bf16 %v1999_v28, %v1997_v9  ;;  %v6837_v46 = vrot.slane %v5520_v19, 6  ;;  %v5674_v9 = vld [vmem:[%s4512_s21 + $0x10] sm:$0xff]  }
 0x317   : > { %v3201_v38 = vpack.c.bf16 %v3170_v45, %v3169_v16  ;;  %v1714_v45 = vadd.f32 %v5203_v59, %v5448_v44  ;;  %v4272_v1 = vpack.i.bf16 %v1932_v13, %v1930_v49  ;;  %v2001_v16 = vsel %vm1046_vm2, %v1998_v25, %v2000_v0 }
 0x318   : > { %3859 = vmatmul.msk.bf16.gmra.mxu1 %vm1305_vm3, %v6836_v2  ;;  %4268 = vrot.lane.b32.xlu1 %v4267_v62, %s4415_s15  ;;  %v2002_v62 = vrot.slane %v5631_v63, 1  ;;  %v5661_v37 = vsel %vm1797_vm5, %v6837_v46, %v1831_v20  ;;  %v5667_v8 = vsel %vm1797_vm5, %v1831_v20, %v6765_v48  ;;  %v5677_v28 = vunpack.c.h.bf16 %v5593_v61 }
 0x319   : > { %4258 = vrot.lane.b32.xlu2 %v4257_v22, %s4413_s17  ;;  %v1933_v22 = vrot.slane %v5590_v31, 7  ;;  %3886 = vmatmul.msk.bf16.vlgmr.msrb.gmra.mxu3 %vm590_vm0, %v3201_v38  ;;  %v5681_v38 = vmax.f32 %v1714_v45, 0.0  ;;  %v5683_v49 = vmax.f32 %v1716_v60, 0.0  ;;  %v5687_v25 = vunpack.c.l.bf16 %v5674_v9 }
 0x31a   : > { %v2003_v44 = vsel %vm1046_vm2, %v2000_v0, %v2002_v62  ;;  %v4292_v61 = vpack.i.bf16 %v5627_v40, %v5590_v31  ;;  %v2948_v13 = vrot.slane %v5608_v54, 7  ;;  %v6766_v45 = vrot.slane %v5677_v28, 7 }
 0x31b   : > { %v1934_v57 = vsel %vm949_vm1, %v1931_v10, %v1933_v22  ;;  %v1936_v2 = vsel %vm949_vm1, %v1933_v22, %v1935_v24  ;;  %v1719_v10 = vadd.f32 %v5203_v59, %v5537_v23  ;;  %v4297_v0 = vpack.i.bf16 %v2003_v44, %v2001_v16  ;;  %v1725_v22 = vpop.f32.mrf.mxu3 }
 0x31c   : > { %v4287_v20 = vpack.i.bf16 %v1936_v2, %v1934_v57  ;;  %v3078_v60 = vrot.slane %v5677_v28, 1  ;;  %v6838_v46 = vrot.slane %v5595_v35, 7  ;;  %v6767_v48 = vrot.slane %v5687_v25, 1 }
 0x31d   : > { %4278 = vrot.lane.b32.xlu0 %v4277_v55, %s4414_s18  ;;  %v5679_v55 = vmax.f32 %v1711_v50, 0.0  ;;  %v1721_v50 = vadd.f32 %v5203_v59, %v5586_v39  ;;  %v2951_v16 = vsel %vm949_vm1, %v2948_v13, %v6766_v45  ;;  %v1724_v35 = vadd.f32 %v5203_v59, %v1723_v51 }
 0x31e   : > { %v2006_v57 = vrot.slane %v5681_v38, 1  ;;  %v3044_v2 = vmax.f32 %v2951_v16, %v5677_v28  ;;  %v5720_v23 = vmax.f32 %v1719_v10, 0.0  ;;  %v6840_v16 = vpack.c.bf16 %v5492_v11, %v5481_v42 }
 0x31f   : > { %v2004_v39 = vrot.slane %v5679_v55, 1  ;;  %v5729_v45 = vmax.f32 %v1721_v50, 0.0  ;;  %v4307_v10 = vpack.i.bf16 %v5679_v55, %v5631_v63  ;;  %v5745_v50 = vmax.f32 %v1724_v35, 0.0 }
 0x320   : > { %4283 = vrot.lane.b32.xlu1 %v4282_v5, %s4415_s15  ;;  %v2054_v5 = vrot.slane %v5518_v6, 2  ;;  %v3079_v6 = vsel %vm1046_vm2, %v3076_v3, %v3078_v60  ;;  %v6839_v3 = vrot.slane %v5386_v17, 2  ;;  %v6841_v17 = vrot.slane %v5520_v19, 2 }
 0x321   : > { %4273 = vrot.lane.b32.xlu2 %v4272_v1, %s4413_s17  ;;  %v2949_v1 = vsel %vm949_vm1, %v6838_v46, %v2948_v13  ;;  %v3081_v46 = vsel %vm1046_vm2, %v3078_v60, %v6767_v48  ;;  %v1937_v13 = vrot.slane %v5631_v63, 7  ;;  %v2005_v60 = vsel %vm1046_vm2, %v2002_v62, %v2004_v39 }
 0x322   : > { %v3043_v44 = vmax.f32 %v2949_v1, %v5608_v54  ;;  %v1939_v54 = vrot.slane %v5679_v55, 7  ;;  %v3172_v51 = vmax.f32 %v3044_v2, %v3081_v46  ;;  %v2007_v42 = vsel %vm1046_vm2, %v2004_v39, %v2006_v57 }
 0x323   : > { %v2008_v11 = vrot.slane %v5683_v49, 1  ;;  %v2010_v62 = vrot.slane %v5720_v23, 1  ;;  %v1835_v46 = vrot.slane %v5588_v53, 6  ;;  %v1941_v35 = vrot.slane %v5681_v38, 7 }
 0x324   : > { %v3171_v1 = vmax.f32 %v3043_v44, %v3079_v6  ;;  %v5742_v44 = vsel %vm2024_vm6, %v2054_v5, %v6841_v17  ;;  %v1940_v2 = vsel %vm949_vm1, %v1937_v13, %v1939_v54  ;;  %v1943_v39 = vrot.slane %v5683_v49, 7 }
 0x325   : > { %4293 = vrot.lane.b32.xlu0 %v4292_v61, %s4414_s18  ;;  %v5727_v61 = vsel %vm2024_vm6, %v6839_v3, %v2054_v5  ;;  %v4139_v3 = vpop.permute.xlu2 %4138  ;;  %v6842_v5 = vrot.slane %v5208_v33, 6  ;;  %v6843_v17 = vrot.slane %v5547_v43, 6  ;;  %v2009_v48 = vsel %vm1046_vm2, %v2006_v57, %v2008_v11 }
 0x326   : > { %v3202_v6 = vpack.c.bf16 %v3172_v51, %v3171_v1  ;;  %v6768_v1 = vrot.slane %v5590_v31, 6  ;;  %v2522_v51 = vpack.c.bf16 %v5742_v44, %v5727_v61  ;;  %v2011_v61 = vsel %vm1046_vm2, %v2008_v11, %v2010_v62 }
 0x327   : > { %v5766_v33 = vsel %vm1797_vm5, %v6843_v17, %v1835_v46  ;;  %v1942_v17 = vsel %vm949_vm1, %v1939_v54, %v1941_v35  ;;  %v4337_v41 = vpack.i.bf16 %v5729_v45, %v5720_v23  ;;  %v6848_v21 = vrot.slane %v5687_v25, 1 }
 0x328   : > { %3860 = vmatmul.msk.bf16.gmra.mxu1 %vm1305_vm3, %v6840_v16  ;;  %4298 = vrot.lane.b32.xlu1 %v4297_v0, %s4415_s15  ;;  %v1938_v0 = vsel %vm949_vm1, %v1935_v24, %v1937_v13  ;;  %v4312_v24 = vpack.i.bf16 %v2007_v42, %v2005_v60  ;;  %v1726_v13 = vadd.f32 %v5203_v59, %v1725_v22  ;;  %v1728_v16 = vpop.f32.mrf.mxu3  ;;  %v6769_v60 = vrot.slane %v5745_v50, 1 }
 0x329   : > { %4288 = vrot.lane.b32.xlu2 %v4287_v20, %s4413_s17  ;;  %v1893_v20 = vsel %vm1797_vm5, 0.0, %v6842_v5  ;;  %3887 = vmatmul.msk.bf16.gmra.mxu3 %vm590_vm0, %v3202_v6  ;;  %6844 = vst [vmem:[#allocation49_spill] sm:$0xff] %v5766_v33  ;;  %v4302_v5 = vpack.i.bf16 %v1940_v2, %v1938_v0  ;;  %v2012_v6 = vrot.slane %v5729_v45, 1  ;;  %v4141_v42 = vunpack.i.h.bf16 %v4139_v3 }
 0x32a   : > { %v4140_v22 = vunpack.i.l.bf16 %v4139_v3  ;;  %v5776_v44 = vsel %vm1797_vm5, %v1835_v46, %v6768_v1  ;;  %v1729_v57 = vadd.f32 %v5203_v59, %v1728_v16  ;;  %v1945_v0 = vrot.slane %v5720_v23, 7  ;;  %v5800_v16 = vld [vmem:[%s4512_s21 + $0x18] sm:$0xff]  }
 0x32b   : > { %6845 = vst [vmem:[#allocation50_spill] sm:$0xff] %v5776_v44  ;;  %v4322_v2 = vpack.i.bf16 %v5683_v49, %v5681_v38  ;;  %v5785_v3 = vmax.f32 %v1726_v13, 0.0  ;;  %v5791_v54 = vsel %vm1046_vm2, %v2010_v62, %v2012_v6  ;;  %v5803_v13 = vunpack.c.h.bf16 %v5674_v9 }
 0x32c   : > { %v2411_v11 = vsel %vm1305_vm3, %v1893_v20, %v4140_v22  ;;  %v4327_v46 = vpack.i.bf16 %v2011_v61, %v2009_v48  ;;  %v2952_v20 = vrot.slane %v5687_v25, 7 }
 0x32d   : > { %4308 = vrot.lane.b32.xlu0 %v4307_v10, %s4414_s18  ;;  %v1944_v10 = vsel %vm949_vm1, %v1941_v35, %v1943_v39  ;;  %v5796_v35 = vsel %vm1046_vm2, %v2012_v6, %v6769_v60  ;;  %v5810_v6 = vmax.f32 %v1729_v57, 0.0  ;;  %v1946_v60 = vsel %vm949_vm1, %v1943_v39, %v1945_v0 }
 0x32e   : > { %v4317_v62 = vpack.i.bf16 %v1944_v10, %v1942_v17  ;;  %v4342_v9 = vpack.i.bf16 %v5796_v35, %v5791_v54  ;;  %v3082_v48 = vrot.slane %v5803_v13, 1  ;;  %v2016_v39 = vrot.slane %v5785_v3, 1 }
 0x32f   : > { %v4144_v1 = vpop.permute.xlu0 %4143  ;;  %v6847_v54 = vrot.slane %v5677_v28, 7  ;;  %v2066_v28 = vrot.slane %v5627_v40, 2 }
 0x330   : > { %4313 = vrot.lane.b32.xlu1 %v4312_v24, %s4415_s15  ;;  %v5814_v24 = vunpack.c.l.bf16 %v5800_v16  ;;  %v4146_v10 = vunpack.i.h.bf16 %v4144_v1  ;;  %v1730_v57 = vpop.f32.mrf.mxu3 }
 0x331   : > { %4303 = vrot.lane.b32.xlu2 %v4302_v5, %s4413_s17  ;;  %v2412_v5 = vsel %vm1305_vm3, %v5224_v18, %v4141_v42  ;;  %v6771_v18 = vrot.slane %v5803_v13, 7  ;;  %v6846_v42 = vrot.slane %v5729_v45, 7  ;;  %v2953_v35 = vsel %vm949_vm1, %v6847_v54, %v2952_v20 }
 0x332   : > { %v3045_v44 = vmax.f32 %v2953_v35, %v5687_v25  ;;  %v6849_v17 = vrot.slane %v5814_v24, 1  ;;  %v1839_v54 = vrot.slane %v5627_v40, 6  ;;  %v1731_v25 = vadd.f32 %v5203_v59, %v1730_v57 }
 0x333   : > { %v1948_v22 = vsel %vm949_vm1, %v1945_v0, %v6846_v42  ;;  %v3083_v0 = vsel %vm1046_vm2, %v6848_v21, %v3082_v48  ;;  %v4145_v42 = vunpack.i.l.bf16 %v4144_v1  ;;  %v6772_v21 = vrot.slane %v5631_v63, 6 }
 0x334   : > { %v3085_v33 = vsel %vm1046_vm2, %v3082_v48, %v6849_v17  ;;  %v2018_v1 = vrot.slane %v5810_v6, 1  ;;  %v3173_v35 = vmax.f32 %v3045_v44, %v3083_v0  ;;  %v5851_v17 = vpop.permute.xlu2 %4153  ;;  %v1949_v57 = vrot.slane %v5745_v50, 7 }
 0x335   : > { %4323 = vrot.lane.b32.xlu0 %v4322_v2, %s4414_s18  ;;  %v2955_v2 = vsel %vm949_vm1, %v2952_v20, %v6771_v18  ;;  %v6770_v20 = vrot.slane %v5631_v63, 2  ;;  %v1951_v0 = vrot.slane %v5785_v3, 7 }
 0x336   : > { %v3046_v61 = vmax.f32 %v2955_v2, %v5803_v13 }
 0x337   : > { %v5861_v40 = vsel %vm2024_vm6, %v2066_v28, %v6770_v20 }
 0x338   : > { %3861 = vmatmul.msk.bf16.gmra.mxu1 %vm1305_vm3, %v2522_v51  ;;  %4328 = vrot.lane.b32.xlu1 %v4327_v46, %s4415_s15  ;;  %v3174_v48 = vmax.f32 %v3046_v61, %v3085_v33  ;;  %v6850_v46 = vrot.slane %v5590_v31, 2  ;;  %v5871_v33 = vsel %vm1797_vm5, %v1839_v54, %v6772_v21  ;;  %v5882_v21 = vmax.f32 %v1731_v25, 0.0 }
 0x339   : > { %4318 = vrot.lane.b32.xlu2 %v4317_v62, %s4413_s17  ;;  %v6851_v62 = vrot.slane %v5590_v31, 6  ;;  %v1952_v25 = vsel %vm949_vm1, %v1949_v57, %v1951_v0 }
 0x33a   : > { %v4149_v51 = vpop.permute.xlu1 %4148  ;;  %v5856_v2 = vsel %vm2024_vm6, %v6850_v46, %v2066_v28  ;;  %v2443_v46 = vsel %vm590_vm0, %v2411_v11, %v4145_v42  ;;  %v2444_v28 = vsel %vm590_vm0, %v2412_v5, %v4146_v10  ;;  %v3203_v20 = vpack.c.bf16 %v3174_v48, %v3173_v35 }
 0x33b   : > { %v5866_v59 = vsel %vm1797_vm5, %v6851_v62, %v1839_v54  ;;  %v4151_v44 = vunpack.i.h.bf16 %v4149_v51  ;;  %v4150_v61 = vunpack.i.l.bf16 %v4149_v51  ;;  %v4332_v54 = vpack.i.bf16 %v1948_v22, %v1946_v60 }
 0x33c   : > { %6852 = vst [vmem:[#allocation51_spill] sm:$0xff] %v5866_v59  ;;  %3888 = vmatmul.msk.bf16.gmra.mxu3 %vm590_vm0, %v3203_v20  ;;  %v6853_v11 = vrot.slane %v5545_v14, 2  ;;  %v6854_v5 = vrot.slane %v5520_v19, 2  ;;  %v6855_v42 = vrot.slane %v5547_v43, 2  ;;  %v4156_v22 = vunpack.i.h.bf16 %v5851_v17 }
 0x33d   : > { %v2475_v18 = vsel %vm1438_vm4, %v2443_v46, %v4150_v61  ;;  %v2476_v59 = vsel %vm1438_vm4, %v2444_v28, %v4151_v44  ;;  %4338 = vrot.lane.b32.xlu0 %v4337_v41, %s4414_s18  ;;  %v6857_v41 = vrot.slane %v5745_v50, 1  ;;  %v6858_v19 = vrot.slane %v5729_v45, 7  ;;  %v5912_v44 = vpop.permute.xlu2 %4168 }
 0x33e   : > { %v2507_v51 = vpack.c.bf16 %v2476_v59, %v2475_v18  ;;  %v2059_v10 = vsel %vm2024_vm6, %v6854_v5, %v6853_v11  ;;  %v6856_v35 = vmov %v6853_v11  ;;  %v2019_v18 = vsel %vm1046_vm2, %v2016_v39, %v2018_v1 }
 0x33f   : > { %v2061_v48 = vsel %vm2024_vm6, %v6856_v35, %v6855_v42  ;;  %v2017_v60 = vsel %vm1046_vm2, %v6857_v41, %v2016_v39  ;;  %v1950_v20 = vsel %vm949_vm1, %v6858_v19, %v1949_v57  ;;  %v5906_v14 = vunpack.c.h.bf16 %v5800_v16  ;;  %v450_v39 = vld [vmem:[%s4512_s21 + $0x20] sm:$0xff]   ;;  %v4159_v5 = vpop.permute.xlu0 %4158 }
 0x340   : > { %4343 = vrot.lane.b32.xlu1 %v4342_v9, %s4415_s15  ;;  %2679 = vmatmul.bf16.vlgmr.msrb.gmra.mxu0 %v2507_v51  ;;  %v4352_v59 = vpack.i.bf16 %v5785_v3, %v5745_v50  ;;  %v2524_v61 = vpack.c.bf16 %v2061_v48, %v2059_v10  ;;  %v2020_v9 = vrot.slane %v5882_v21, 1  ;;  %v5915_v46 = vunpack.c.l.bf16 %v450_v39 }
 0x341   : > { %4333 = vrot.lane.b32.xlu2 %v4332_v54, %s4413_s17  ;;  %v2956_v28 = vrot.slane %v5814_v24, 7  ;;  %v4155_v57 = vunpack.i.l.bf16 %v5851_v17  ;;  %v4357_v51 = vpack.i.bf16 %v2019_v18, %v2017_v60  ;;  %v4347_v16 = vpack.i.bf16 %v1952_v25, %v1950_v20 }
 0x342   : > { %v2958_v11 = vrot.slane %v5906_v14, 7  ;;  %v2414_v54 = vsel %vm1305_vm3, %v5274_v26, %v4156_v22  ;;  %v6859_v42 = vrot.slane %v5803_v13, 7  ;;  %v3086_v35 = vrot.slane %v5906_v14, 1 }
 0x343   : > { %v3088_v48 = vrot.slane %v5915_v46, 1  ;;  %v1953_v17 = vrot.slane %v5810_v6, 7  ;;  %v1955_v41 = vrot.slane %v5882_v21, 7  ;;  %v2021_v13 = vsel %vm1046_vm2, %v2018_v1, %v2020_v9 }
 0x344   : > { %v2957_v10 = vsel %vm949_vm1, %v6859_v42, %v2956_v28  ;;  %v2959_v60 = vsel %vm949_vm1, %v2956_v28, %v2958_v11  ;;  %v6860_v22 = vrot.slane %v5814_v24, 1  ;;  %v4161_v25 = vunpack.i.h.bf16 %v4159_v5 }
 0x345   : > { %4353 = vrot.lane.b32.xlu0 %v4352_v59, %s4414_s18  ;;  %v3047_v26 = vmax.f32 %v2957_v10, %v5814_v24  ;;  %v3048_v18 = vmax.f32 %v2959_v60, %v5906_v14  ;;  %v3089_v20 = vsel %vm1046_vm2, %v3086_v35, %v3088_v48  ;;  %v4160_v59 = vunpack.i.l.bf16 %v4159_v5 }
 0x346   : > { %v3087_v19 = vsel %vm1046_vm2, %v6860_v22, %v3086_v35  ;;  %v2023_v42 = vsel %vm1046_vm2, %v2020_v9, 0.0  ;;  %v2070_v28 = vrot.slane %v5679_v55, 2  ;;  %v2072_v24 = vrot.slane %v5681_v38, 2 }
 0x347   : > { %v3175_v62 = vmax.f32 %v3047_v26, %v3087_v19  ;;  %v3176_v1 = vmax.f32 %v3048_v18, %v3089_v20  ;;  %v1843_v10 = vrot.slane %v5679_v55, 6  ;;  %v4367_v35 = vpack.i.bf16 %v5882_v21, %v5810_v6 }
 0x348   : > { %3862 = vmatmul.msk.bf16.gmra.mxu1 %vm1305_vm3, %v2524_v61  ;;  %4358 = vrot.lane.b32.xlu1 %v4357_v51, %s4415_s15  ;;  %v1954_v5 = vsel %vm949_vm1, %v1951_v0, %v1953_v17  ;;  %v1956_v9 = vsel %vm949_vm1, %v1953_v17, %v1955_v41  ;;  %v1845_v61 = vrot.slane %v5681_v38, 6  ;;  %v6861_v18 = vrot.slane %v5631_v63, 2 }
 0x349   : > { %4348 = vrot.lane.b32.xlu2 %v4347_v16, %s4413_s17  ;;  %v3204_v26 = vpack.c.bf16 %v3176_v1, %v3175_v62  ;;  %v5964_v55 = vsel %vm2024_vm6, %v2070_v28, %v2072_v24  ;;  %v6862_v0 = vrot.slane %v5631_v63, 6  ;;  %v2413_v17 = vsel %vm1305_vm3, %v5243_v4, %v4155_v57 }
 0x34a   : > { %v4164_v60 = vpop.permute.xlu1 %4163  ;;  %v5954_v51 = vpop.permute.xlu2 %4183  ;;  %v5959_v22 = vsel %vm2024_vm6, %v6861_v18, %v2070_v28  ;;  %v4372_v19 = vpack.i.bf16 %v2023_v42, %v2021_v13  ;;  %v2445_v20 = vsel %vm590_vm0, %v2413_v17, %v4160_v59  ;;  %v2446_v1 = vsel %vm590_vm0, %v2414_v54, %v4161_v25  ;;  %v452_v59 = vld [vmem:[%s4512_s21 + $0x28] sm:$0xff]  }
 0x34b   : > { %v5969_v16 = vsel %vm1797_vm5, %v6862_v0, %v1843_v10  ;;  %v4166_v41 = vunpack.i.h.bf16 %v4164_v60  ;;  %v4165_v62 = vunpack.i.l.bf16 %v4164_v60  ;;  %v2530_v28 = vpack.c.bf16 %v5964_v55, %v5959_v22 }
 0x34c   : > { %v5980_v63 = vsel %vm1797_vm5, %v1843_v10, %v1845_v61  ;;  %v4362_v18 = vpack.i.bf16 %v1956_v9, %v1954_v5  ;;  %3889 = vmatmul.msk.bf16.gmra.mxu3 %vm590_vm0, %v3204_v26  ;;  %v2062_v54 = vrot.slane %v5588_v53, 2  ;;  %v2890_v25 = vunpack.c.h.bf16 %v450_v39 }
 0x34d   : > { %4368 = vrot.lane.b32.xlu0 %v4367_v35, %s4414_s18  ;;  %v2477_v4 = vsel %vm1438_vm4, %v2445_v20, %v4165_v62  ;;  %v2478_v57 = vsel %vm1438_vm4, %v2446_v1, %v4166_v41  ;;  %v5990_v42 = vunpack.c.l.bf16 %v452_v59  ;;  %v2960_v10 = vrot.slane %v5915_v46, 7 }
 0x34e   : > { %v2509_v13 = vpack.c.bf16 %v2478_v57, %v2477_v4  ;;  %v6863_v5 = vrot.slane %v5547_v43, 2  ;;  %v6864_v60 = vrot.slane %v5590_v31, 2  ;;  %v2962_v26 = vrot.slane %v2890_v25, 7 }
 0x34f   : > { %v2961_v39 = vsel %vm949_vm1, %v2958_v11, %v2960_v10  ;;  %v3090_v0 = vrot.slane %v2890_v25, 1  ;;  %v4174_v17 = vpop.permute.xlu0 %4173  ;;  %v4171_v1 = vunpack.i.h.bf16 %v5912_v44  ;;  %v4170_v14 = vunpack.i.l.bf16 %v5912_v44 }
 0x350   : > { %4373 = vrot.lane.b32.xlu1 %v4372_v19, %s4415_s15  ;;  %2684 = vmatmul.bf16.gmra.mxu0 %v2509_v13  ;;  %v2063_v9 = vsel %vm2024_vm6, %v6863_v5, %v2062_v54  ;;  %v2065_v53 = vsel %vm2024_vm6, %v2062_v54, %v6864_v60  ;;  %v2963_v41 = vsel %vm949_vm1, %v2960_v10, %v2962_v26  ;;  %v3092_v19 = vrot.slane %v5990_v42, 1 }
 0x351   : > { %4363 = vrot.lane.b32.xlu2 %v4362_v18, %s4413_s17  ;;  %v3049_v62 = vmax.f32 %v2961_v39, %v5915_v46  ;;  %v2526_v43 = vpack.c.bf16 %v2065_v53, %v2063_v9  ;;  %v3050_v20 = vmax.f32 %v2963_v41, %v2890_v25  ;;  %v3091_v31 = vsel %vm1046_vm2, %v3088_v48, %v3090_v0 }
 0x352   : > { %v3093_v11 = vsel %vm1046_vm2, %v3090_v0, %v3092_v19  ;;  %v4176_v4 = vunpack.i.h.bf16 %v4174_v17  ;;  %v4175_v57 = vunpack.i.l.bf16 %v4174_v17  ;;  %v2416_v25 = vsel %vm1305_vm3, %v5374_v27, %v4171_v1 }
 0x353   : > { %v5993_v35 = vpop.permute.xlu2 %4198  ;;  %v3177_v18 = vmax.f32 %v3049_v62, %v3091_v31  ;;  %v3178_v13 = vmax.f32 %v3050_v20, %v3093_v11  ;;  %v2415_v46 = vsel %vm1305_vm3, %v5323_v32, %v4170_v14  ;;  %v4186_v0 = vunpack.i.h.bf16 %v5954_v51  ;;  %v454_v20 = vld [vmem:[%s4512_s21 + $0x30] sm:$0xff]  }
 0x354   : > { %v2447_v44 = vsel %vm590_vm0, %v2415_v46, %v4175_v57  ;;  %v2448_v9 = vsel %vm590_vm0, %v2416_v25, %v4176_v4  ;;  %v4185_v27 = vunpack.i.l.bf16 %v5954_v51  ;;  %v2964_v11 = vrot.slane %v5990_v42, 7 }
 0x355   : > { %v3205_v10 = vpack.c.bf16 %v3178_v13, %v3177_v18  ;;  %v2418_v31 = vsel %vm1305_vm3, %v5455_v52, %v4186_v0  ;;  %v6035_v4 = vunpack.c.l.bf16 %v454_v20 }
 0x356   : > { %v2417_v1 = vsel %vm1305_vm3, %v5417_v58, %v4185_v27 }
 0x357   : > { %v3096_v0 = vrot.slane %v6035_v4, 1 }
 0x358   : > { %3863 = vmatmul.msk.bf16.gmra.mxu1 %vm1305_vm3, %v2526_v43  ;;  %v6027_v43 = vunpack.c.h.bf16 %v452_v59 }
 0x35a   : > { %v4179_v54 = vpop.permute.xlu1 %4178  ;;  %v2966_v57 = vrot.slane %v6027_v43, 7  ;;  %v3094_v52 = vrot.slane %v6027_v43, 1 }
 0x35b   : > { %v4181_v48 = vunpack.i.h.bf16 %v4179_v54  ;;  %v4180_v5 = vunpack.i.l.bf16 %v4179_v54  ;;  %v6020_v60 = vpop.permute.xlu2 %4213  ;;  %v2965_v54 = vsel %vm949_vm1, %v2962_v26, %v2964_v11 }
 0x35c   : > { %3890 = vmatmul.msk.bf16.gmra.mxu3 %vm590_vm0, %v3205_v10  ;;  %v2967_v25 = vsel %vm949_vm1, %v2964_v11, %v2966_v57  ;;  %v3051_v46 = vmax.f32 %v2965_v54, %v5990_v42 }
 0x35d   : > { %v2479_v53 = vsel %vm1438_vm4, %v2447_v44, %v4180_v5  ;;  %v2480_v39 = vsel %vm1438_vm4, %v2448_v9, %v4181_v48  ;;  %v3052_v5 = vmax.f32 %v2967_v25, %v6027_v43  ;;  %v4201_v44 = vunpack.i.h.bf16 %v5993_v35  ;;  %v6080_v25 = vpop.f32.mrf.mxu1 }
 0x35e   : > { %v2511_v17 = vpack.c.bf16 %v2480_v39, %v2479_v53  ;;  %v4200_v9 = vunpack.i.l.bf16 %v5993_v35  ;;  %v3095_v39 = vsel %vm1046_vm2, %v3092_v19, %v3094_v52 }
 0x35f   : > { %v4189_v32 = vpop.permute.xlu0 %4188  ;;  %v3179_v42 = vmax.f32 %v3051_v46, %v3095_v39  ;;  %v2420_v35 = vsel %vm1305_vm3, %v5363_v47, %v4201_v44  ;;  %v4215_v47 = vunpack.i.l.bf16 %v6020_v60  ;;  %v2968_v44 = vrot.slane %v6035_v4, 7 }
 0x360   : > { %v4191_v41 = vunpack.i.h.bf16 %v4189_v32  ;;  %v4190_v62 = vunpack.i.l.bf16 %v4189_v32  ;;  %2689 = vmatmul.bf16.gmra.mxu0 %v2511_v17  ;;  %v6865_v32 = vpack.c.bf16 %v5861_v40, %v5856_v2  ;;  %v2419_v19 = vsel %vm1305_vm3, %v5460_v30, %v4200_v9 }
 0x362   : > { %v4194_v14 = vpop.permute.xlu1 %4193  ;;  %v2449_v13 = vsel %vm590_vm0, %v2417_v1, %v4190_v62  ;;  %v2450_v59 = vsel %vm590_vm0, %v2418_v31, %v4191_v41  ;;  %v3097_v41 = vsel %vm1046_vm2, %v3094_v52, %v3096_v0  ;;  %v6075_v52 = vunpack.c.h.bf16 %v454_v20 }
 0x363   : > { %v4196_v51 = vunpack.i.h.bf16 %v4194_v14  ;;  %v4195_v18 = vunpack.i.l.bf16 %v4194_v14  ;;  %v6049_v53 = vpop.permute.xlu2 %4228  ;;  %v3180_v43 = vmax.f32 %v3052_v5, %v3097_v41 }
 0x364   : > { %v2970_v20 = vrot.slane %v6075_v52, 7 }
 0x365   : > { %v2481_v10 = vsel %vm1438_vm4, %v2449_v13, %v4195_v18  ;;  %v2482_v58 = vsel %vm1438_vm4, %v2450_v59, %v4196_v51  ;;  %v3206_v40 = vpack.c.bf16 %v3180_v43, %v3179_v42  ;;  %v4216_v18 = vunpack.i.h.bf16 %v6020_v60  ;;  %v6120_v55 = vpop.f32.mrf.mxu1 }
 0x366   : > { %v2513_v48 = vpack.c.bf16 %v2482_v58, %v2481_v10  ;;  %v456_v58 = vld [vmem:[%s4512_s21 + $0x38] sm:$0xff]   ;;  %v2421_v60 = vsel %vm1305_vm3, %v5382_v15, %v4215_v47  ;;  %v2971_v42 = vsel %vm949_vm1, %v2968_v44, %v2970_v20 }
 0x367   : > { %v4204_v26 = vpop.permute.xlu0 %4203  ;;  %v2422_v46 = vsel %vm1305_vm3, %v5469_v36, %v4216_v18  ;;  %v6087_v39 = vunpack.c.l.bf16 %v456_v58  ;;  %v3098_v36 = vrot.slane %v6075_v52, 1  ;;  %v3054_v43 = vmax.f32 %v2971_v42, %v6075_v52 }
 0x368   : > { %v4206_v27 = vunpack.i.h.bf16 %v4204_v26  ;;  %v4205_v17 = vunpack.i.l.bf16 %v4204_v26  ;;  %3864 = vmatmul.msk.bf16.gmra.mxu1 %vm1305_vm3, %v6865_v32 }
 0x36a   : > { %v4209_v62 = vpop.permute.xlu1 %4208  ;;  %v2451_v14 = vsel %vm590_vm0, %v2419_v19, %v4205_v17  ;;  %v2452_v2 = vsel %vm590_vm0, %v2420_v35, %v4206_v27  ;;  %v2969_v17 = vsel %vm949_vm1, %v2966_v57, %v2968_v44  ;;  %v4231_v35 = vunpack.i.h.bf16 %v6049_v53 }
 0x36b   : > { %v4211_v31 = vunpack.i.h.bf16 %v4209_v62  ;;  %v4210_v1 = vunpack.i.l.bf16 %v4209_v62  ;;  %v6077_v10 = vpop.permute.xlu2 %4243  ;;  %v3053_v41 = vmax.f32 %v2969_v17, %v6035_v4  ;;  %v4230_v57 = vunpack.i.l.bf16 %v6049_v53  ;;  %v458_v17 = vld [vmem:[%s4512_s21 + $0x40] sm:$0xff]  }
 0x36c   : > { %3891 = vmatmul.msk.bf16.gmra.mxu3 %vm590_vm0, %v3206_v40  ;;  %v2076_v53 = vrot.slane %v5720_v23, 2 }
 0x36d   : > { %v6065_v11 = vsel %vm1438_vm4, %v2451_v14, %v4210_v1  ;;  %v6068_v51 = vsel %vm1438_vm4, %v2452_v2, %v4211_v31  ;;  %v3099_v31 = vsel %vm1046_vm2, %v3096_v0, %v3098_v36  ;;  %v3100_v1 = vrot.slane %v6087_v39, 1 }
 0x36e   : > { %v2515_v30 = vpack.c.bf16 %v6068_v51, %v6065_v11  ;;  %v3181_v4 = vmax.f32 %v3053_v41, %v3099_v31  ;;  %v2074_v51 = vrot.slane %v5683_v49, 2  ;;  %v2424_v0 = vsel %vm1305_vm3, %v5504_v12, %v4231_v35 }
 0x36f   : > { %v4219_v13 = vpop.permute.xlu0 %4218  ;;  %v3101_v40 = vsel %vm1046_vm2, %v3098_v36, %v3100_v1  ;;  %v2423_v47 = vsel %vm1305_vm3, %v5472_v34, %v4230_v57  ;;  %v4246_v12 = vunpack.i.h.bf16 %v6077_v10  ;;  %v2972_v35 = vrot.slane %v6087_v39, 7 }
 0x370   : > { %v4221_v59 = vunpack.i.h.bf16 %v4219_v13  ;;  %v4220_v54 = vunpack.i.l.bf16 %v4219_v13  ;;  %2694 = vmatmul.bf16.gmra.mxu0 %v2513_v48  ;;  %v3182_v18 = vmax.f32 %v3054_v43, %v3101_v40  ;;  %v2075_v44 = vsel %vm2024_vm6, %v2072_v24, %v2074_v51 }
 0x371   : > { %v6144_v43 = vunpack.c.l.bf16 %v458_v17  ;;  %v2426_v24 = vsel %vm1305_vm3, %v5569_v29, %v4246_v12 }
 0x372   : > { %v4224_v5 = vpop.permute.xlu1 %4223  ;;  %v2453_v48 = vsel %vm590_vm0, %v2421_v60, %v4220_v54  ;;  %v2454_v27 = vsel %vm590_vm0, %v2422_v46, %v4221_v59  ;;  %v3207_v52 = vpack.c.bf16 %v3182_v18, %v3181_v4 }
 0x373   : > { %v4226_v9 = vunpack.i.h.bf16 %v4224_v5  ;;  %v4225_v26 = vunpack.i.l.bf16 %v4224_v5  ;;  %v4259_v13 = vpop.permute.xlu2 %4258  ;;  %v3104_v29 = vrot.slane %v6144_v43, 1 }
 0x375   : > { %v6095_v32 = vsel %vm1438_vm4, %v2453_v48, %v4225_v26  ;;  %v6098_v15 = vsel %vm1438_vm4, %v2454_v27, %v4226_v9  ;;  %v2077_v9 = vsel %vm2024_vm6, %v2074_v51, %v2076_v53  ;;  %v4245_v26 = vunpack.i.l.bf16 %v6077_v10  ;;  %v6158_v51 = vpop.f32.mrf.mxu1 }
 0x376   : > { %v2517_v62 = vpack.c.bf16 %v6098_v15, %v6095_v32  ;;  %v6141_v48 = vunpack.c.h.bf16 %v456_v58  ;;  %v2532_v41 = vpack.c.bf16 %v2077_v9, %v2075_v44  ;;  %v4261_v10 = vunpack.i.h.bf16 %v4259_v13 }
 0x377   : > { %v4234_v19 = vpop.permute.xlu0 %4233  ;;  %v2973_v58 = vsel %vm949_vm1, %v2970_v20, %v2972_v35  ;;  %v2078_v44 = vrot.slane %v5729_v45, 2 }
 0x378   : > { %v4236_v14 = vunpack.i.h.bf16 %v4234_v19  ;;  %v4235_v2 = vunpack.i.l.bf16 %v4234_v19  ;;  %3865 = vmatmul.msk.bf16.gmra.mxu1 %vm1305_vm3, %v2530_v28  ;;  %v2974_v31 = vrot.slane %v6141_v48, 7 }
 0x37a   : > { %v4239_v11 = vpop.permute.xlu1 %4238  ;;  %v2455_v28 = vsel %vm590_vm0, %v2423_v47, %v4235_v2  ;;  %v2456_v54 = vsel %vm590_vm0, %v2424_v0, %v4236_v14  ;;  %v3102_v14 = vrot.slane %v6141_v48, 1  ;;  %v2975_v40 = vsel %vm949_vm1, %v2972_v35, %v2974_v31 }
 0x37b   : > { %v4241_v59 = vunpack.i.h.bf16 %v4239_v11  ;;  %v4240_v22 = vunpack.i.l.bf16 %v4239_v11  ;;  %v4274_v2 = vpop.permute.xlu2 %4273  ;;  %v3055_v11 = vmax.f32 %v2973_v58, %v6087_v39  ;;  %v4260_v47 = vunpack.i.l.bf16 %v4259_v13 }
 0x37c   : > { %3892 = vmatmul.msk.bf16.gmra.mxu3 %vm590_vm0, %v3207_v52  ;;  %v3103_v0 = vsel %vm1046_vm2, %v3100_v1, %v3102_v14  ;;  %v2080_v13 = vrot.slane %v5745_v50, 2 }
 0x37d   : > { %v6125_v46 = vsel %vm1438_vm4, %v2455_v28, %v4240_v22  ;;  %v6128_v60 = vsel %vm1438_vm4, %v2456_v54, %v4241_v59  ;;  %v3105_v22 = vsel %vm1046_vm2, %v3102_v14, %v3104_v29  ;;  %v3183_v28 = vmax.f32 %v3055_v11, %v3103_v0  ;;  %v6196_v58 = vpop.f32.mrf.mxu1  ;;  %v460_v11 = vld [vmem:[%s4512_s21 + $0x48] sm:$0xff]  }
 0x37e   : > { %v2519_v34 = vpack.c.bf16 %v6128_v60, %v6125_v46  ;;  %v4276_v14 = vunpack.i.h.bf16 %v4274_v2 }
 0x37f   : > { %v4249_v5 = vpop.permute.xlu0 %4248 }
 0x380   : > { %2699 = vmatmul.bf16.gmra.mxu0 %v2515_v30  ;;  %v4250_v27 = vunpack.i.l.bf16 %v4249_v5  ;;  %v4251_v36 = vunpack.i.h.bf16 %v4249_v5  ;;  %v2425_v30 = vsel %vm1305_vm3, %v5507_v56, %v4245_v26  ;;  %v3056_v56 = vmax.f32 %v2975_v40, %v6141_v48 }
 0x381   : > { %v2428_v26 = vsel %vm1305_vm3, %v5661_v37, %v4261_v10  ;;  %v2427_v48 = vsel %vm1305_vm3, %v5574_v7, %v4260_v47  ;;  %v2081_v10 = vsel %vm2024_vm6, %v2078_v44, %v2080_v13  ;;  %v6201_v40 = vunpack.c.h.bf16 %v458_v17 }
 0x382   : > { %v4254_v42 = vpop.permute.xlu1 %4253  ;;  %v2457_v4 = vsel %vm590_vm0, %v2425_v30, %v4250_v27  ;;  %v2458_v18 = vsel %vm590_vm0, %v2426_v24, %v4251_v36  ;;  %v3184_v12 = vmax.f32 %v3056_v56, %v3105_v22  ;;  %v2079_v30 = vsel %vm2024_vm6, %v2076_v53, %v2078_v44 }
 0x383   : > { %v4256_v57 = vunpack.i.h.bf16 %v4254_v42  ;;  %v4255_v19 = vunpack.i.l.bf16 %v4254_v42  ;;  %v4289_v7 = vpop.permute.xlu2 %4288  ;;  %v2534_v0 = vpack.c.bf16 %v2081_v10, %v2079_v30  ;;  %v6204_v47 = vunpack.c.l.bf16 %v460_v11 }
 0x384   : > { %v3208_v9 = vpack.c.bf16 %v3184_v12, %v3183_v28  ;;  %v2976_v53 = vrot.slane %v6144_v43, 7  ;;  %v2978_v28 = vrot.slane %v6201_v40, 7  ;;  %v3106_v17 = vrot.slane %v6201_v40, 1 }
 0x385   : > { %v6164_v20 = vsel %vm1438_vm4, %v2457_v4, %v4255_v19  ;;  %v6168_v39 = vsel %vm1438_vm4, %v2458_v18, %v4256_v57  ;;  %v4275_v57 = vunpack.i.l.bf16 %v4274_v2  ;;  %v4291_v44 = vunpack.i.h.bf16 %v4289_v7 }
 0x386   : > { %v2521_v5 = vpack.c.bf16 %v6168_v39, %v6164_v20 }
 0x387   : > { %v4264_v59 = vpop.permute.xlu0 %4263 }
 0x388   : > { %v4266_v54 = vunpack.i.h.bf16 %v4264_v59  ;;  %v4265_v52 = vunpack.i.l.bf16 %v4264_v59  ;;  %3866 = vmatmul.msk.bf16.gmra.mxu1 %vm1305_vm3, %v2532_v41  ;;  %v2429_v59 = vsel %vm1305_vm3, %v5667_v8, %v4275_v57  ;;  %v3108_v8 = vrot.slane %v6204_v47, 1 }
 0x38a   : > { %v4269_v1 = vpop.permute.xlu1 %4268  ;;  %v2459_v42 = vsel %vm590_vm0, %v2427_v48, %v4265_v52  ;;  %v2460_v41 = vsel %vm590_vm0, %v2428_v26, %v4266_v54  ;;  %v6866_v54 = vld [vmem:[#allocation49_spill] sm:$0xff]  ;;  %v2979_v52 = vsel %vm949_vm1, %v2976_v53, %v2978_v28  ;;  %v4290_v48 = vunpack.i.l.bf16 %v4289_v7 }
 0x38b   : > { %v4271_v27 = vunpack.i.h.bf16 %v4269_v1  ;;  %v4270_v36 = vunpack.i.l.bf16 %v4269_v1  ;;  %v2430_v32 = vsel %vm1305_vm3, %v6866_v54, %v4276_v14  ;;  %v3058_v26 = vmax.f32 %v2979_v52, %v6201_v40  ;;  %v4304_v10 = vpop.permute.xlu2 %4303 }
 0x38c   : > { %3893 = vmatmul.msk.bf16.gmra.mxu3 %vm590_vm0, %v3208_v9  ;;  %v2082_v14 = vrot.slane %v5785_v3, 2 }
 0x38d   : > { %v6182_v35 = vsel %vm1438_vm4, %v2459_v42, %v4270_v36  ;;  %v6185_v24 = vsel %vm1438_vm4, %v2460_v41, %v4271_v27  ;;  %v3109_v36 = vsel %vm1046_vm2, %v3106_v17, %v3108_v8 }
 0x38e   : > { %v2523_v37 = vpack.c.bf16 %v6185_v24, %v6182_v35  ;;  %v466_v35 = vld [vmem:[%s4512_s21 + $0x60] sm:$0xff]  }
 0x38f   : > { %v4279_v19 = vpop.permute.xlu0 %4278 }
 0x390   : > { %v4280_v4 = vunpack.i.l.bf16 %v4279_v19  ;;  %2704 = vmatmul.bf16.gmra.mxu0 %v2517_v62  ;;  %v4281_v18 = vunpack.i.h.bf16 %v4279_v19  ;;  %v2977_v62 = vsel %vm949_vm1, %v2974_v31, %v2976_v53  ;;  %v3107_v31 = vsel %vm1046_vm2, %v3104_v29, %v3106_v17  ;;  %v6235_v29 = vpop.f32.mrf.mxu1 }
 0x391   : > { %v3057_v12 = vmax.f32 %v2977_v62, %v6144_v43  ;;  %v3186_v19 = vmax.f32 %v3058_v26, %v3109_v36  ;;  %v1847_v36 = vrot.slane %v5683_v49, 6 }
 0x392   : > { %v4284_v56 = vpop.permute.xlu1 %4283  ;;  %v2461_v15 = vsel %vm590_vm0, %v2429_v59, %v4280_v4  ;;  %v2462_v9 = vsel %vm590_vm0, %v2430_v32, %v4281_v18  ;;  %v2084_v4 = vrot.slane %v5810_v6, 2  ;;  %v6868_v59 = vld [vmem:[#allocation50_spill] sm:$0xff] }
 0x393   : > { %v4286_v22 = vunpack.i.h.bf16 %v4284_v56  ;;  %v4285_v2 = vunpack.i.l.bf16 %v4284_v56  ;;  %v3185_v42 = vmax.f32 %v3057_v12, %v3107_v31  ;;  %v6867_v56 = vld [vmem:[#allocation51_spill] sm:$0xff]  ;;  %v4305_v12 = vunpack.i.l.bf16 %v4304_v10 }
 0x394   : > { %v2432_v53 = vsel %vm1305_vm3, %v6867_v56, %v4291_v44  ;;  %v2085_v26 = vsel %vm2024_vm6, %v2082_v14, %v2084_v4  ;;  %v4306_v31 = vunpack.i.h.bf16 %v4304_v10 }
 0x395   : > { %v6221_v1 = vsel %vm1438_vm4, %v2461_v15, %v4285_v2  ;;  %v6230_v43 = vsel %vm1438_vm4, %v2462_v9, %v4286_v22  ;;  %v3209_v18 = vpack.c.bf16 %v3186_v19, %v3185_v42  ;;  %v2431_v22 = vsel %vm1305_vm3, %v6868_v59, %v4290_v48  ;;  %v462_v42 = vld [vmem:[%s4512_s21 + $0x50] sm:$0xff]  }
 0x396   : > { %v2525_v30 = vpack.c.bf16 %v6230_v43, %v6221_v1  ;;  %v2083_v9 = vsel %vm2024_vm6, %v2080_v13, %v2082_v14  ;;  %v2980_v13 = vrot.slane %v6204_v47, 7  ;;  %v2433_v10 = vsel %vm1305_vm3, %v5871_v33, %v4305_v12  ;;  %v4319_v14 = vpop.permute.xlu2 %4318  ;;  %v6874_v1 = vld [vmem:[#allocation11_spill] sm:$0xff] }
 0x397   : > { %v4294_v27 = vpop.permute.xlu0 %4293  ;;  %v2536_v19 = vpack.c.bf16 %v2085_v26, %v2083_v9  ;;  %v4320_v12 = vunpack.i.l.bf16 %v4319_v14 }
 0x398   : > { %v4296_v41 = vunpack.i.h.bf16 %v4294_v27  ;;  %v4295_v57 = vunpack.i.l.bf16 %v4294_v27  ;;  %3867 = vmatmul.msk.bf16.gmra.mxu1 %vm1305_vm3, %v2534_v0  ;;  %v6265_v27 = vunpack.c.h.bf16 %v460_v11  ;;  %v6275_v60 = vpop.f32.mrf.mxu1 }
 0x39a   : > { %v4299_v7 = vpop.permute.xlu1 %4298  ;;  %v2463_v54 = vsel %vm590_vm0, %v2431_v22, %v4295_v57  ;;  %v2464_v32 = vsel %vm590_vm0, %v2432_v53, %v4296_v41  ;;  %v2982_v46 = vrot.slane %v6265_v27, 7  ;;  %v2981_v53 = vsel %vm949_vm1, %v2978_v28, %v2980_v13 }
 0x39b   : > { %v4301_v0 = vunpack.i.h.bf16 %v4299_v7  ;;  %v4300_v2 = vunpack.i.l.bf16 %v4299_v7  ;;  %v6269_v7 = vunpack.c.l.bf16 %v462_v42  ;;  %v3110_v59 = vrot.slane %v6265_v27, 1 }
 0x39c   : > { %3894 = vmatmul.msk.bf16.gmra.mxu3 %vm590_vm0, %v3209_v18  ;;  %v6252_v17 = vpop.f32.mrf.mxu3  ;;  %v2983_v33 = vsel %vm949_vm1, %v2980_v13, %v2982_v46  ;;  %v3059_v22 = vmax.f32 %v2981_v53, %v6204_v47  ;;  %v1848_v47 = vsel %vm1797_vm5, %v1845_v61, %v1847_v36  ;;  %v2086_v53 = vrot.slane %v5882_v21, 2 }
 0x39d   : > { %v6246_v15 = vsel %vm1438_vm4, %v2463_v54, %v4300_v2  ;;  %v6249_v62 = vsel %vm1438_vm4, %v2464_v32, %v4301_v0  ;;  %v3112_v0 = vrot.slane %v6269_v7, 1  ;;  %v4321_v54 = vunpack.i.h.bf16 %v4319_v14 }
 0x39e   : > { %v2527_v52 = vpack.c.bf16 %v6249_v62, %v6246_v15  ;;  %v3060_v40 = vmax.f32 %v2983_v33, %v6265_v27  ;;  %v3111_v28 = vsel %vm1046_vm2, %v3108_v8, %v3110_v59  ;;  %v2435_v14 = vsel %vm1305_vm3, %v5980_v63, %v4320_v12 }
 0x39f   : > { %v4309_v44 = vpop.permute.xlu0 %4308  ;;  %v3113_v9 = vsel %vm1046_vm2, %v3110_v59, %v3112_v0  ;;  %v3187_v26 = vmax.f32 %v3059_v22, %v3111_v28  ;;  %v2902_v33 = vunpack.c.h.bf16 %v462_v42  ;;  %v464_v22 = vld [vmem:[%s4512_s21 + $0x58] sm:$0xff]   ;;  %v2984_v28 = vrot.slane %v6269_v7, 7 }
 0x3a0   : > { %v4310_v48 = vunpack.i.l.bf16 %v4309_v44  ;;  %2709 = vmatmul.bf16.gmra.mxu0 %v2519_v34  ;;  %v4311_v41 = vunpack.i.h.bf16 %v4309_v44  ;;  %v2434_v34 = vsel %vm1305_vm3, %v5969_v16, %v4306_v31  ;;  %v6320_v61 = vpop.f32.mrf.mxu1 }
 0x3a1   : > { %v2986_v12 = vrot.slane %v2902_v33, 7  ;;  %v2985_v20 = vsel %vm949_vm1, %v2982_v46, %v2984_v28  ;;  %v6352_v46 = vld [vmem:[%s6753_s12] ss:$0 sm:$0xff] }
 0x3a2   : > { %v4314_v57 = vpop.permute.xlu1 %4313  ;;  %v2465_v11 = vsel %vm590_vm0, %v2433_v10, %v4310_v48  ;;  %v2466_v16 = vsel %vm590_vm0, %v2434_v34, %v4311_v41  ;;  %v3188_v41 = vmax.f32 %v3060_v40, %v3113_v9  ;;  %v2436_v10 = vsel %vm1305_vm3, %v1848_v47, %v4321_v54 }
 0x3a3   : > { %v4316_v18 = vunpack.i.h.bf16 %v4314_v57  ;;  %v4315_v56 = vunpack.i.l.bf16 %v4314_v57  ;;  %v2087_v54 = vsel %vm2024_vm6, %v2084_v4, %v2086_v53  ;;  %v2903_v40 = vunpack.c.l.bf16 %v464_v22 }
 0x3a4   : > { %v6291_v32 = vpop.f32.mrf.mxu3  ;;  %v3210_v13 = vpack.c.bf16 %v3188_v41, %v3187_v26  ;;  %v6337_v26 = vpop.f32.mrf.mxu0  ;;  %v2987_v39 = vsel %vm949_vm1, %v2984_v28, %v2986_v12 }
 0x3a5   : > { %v6288_v2 = vsel %vm1438_vm4, %v2465_v11, %v4315_v56  ;;  %v6299_v31 = vsel %vm1438_vm4, %v2466_v16, %v4316_v18  ;;  %v2120_v16 = vsel %vm2024_vm6, %v2086_v53, 0.0  ;;  %v3116_v9 = vrot.slane %v2903_v40, 1  ;;  %v6869_v53 = vld [vmem:[#allocation6_spill] sm:$0xff] }
 0x3a6   : > { %v2529_v27 = vpack.c.bf16 %v6299_v31, %v6288_v2  ;;  %v3062_v42 = vmax.f32 %v2987_v39, %v2902_v33  ;;  %v2988_v28 = vrot.slane %v2903_v40, 7  ;;  %v6880_v2 = vld [vmem:[#allocation17_spill] sm:$0xff] }
 0x3a7   : > { %v4324_v44 = vpop.permute.xlu0 %4323 }
 0x3a8   : > { %v4326_v48 = vunpack.i.h.bf16 %v4324_v44  ;;  %v4325_v57 = vunpack.i.l.bf16 %v4324_v44  ;;  %3868 = vmatmul.msk.bf16.gmra.mxu1 %vm1305_vm3, %v2536_v19  ;;  %v3114_v44 = vrot.slane %v2902_v33, 1  ;;  %v6346_v47 = vpop.f32.mrf.mxu1 }
 0x3aa   : > { %v4329_v8 = vpop.permute.xlu1 %4328  ;;  %v2467_v56 = vsel %vm590_vm0, %v2435_v14, %v4325_v57  ;;  %v2468_v34 = vsel %vm590_vm0, %v2436_v10, %v4326_v48  ;;  %v2538_v48 = vpack.c.bf16 %v2120_v16, %v2087_v54  ;;  %v3115_v4 = vsel %vm1046_vm2, %v3112_v0, %v3114_v44  ;;  %v6870_v54 = vld [vmem:[#allocation9_spill] sm:$0xff] }
 0x3ab   : > { %v4331_v18 = vunpack.i.h.bf16 %v4329_v8  ;;  %v4330_v19 = vunpack.i.l.bf16 %v4329_v8  ;;  %v3117_v57 = vsel %vm1046_vm2, %v3114_v44, %v3116_v9  ;;  %v3311_v14 = vadd.f32 %v6352_v46, %v6252_v17  ;;  %v6377_v17 = vld [vmem:[%s6747_s6] ss:$0 sm:$0xff]  ;;  %v6871_v44 = vld [vmem:[#allocation8_spill] sm:$0xff] }
 0x3ac   : > { %3895 = vmatmul.msk.bf16.gmra.mxu3 %vm590_vm0, %v3210_v13  ;;  %v6324_v59 = vpop.f32.mrf.mxu3  ;;  %v3190_v13 = vmax.f32 %v3062_v42, %v3117_v57  ;;  %v2989_v57 = vsel %vm949_vm1, %v2986_v12, %v2988_v28 }
 0x3ad   : > { %v6315_v11 = vsel %vm1438_vm4, %v2467_v56, %v4330_v19  ;;  %v6318_v38 = vsel %vm1438_vm4, %v2468_v34, %v4331_v18  ;;  %v2904_v56 = vunpack.c.h.bf16 %v464_v22  ;;  %v6370_v34 = vld [vmem:[%s6743_s2] ss:$0 sm:$0xff]  ;;  %v3390_v24 = vmax.f32 %v3311_v14, 0.0 }
 0x3ae   : > { %v2531_v63 = vpack.c.bf16 %v6318_v38, %v6315_v11  ;;  %v651_v33 = vadd.f32 %v6370_v34, %v6869_v53  ;;  %v6385_v22 = vunpack.c.l.bf16 %v466_v35  ;;  %v3063_v14 = vmax.f32 %v2989_v57, %v2903_v40  ;;  %v6873_v57 = vld [vmem:[#allocation12_spill] sm:$0xff] }
 0x3af   : > { %v3118_v39 = vrot.slane %v2904_v56, 1 }
 0x3b0   : > { %2714 = vmatmul.bf16.gmra.mxu0 %v2521_v5  ;;  %v3061_v5 = vmax.f32 %v2985_v20, %v6269_v7  ;;  %v6357_v7 = vld [vmem:[%s6751_s10] ss:$0 sm:$0xff]  ;;  %v2990_v20 = vrot.slane %v2904_v56, 7 }
 0x3b2   : > { %v3189_v8 = vmax.f32 %v3061_v5, %v3115_v4  ;;  %v729_v5 = vmax.f32 %v651_v33, 0.0  ;;  %v3313_v33 = vadd.f32 %v6352_v46, %v6291_v32 }
 0x3b4   : > { %v6344_v41 = vpop.f32.mrf.mxu3  ;;  %v3211_v0 = vpack.c.bf16 %v3190_v13, %v3189_v8  ;;  %v3120_v8 = vrot.slane %v6385_v22, 1  ;;  %v3391_v40 = vmax.f32 %v3313_v33, 0.0 }
 0x3b6   : > { %v3121_v53 = vsel %vm1046_vm2, %v3118_v39, %v3120_v8 }
 0x3b8   : > { %3869 = vmatmul.msk.bf16.gmra.mxu1 %vm1305_vm3, %v2538_v48 }
 0x3bc   : > { %3896 = vmatmul.msk.bf16.gmra.mxu3 %vm590_vm0, %v3211_v0 }
 0x3bd   : > { %v2680_v10 = vpop.f32.mrf.mxu0 }
 0x3be   : > { %v2681_v18 = vadd.f32 %v6357_v7, %v2680_v10  ;;  %v2991_v10 = vsel %vm949_vm1, %v2988_v28, %v2990_v20 }
 0x3bf   : > { %v6381_v16 = vpop.f32.mrf.mxu3 }
 0x3c0   : > { %v2770_v19 = vadd.f32 %v6080_v25, %v2681_v18  ;;  %2719 = vmatmul.bf16.gmra.mxu0 %v2523_v37  ;;  %v1499_v25 = vadd.f32 %v6377_v17, %v6870_v54  ;;  %v3064_v18 = vmax.f32 %v2991_v10, %v2904_v56  ;;  %v468_v10 = vld [vmem:[%s4512_s21 + $0x68] sm:$0xff]  }
 0x3c2   : > { %v2849_v37 = vmax.f32 %v2770_v19, 0.0  ;;  %v1577_v42 = vmax.f32 %v1499_v25, 0.0  ;;  %v3119_v19 = vsel %vm1046_vm2, %v3116_v9, %v3118_v39  ;;  %v3316_v39 = vadd.f32 %v6352_v46, %v6324_v59 }
 0x3c3   : > { %v3191_v54 = vmax.f32 %v3063_v14, %v3119_v19  ;;  %v6423_v19 = vunpack.c.l.bf16 %v468_v10 }
 0x3c4   : > { %v3454_v48 = vadd.f32 %v6871_v44, %v2849_v37  ;;  %v3423_v37 = vadd.f32 %v1577_v42, %v729_v5  ;;  %v2906_v42 = vunpack.c.h.bf16 %v466_v35  ;;  %v3392_v14 = vmax.f32 %v3316_v39, 0.0 }
 0x3c5   : > { %v2682_v4 = vpop.f32.mrf.mxu0 }
 0x3c6   : > { %v3486_v13 = vadd.f32 %v3454_v48, %v3390_v24  ;;  %v2683_v0 = vadd.f32 %v6357_v7, %v2682_v4  ;;  %v3192_v24 = vmax.f32 %v3064_v18, %v3121_v53  ;;  %v2992_v53 = vrot.slane %v6385_v22, 7 }
 0x3c7   : > { %v6403_v25 = vpop.f32.mrf.mxu3  ;;  %v3122_v35 = vrot.slane %v2906_v42, 1 }
 0x3c8   : > { %3518 = vst [vmem:[%s6391_s24] sm:$0xff] %v3486_v13  ;;  %v2772_v12 = vadd.f32 %v6120_v55, %v2683_v0  ;;  %v3212_v28 = vpack.c.bf16 %v3192_v24, %v3191_v54  ;;  %v6872_v55 = vld [vmem:[#allocation7_spill] sm:$0xff]  ;;  %v1504_v13 = vadd.f32 %v6377_v17, %v6873_v57  ;;  %v6418_v0 = vpop.f32.mrf.mxu1 }
 0x3c9   : > { %v656_v4 = vadd.f32 %v6370_v34, %v6872_v55 }
 0x3ca   : > { %v2850_v44 = vmax.f32 %v2772_v12, 0.0  ;;  %v1579_v12 = vmax.f32 %v1504_v13, 0.0 }
 0x3cb   : > { %v731_v33 = vmax.f32 %v656_v4, 0.0 }
 0x3cc   : > { %v3455_v56 = vadd.f32 %v3423_v37, %v2850_v44  ;;  %3897 = vmatmul.msk.bf16.gmra.mxu3 %vm590_vm0, %v3212_v28  ;;  %v3124_v44 = vrot.slane %v6423_v19, 1 }
 0x3cd   : > { %v2685_v9 = vpop.f32.mrf.mxu0  ;;  %v3425_v4 = vadd.f32 %v1579_v12, %v731_v33 }
 0x3ce   : > { %v3487_v48 = vadd.f32 %v3455_v56, %v3391_v40  ;;  %v2686_v32 = vadd.f32 %v6357_v7, %v2685_v9  ;;  %v3123_v9 = vsel %vm1046_vm2, %v3120_v8, %v3122_v35 }
 0x3cf   : > { %v6420_v59 = vpop.f32.mrf.mxu3 }
 0x3d0   : > { %3519 = vst [vmem:[%s6391_s24 + $0x8] sm:$0xff] %v3487_v48  ;;  %v2775_v5 = vadd.f32 %v6158_v51, %v2686_v32  ;;  %2724 = vmatmul.bf16.gmra.mxu0 %v2525_v30  ;;  %v2994_v51 = vrot.slane %v2906_v42, 7  ;;  %v2993_v30 = vsel %vm949_vm1, %v2990_v20, %v2992_v53  ;;  %v3125_v48 = vsel %vm1046_vm2, %v3122_v35, %v3124_v44 }
 0x3d1   : > { %v3065_v37 = vmax.f32 %v2993_v30, %v6385_v22  ;;  %v3318_v20 = vadd.f32 %v6352_v46, %v6344_v41  ;;  %v6876_v30 = vld [vmem:[#allocation15_spill] sm:$0xff] }
 0x3d2   : > { %v2851_v18 = vmax.f32 %v2775_v5, 0.0  ;;  %v2995_v24 = vsel %vm949_vm1, %v2992_v53, %v2994_v51  ;;  %v3321_v53 = vadd.f32 %v6352_v46, %v6381_v16  ;;  %v1509_v35 = vadd.f32 %v6377_v17, %v6876_v30  ;;  %v470_v16 = vld [vmem:[%s4512_s21 + $0x70] sm:$0xff]  }
 0x3d3   : > { %v3066_v56 = vmax.f32 %v2995_v24, %v2906_v42  ;;  %v3193_v39 = vmax.f32 %v3065_v37, %v3123_v9  ;;  %v6440_v42 = vpop.f32.mrf.mxu1  ;;  %v3393_v8 = vmax.f32 %v3318_v20, 0.0  ;;  %v6458_v37 = vunpack.c.l.bf16 %v470_v16 }
 0x3d4   : > { %v3456_v43 = vadd.f32 %v6874_v1, %v2851_v18  ;;  %v3326_v30 = vadd.f32 %v6352_v46, %v6420_v59 }
 0x3d5   : > { %v2687_v54 = vpop.f32.mrf.mxu0  ;;  %v3194_v55 = vmax.f32 %v3066_v56, %v3125_v48 }
 0x3d6   : > { %v3488_v28 = vadd.f32 %v3456_v43, %v3392_v14  ;;  %v2688_v40 = vadd.f32 %v6357_v7, %v2687_v54  ;;  %v2908_v43 = vunpack.c.h.bf16 %v468_v10  ;;  %v3394_v54 = vmax.f32 %v3321_v53, 0.0 }
 0x3d7   : > { %v6438_v22 = vpop.f32.mrf.mxu3  ;;  %v3213_v57 = vpack.c.bf16 %v3194_v55, %v3193_v39 }
 0x3d8   : > { %3520 = vst [vmem:[%s6391_s24 + $0x10] sm:$0xff] %v3488_v28  ;;  %v2777_v32 = vadd.f32 %v6196_v58, %v2688_v40  ;;  %v6875_v58 = vld [vmem:[#allocation10_spill] sm:$0xff]  ;;  %v2996_v28 = vrot.slane %v6423_v19, 7  ;;  %v2998_v40 = vrot.slane %v2908_v43, 7  ;;  %v3126_v62 = vrot.slane %v2908_v43, 1 }
 0x3d9   : > { %v661_v1 = vadd.f32 %v6370_v34, %v6875_v58 }
 0x3da   : > { %v2852_v5 = vmax.f32 %v2777_v32, 0.0  ;;  %v2997_v15 = vsel %vm949_vm1, %v2994_v51, %v2996_v28  ;;  %v2999_v39 = vsel %vm949_vm1, %v2996_v28, %v2998_v40  ;;  %v3128_v32 = vrot.slane %v6458_v37, 1 }
 0x3db   : > { %v733_v56 = vmax.f32 %v661_v1, 0.0  ;;  %v6463_v10 = vpop.f32.mrf.mxu1  ;;  %v3067_v20 = vmax.f32 %v2997_v15, %v6423_v19  ;;  %v6490_v28 = vunpack.c.h.bf16 %v470_v16  ;;  %v3396_v15 = vmax.f32 %v3326_v30, 0.0 }
 0x3dc   : > { %v3457_v13 = vadd.f32 %v3425_v4, %v2852_v5  ;;  %3898 = vmatmul.msk.bf16.gmra.mxu3 %vm590_vm0, %v3213_v57  ;;  %v3068_v5 = vmax.f32 %v2999_v39, %v2908_v43  ;;  %v3127_v57 = vsel %vm1046_vm2, %v3124_v44, %v3126_v62 }
 0x3dd   : > { %v2690_v14 = vpop.f32.mrf.mxu0  ;;  %v3195_v51 = vmax.f32 %v3067_v20, %v3127_v57  ;;  %v3130_v16 = vrot.slane %v6490_v28, 1 }
 0x3de   : > { %v3489_v18 = vadd.f32 %v3457_v13, %v3393_v8  ;;  %v2691_v41 = vadd.f32 %v6357_v7, %v2690_v14  ;;  %v3129_v8 = vsel %vm1046_vm2, %v3126_v62, %v3128_v32  ;;  %v3323_v13 = vadd.f32 %v6352_v46, %v6403_v25 }
 0x3df   : > { %v6455_v12 = vpop.f32.mrf.mxu3 }
 0x3e0   : > { %3521 = vst [vmem:[%s6391_s24 + $0x18] sm:$0xff] %v3489_v18  ;;  %v2780_v33 = vadd.f32 %v6235_v29, %v2691_v41  ;;  %2729 = vmatmul.bf16.gmra.mxu0 %v2527_v52  ;;  %v6877_v29 = vld [vmem:[#allocation14_spill] sm:$0xff]  ;;  %v1581_v52 = vmax.f32 %v1509_v35, 0.0  ;;  %v3196_v18 = vmax.f32 %v3068_v5, %v3129_v8  ;;  %v3395_v1 = vmax.f32 %v3323_v13, 0.0 }
 0x3e2   : > { %v2853_v24 = vmax.f32 %v2780_v33, 0.0  ;;  %v3427_v53 = vadd.f32 %v1581_v52, %v733_v56  ;;  %v3214_v58 = vpack.c.bf16 %v3196_v18, %v3195_v51  ;;  %v6879_v56 = vld [vmem:[#allocation18_spill] sm:$0xff] }
 0x3e3   : > { %v6481_v25 = vpop.f32.mrf.mxu1  ;;  %v1514_v59 = vadd.f32 %v6377_v17, %v6879_v56 }
 0x3e4   : > { %v3458_v9 = vadd.f32 %v6877_v29, %v2853_v24 }
 0x3e5   : > { %v2692_v48 = vpop.f32.mrf.mxu0  ;;  %v1583_v20 = vmax.f32 %v1514_v59, 0.0  ;;  %v1849_v59 = vrot.slane %v5720_v23, 6 }
 0x3e6   : > { %v3490_v55 = vadd.f32 %v3458_v9, %v3394_v54  ;;  %v2693_v4 = vadd.f32 %v6357_v7, %v2692_v48  ;;  %v472_v9 = vld [vmem:[%s4512_s21 + $0x78] sm:$0xff]   ;;  %v3000_v48 = vrot.slane %v6458_v37, 7 }
 0x3e7   : > { %v6475_v19 = vpop.f32.mrf.mxu3  ;;  %v6497_v52 = vunpack.c.l.bf16 %v472_v9 }
 0x3e8   : > { %3522 = vst [vmem:[%s6391_s24 + $0x20] sm:$0xff] %v3490_v55  ;;  %v2782_v14 = vadd.f32 %v6275_v60, %v2693_v4  ;;  %v6878_v60 = vld [vmem:[#allocation13_spill] sm:$0xff] }
 0x3e9   : > { %v666_v54 = vadd.f32 %v6370_v34, %v6878_v60  ;;  %v3132_v57 = vrot.slane %v6497_v52, 1 }
 0x3ea   : > { %v2854_v41 = vmax.f32 %v2782_v14, 0.0  ;;  %v3131_v14 = vsel %vm1046_vm2, %v3128_v32, %v3130_v16 }
 0x3eb   : > { %v735_v39 = vmax.f32 %v666_v54, 0.0  ;;  %v3133_v18 = vsel %vm1046_vm2, %v3130_v16, %v3132_v57  ;;  %v3331_v54 = vadd.f32 %v6352_v46, %v6455_v12  ;;  %v2912_v12 = vunpack.c.h.bf16 %v472_v9  ;;  %v4344_v9 = vpop.permute.xlu1 %4343 }
 0x3ec   : > { %v3459_v33 = vadd.f32 %v3427_v53, %v2854_v41  ;;  %3899 = vmatmul.msk.bf16.gmra.mxu3 %vm590_vm0, %v3214_v58  ;;  %v3328_v53 = vadd.f32 %v6352_v46, %v6438_v22 }
 0x3ed   : > { %v2695_v44 = vpop.f32.mrf.mxu0  ;;  %v3006_v16 = vrot.slane %v2912_v12, 7 }
 0x3ee   : > { %v3491_v43 = vadd.f32 %v3459_v33, %v3395_v1  ;;  %v2696_v35 = vadd.f32 %v6357_v7, %v2695_v44  ;;  %v3429_v33 = vadd.f32 %v1583_v20, %v735_v39  ;;  %v3397_v30 = vmax.f32 %v3328_v53, 0.0 }
 0x3ef   : > { %v6494_v29 = vpop.f32.mrf.mxu3 }
 0x3f0   : > { %3523 = vst [vmem:[%s6391_s24 + $0x28] sm:$0xff] %v3491_v43  ;;  %v2785_v24 = vadd.f32 %v6320_v61, %v2696_v35  ;;  %2734 = vmatmul.bf16.gmra.mxu0 %v2529_v27  ;;  %v3002_v61 = vrot.slane %v6490_v28, 7  ;;  %v3001_v27 = vsel %vm949_vm1, %v2998_v40, %v3000_v48 }
 0x3f1   : > { %v3069_v5 = vmax.f32 %v3001_v27, %v6458_v37  ;;  %v6515_v37 = vpop.f32.mrf.mxu1  ;;  %v3004_v27 = vrot.slane %v6497_v52, 7 }
 0x3f2   : > { %v2855_v62 = vmax.f32 %v2785_v24, 0.0  ;;  %v3003_v4 = vsel %vm949_vm1, %v3000_v48, %v3002_v61  ;;  %v4334_v48 = vpop.permute.xlu2 %4333 }
 0x3f3   : > { %v3070_v13 = vmax.f32 %v3003_v4, %v6490_v28  ;;  %v3197_v40 = vmax.f32 %v3069_v5, %v3131_v14  ;;  %v6882_v28 = vld [vmem:[#allocation21_spill] sm:$0xff]  ;;  %v6883_v4 = vld [vmem:[#allocation20_spill] sm:$0xff] }
 0x3f4   : > { %v3460_v31 = vadd.f32 %v6880_v2, %v2855_v62  ;;  %v1519_v56 = vadd.f32 %v6377_v17, %v6882_v28  ;;  %v3398_v2 = vmax.f32 %v3331_v54, 0.0 }
 0x3f5   : > { %v2697_v55 = vpop.f32.mrf.mxu0  ;;  %v3198_v58 = vmax.f32 %v3070_v13, %v3133_v18  ;;  %v4335_v13 = vunpack.i.l.bf16 %v4334_v48  ;;  %v3134_v18 = vrot.slane %v2912_v12, 1 }
 0x3f6   : > { %v3492_v8 = vadd.f32 %v3460_v31, %v3396_v15  ;;  %v2698_v51 = vadd.f32 %v6357_v7, %v2697_v55  ;;  %v1851_v15 = vrot.slane %v5729_v45, 6  ;;  %v1585_v23 = vmax.f32 %v1519_v56, 0.0 }
 0x3f7   : > { %v6517_v1 = vpop.f32.mrf.mxu3  ;;  %v3215_v43 = vpack.c.bf16 %v3198_v58, %v3197_v40  ;;  %v1850_v55 = vsel %vm1797_vm5, %v1847_v36, %v1849_v59 }
 0x3f8   : > { %3524 = vst [vmem:[%s6391_s24 + $0x30] sm:$0xff] %v3492_v8  ;;  %v2787_v41 = vadd.f32 %v6346_v47, %v2698_v51  ;;  %v6881_v47 = vld [vmem:[#allocation16_spill] sm:$0xff]  ;;  %v1852_v11 = vsel %vm1797_vm5, %v1849_v59, %v1851_v15  ;;  %v3005_v8 = vsel %vm949_vm1, %v3002_v61, %v3004_v27  ;;  %v3007_v51 = vsel %vm949_vm1, %v3004_v27, %v3006_v16 }
 0x3f9   : > { %v671_v24 = vadd.f32 %v6370_v34, %v6881_v47  ;;  %v6543_v38 = vpop.f32.mrf.mxu1  ;;  %v3071_v36 = vmax.f32 %v3005_v8, %v6497_v52  ;;  %v3072_v14 = vmax.f32 %v3007_v51, %v2912_v12  ;;  %v3333_v61 = vadd.f32 %v6352_v46, %v6475_v19 }
 0x3fa   : > { %v2856_v44 = vmax.f32 %v2787_v41, 0.0  ;;  %v1853_v8 = vrot.slane %v5745_v50, 6  ;;  %v1855_v51 = vrot.slane %v5785_v3, 6 }
 0x3fb   : > { %v737_v20 = vmax.f32 %v671_v24, 0.0  ;;  %v3399_v59 = vmax.f32 %v3333_v61, 0.0 }
 0x3fc   : > { %v3461_v32 = vadd.f32 %v3429_v33, %v2856_v44  ;;  %3900 = vmatmul.msk.bf16.gmra.mxu3 %vm590_vm0, %v3215_v43  ;;  %v4346_v33 = vunpack.i.h.bf16 %v4344_v9  ;;  %v4345_v44 = vunpack.i.l.bf16 %v4344_v9  ;;  %v3135_v43 = vsel %vm1046_vm2, %v3132_v57, %v3134_v18  ;;  %v4349_v9 = vpop.permute.xlu2 %4348 }
 0x3fd   : > { %v2700_v35 = vpop.f32.mrf.mxu0  ;;  %v3199_v52 = vmax.f32 %v3071_v36, %v3135_v43  ;;  %v1854_v50 = vsel %vm1797_vm5, %v1851_v15, %v1853_v8 }
 0x3fe   : > { %v3493_v60 = vadd.f32 %v3461_v32, %v3397_v30  ;;  %v2701_v22 = vadd.f32 %v6357_v7, %v2700_v35  ;;  %v3168_v30 = vsel %vm1046_vm2, %v3134_v18, -inf  ;;  %v4351_v18 = vunpack.i.h.bf16 %v4349_v9 }
 0x3ff   : > { %v6534_v39 = vpop.f32.mrf.mxu3  ;;  %v3200_v35 = vmax.f32 %v3072_v14, %v3168_v30 }
 0x400   : > { %3525 = vst [vmem:[%s6391_s24 + $0x38] sm:$0xff] %v3493_v60  ;;  %v2790_v62 = vadd.f32 %v6418_v0, %v2701_v22  ;;  %2739 = vmatmul.bf16.gmra.mxu0 %v2531_v63  ;;  %v4339_v63 = vpop.permute.xlu0 %4338  ;;  %v4336_v0 = vunpack.i.h.bf16 %v4334_v48  ;;  %v3431_v60 = vadd.f32 %v1585_v23, %v737_v20  ;;  %v2437_v22 = vsel %vm1305_vm3, %v1850_v55, %v4335_v13  ;;  %v6884_v23 = vld [vmem:[#allocation19_spill] sm:$0xff]  ;;  %v4359_v13 = vpop.permute.xlu1 %4358 }
 0x401   : > { %v4341_v40 = vunpack.i.h.bf16 %v4339_v63  ;;  %v4340_v53 = vunpack.i.l.bf16 %v4339_v63  ;;  %v3216_v56 = vpack.c.bf16 %v3200_v35, %v3199_v52  ;;  %v6564_v12 = vpop.f32.mrf.mxu1  ;;  %v676_v55 = vadd.f32 %v6370_v34, %v6884_v23 }
 0x402   : > { %v2857_v31 = vmax.f32 %v2790_v62, 0.0  ;;  %v2438_v54 = vsel %vm1305_vm3, %v1852_v11, %v4336_v0  ;;  %v6885_v11 = vld [vmem:[#allocation24_spill] sm:$0xff]  ;;  %v4361_v43 = vunpack.i.h.bf16 %v4359_v13  ;;  %v4360_v30 = vunpack.i.l.bf16 %v4359_v13 }
 0x403   : > { %v2469_v57 = vsel %vm590_vm0, %v2437_v22, %v4340_v53  ;;  %v2470_v24 = vsel %vm590_vm0, %v2438_v54, %v4341_v40  ;;  %v1524_v63 = vadd.f32 %v6377_v17, %v6885_v11  ;;  %v739_v36 = vmax.f32 %v676_v55, 0.0 }
 0x404   : > { %v3462_v5 = vadd.f32 %v6883_v4, %v2857_v31  ;;  %v2501_v19 = vsel %vm1438_vm4, %v2469_v57, %v4345_v44  ;;  %v3336_v31 = vadd.f32 %v6352_v46, %v6494_v29  ;;  %v4350_v40 = vunpack.i.l.bf16 %v4349_v9  ;;  %v4364_v11 = vpop.permute.xlu2 %4363 }
 0x405   : > { %v2702_v49 = vpop.f32.mrf.mxu0  ;;  %v1587_v14 = vmax.f32 %v1524_v63, 0.0  ;;  %v3338_v52 = vadd.f32 %v6352_v46, %v6517_v1 }
 0x406   : > { %v3494_v41 = vadd.f32 %v3462_v5, %v3398_v2  ;;  %v2703_v58 = vadd.f32 %v6357_v7, %v2702_v49  ;;  %v3400_v4 = vmax.f32 %v3336_v31, 0.0  ;;  %v6886_v49 = vld [vmem:[#allocation23_spill] sm:$0xff]  ;;  %v2439_v54 = vsel %vm1305_vm3, %v1854_v50, %v4350_v40  ;;  %v6887_v31 = vld [vmem:[#allocation22_spill] sm:$0xff] }
 0x407   : > { %v6558_v47 = vpop.f32.mrf.mxu3  ;;  %v3433_v45 = vadd.f32 %v1587_v14, %v739_v36  ;;  %v3401_v1 = vmax.f32 %v3338_v52, 0.0  ;;  %v4365_v36 = vunpack.i.l.bf16 %v4364_v11 }
 0x408   : > { %3526 = vst [vmem:[%s6391_s24 + $0x40] sm:$0xff] %v3494_v41  ;;  %v2792_v32 = vadd.f32 %v6440_v42, %v2703_v58  ;;  %v2502_v42 = vsel %vm1438_vm4, %v2470_v24, %v4346_v33  ;;  %v4354_v5 = vpop.permute.xlu0 %4353 }
 0x409   : > { %v2533_v16 = vpack.c.bf16 %v2502_v42, %v2501_v19  ;;  %v4356_v41 = vunpack.i.h.bf16 %v4354_v5  ;;  %v4355_v58 = vunpack.i.l.bf16 %v4354_v5  ;;  %v6582_v61 = vpop.f32.mrf.mxu1  ;;  %v6889_v5 = vld [vmem:[#allocation26_spill] sm:$0xff] }
 0x40a   : > { %v2858_v28 = vmax.f32 %v2792_v32, 0.0  ;;  %v1856_v32 = vsel %vm1797_vm5, %v1853_v8, %v1855_v51 }
 0x40b   : > { %v2471_v15 = vsel %vm590_vm0, %v2439_v54, %v4355_v58 }
 0x40c   : > { %v3463_v62 = vadd.f32 %v3431_v60, %v2858_v28  ;;  %3901 = vmatmul.msk.bf16.gmra.mxu3 %vm590_vm0, %v3216_v56  ;;  %v2440_v60 = vsel %vm1305_vm3, %v1856_v32, %v4351_v18  ;;  %v2503_v28 = vsel %vm1438_vm4, %v2471_v15, %v4360_v30 }
 0x40d   : > { %v2705_v48 = vpop.f32.mrf.mxu0  ;;  %v2472_v57 = vsel %vm590_vm0, %v2440_v60, %v4356_v41 }
 0x40e   : > { %v3495_v2 = vadd.f32 %v3463_v62, %v3399_v59  ;;  %v2706_v27 = vadd.f32 %v6357_v7, %v2705_v48  ;;  %v2504_v56 = vsel %vm1438_vm4, %v2472_v57, %v4361_v43  ;;  %v3341_v59 = vadd.f32 %v6352_v46, %v6534_v39 }
 0x40f   : > { %v6576_v0 = vpop.f32.mrf.mxu3  ;;  %v2535_v48 = vpack.c.bf16 %v2504_v56, %v2503_v28 }
 0x410   : > { %3527 = vst [vmem:[%s6391_s24 + $0x48] sm:$0xff] %v3495_v2  ;;  %v2795_v20 = vadd.f32 %v6463_v10, %v2706_v27  ;;  %2744 = vmatmul.bf16.gmra.mxu0 %v2533_v16  ;;  %v681_v27 = vadd.f32 %v6370_v34, %v6887_v31  ;;  %v6888_v16 = vld [vmem:[#allocation27_spill] sm:$0xff]  ;;  %v3402_v63 = vmax.f32 %v3341_v59, 0.0  ;;  %v4369_v9 = vpop.permute.xlu0 %4368  ;;  %v6892_v31 = vld [vmem:[#allocation28_spill] sm:$0xff] }
 0x411   : > { %v6611_v23 = vpop.f32.mrf.mxu1  ;;  %v4371_v18 = vunpack.i.h.bf16 %v4369_v9  ;;  %v4370_v40 = vunpack.i.l.bf16 %v4369_v9 }
 0x412   : > { %v2859_v29 = vmax.f32 %v2795_v20, 0.0  ;;  %v1529_v20 = vadd.f32 %v6377_v17, %v6888_v16  ;;  %v741_v13 = vmax.f32 %v681_v27, 0.0 }
 0x414   : > { %v3464_v10 = vadd.f32 %v6886_v49, %v2859_v29  ;;  %v1859_v29 = vrot.slane %v5882_v21, 6  ;;  %v1589_v49 = vmax.f32 %v1529_v20, 0.0 }
 0x415   : > { %v2707_v53 = vpop.f32.mrf.mxu0 }
 0x416   : > { %v3496_v33 = vadd.f32 %v3464_v10, %v3400_v4  ;;  %v2708_v44 = vadd.f32 %v6357_v7, %v2707_v53  ;;  %v1857_v4 = vrot.slane %v5810_v6, 6  ;;  %v4366_v10 = vunpack.i.h.bf16 %v4364_v11 }
 0x417   : > { %v6596_v22 = vpop.f32.mrf.mxu3  ;;  %v3435_v52 = vadd.f32 %v1589_v49, %v741_v13 }
 0x418   : > { %3528 = vst [vmem:[%s6391_s24 + $0x50] sm:$0xff] %v3496_v33  ;;  %v2797_v35 = vadd.f32 %v6481_v25, %v2708_v44  ;;  %v1858_v6 = vsel %vm1797_vm5, %v1855_v51, %v1857_v4  ;;  %v1860_v21 = vsel %vm1797_vm5, %v1857_v4, %v1859_v29  ;;  %v3343_v44 = vadd.f32 %v6352_v46, %v6558_v47 }
 0x419   : > { %v2442_v30 = vsel %vm1305_vm3, %v1860_v21, %v4366_v10  ;;  %v2441_v50 = vsel %vm1305_vm3, %v1858_v6, %v4365_v36  ;;  %v2811_v60 = vpop.f32.mrf.mxu1 }
 0x41a   : > { %v2860_v24 = vmax.f32 %v2797_v35, 0.0  ;;  %v2473_v35 = vsel %vm590_vm0, %v2441_v50, %v4370_v40  ;;  %v2474_v3 = vsel %vm590_vm0, %v2442_v30, %v4371_v18  ;;  %v3403_v47 = vmax.f32 %v3343_v44, 0.0  ;;  %v6894_v40 = vld [vmem:[#allocation32_spill] sm:$0xff] }
 0x41c   : > { %v3465_v19 = vadd.f32 %v3433_v45, %v2860_v24  ;;  %v3346_v24 = vadd.f32 %v6352_v46, %v6576_v0 }
 0x41d   : > { %v2710_v25 = vpop.f32.mrf.mxu0 }
 0x41e   : > { %v3497_v42 = vadd.f32 %v3465_v19, %v3401_v1  ;;  %v2711_v62 = vadd.f32 %v6357_v7, %v2710_v25  ;;  %v6890_v19 = vld [vmem:[#allocation25_spill] sm:$0xff] }
 0x41f   : > { %v6613_v55 = vpop.f32.mrf.mxu3  ;;  %v686_v25 = vadd.f32 %v6370_v34, %v6890_v19 }
 0x420   : > { %3529 = vst [vmem:[%s6391_s24 + $0x58] sm:$0xff] %v3497_v42  ;;  %v2800_v2 = vadd.f32 %v6515_v37, %v2711_v62  ;;  %2749 = vmatmul.bf16.gmra.mxu0 %v2535_v48  ;;  %v4374_v37 = vpop.permute.xlu1 %4373  ;;  %v6891_v42 = vld [vmem:[#allocation29_spill] sm:$0xff]  ;;  %v3404_v62 = vmax.f32 %v3346_v24, 0.0  ;;  %v3351_v10 = vadd.f32 %v6352_v46, %v6613_v55 }
 0x421   : > { %v4376_v58 = vunpack.i.h.bf16 %v4374_v37  ;;  %v4375_v33 = vunpack.i.l.bf16 %v4374_v37  ;;  %v1534_v59 = vadd.f32 %v6377_v17, %v6891_v42  ;;  %v2814_v0 = vpop.f32.mrf.mxu1  ;;  %v743_v20 = vmax.f32 %v686_v25, 0.0 }
 0x422   : > { %v2861_v39 = vmax.f32 %v2800_v2, 0.0 }
 0x423   : > { %v2505_v54 = vsel %vm1438_vm4, %v2473_v35, %v4375_v33  ;;  %v2506_v45 = vsel %vm1438_vm4, %v2474_v3, %v4376_v58  ;;  %v1591_v11 = vmax.f32 %v1534_v59, 0.0  ;;  %v6895_v33 = vld [vmem:[#allocation31_spill] sm:$0xff]  ;;  %v6898_v59 = vld [vmem:[#allocation34_spill] sm:$0xff] }
 0x424   : > { %v3466_v8 = vadd.f32 %v6889_v5, %v2861_v39  ;;  %v2537_v56 = vpack.c.bf16 %v2506_v45, %v2505_v54  ;;  %v3348_v39 = vadd.f32 %v6352_v46, %v6596_v22  ;;  %v6893_v22 = vld [vmem:[#allocation30_spill] sm:$0xff] }
 0x425   : > { %v2712_v14 = vpop.f32.mrf.mxu0  ;;  %v3437_v4 = vadd.f32 %v1591_v11, %v743_v20 }
 0x426   : > { %v3498_v53 = vadd.f32 %v3466_v8, %v3402_v63  ;;  %v2713_v41 = vadd.f32 %v6357_v7, %v2712_v14  ;;  %v3405_v37 = vmax.f32 %v3348_v39, 0.0 }
 0x427   : > { %v3352_v32 = vpop.f32.mrf.mxu3 }
 0x428   : > { %3530 = vst [vmem:[%s6391_s24 + $0x60] sm:$0xff] %v3498_v53  ;;  %v2802_v43 = vadd.f32 %v6543_v38, %v2713_v41  ;;  %v1539_v53 = vadd.f32 %v6377_v17, %v6894_v40  ;;  %v3406_v41 = vmax.f32 %v3351_v10, 0.0  ;;  %v6899_v10 = vld [vmem:[#allocation36_spill] sm:$0xff] }
 0x429   : > { %v2816_v14 = vpop.f32.mrf.mxu1 }
 0x42a   : > { %v2862_v51 = vmax.f32 %v2802_v43, 0.0  ;;  %v1593_v55 = vmax.f32 %v1539_v53, 0.0 }
 0x42c   : > { %v3467_v15 = vadd.f32 %v3435_v52, %v2862_v51 }
 0x42d   : > { %v2715_v38 = vpop.f32.mrf.mxu0 }
 0x42e   : > { %v3499_v57 = vadd.f32 %v3467_v15, %v3403_v47  ;;  %v2716_v28 = vadd.f32 %v6357_v7, %v2715_v38 }
 0x42f   : > { %v3355_v2 = vpop.f32.mrf.mxu3 }
 0x430   : > { %3531 = vst [vmem:[%s6391_s24 + $0x68] sm:$0xff] %v3499_v57  ;;  %v2805_v1 = vadd.f32 %v6564_v12, %v2716_v28  ;;  %2754 = vmatmul.bf16.gmra.mxu0 %v2537_v56  ;;  %v3356_v38 = vadd.f32 %v6352_v46, %v3355_v2  ;;  %v6896_v56 = vld [vmem:[#allocation33_spill] sm:$0xff] }
 0x431   : > { %v2819_v35 = vpop.f32.mrf.mxu1 }
 0x432   : > { %v2863_v48 = vmax.f32 %v2805_v1, 0.0  ;;  %v696_v1 = vadd.f32 %v6370_v34, %v6896_v56  ;;  %v3408_v19 = vmax.f32 %v3356_v38, 0.0  ;;  %v706_v38 = vadd.f32 %v6370_v34, %v6337_v26 }
 0x434   : > { %v3468_v27 = vadd.f32 %v6892_v31, %v2863_v48  ;;  %v747_v31 = vmax.f32 %v696_v1, 0.0  ;;  %v6903_v1 = vld [vmem:[#allocation39_spill] sm:$0xff] }
 0x435   : > { %v2717_v16 = vpop.f32.mrf.mxu0 }
 0x436   : > { %v3500_v63 = vadd.f32 %v3468_v27, %v3404_v62  ;;  %v2718_v12 = vadd.f32 %v6357_v7, %v2717_v16 }
 0x437   : > { %v3357_v13 = vpop.f32.mrf.mxu3 }
 0x438   : > { %3532 = vst [vmem:[%s6391_s24 + $0x70] sm:$0xff] %v3500_v63  ;;  %v2807_v9 = vadd.f32 %v6582_v61, %v2718_v12  ;;  %v691_v61 = vadd.f32 %v6370_v34, %v6893_v22 }
 0x439   : > { %v2821_v42 = vpop.f32.mrf.mxu1 }
 0x43a   : > { %v2864_v29 = vmax.f32 %v2807_v9, 0.0  ;;  %v745_v44 = vmax.f32 %v691_v61, 0.0  ;;  %v6901_v61 = vld [vmem:[#allocation37_spill] sm:$0xff] }
 0x43c   : > { %v3469_v5 = vadd.f32 %v3437_v4, %v2864_v29  ;;  %v3439_v3 = vadd.f32 %v1593_v55, %v745_v44 }
 0x43d   : > { %v2720_v8 = vpop.f32.mrf.mxu0 }
 0x43e   : > { %v3501_v49 = vadd.f32 %v3469_v5, %v3405_v37  ;;  %v2721_v36 = vadd.f32 %v6357_v7, %v2720_v8 }
 0x43f   : > { %v3360_v50 = vpop.f32.mrf.mxu3 }
 0x440   : > { %3533 = vst [vmem:[%s6391_s24 + $0x78] sm:$0xff] %v3501_v49  ;;  %v2810_v18 = vadd.f32 %v6611_v23, %v2721_v36  ;;  %v3353_v23 = vadd.f32 %v6352_v46, %v3352_v32  ;;  %v6897_v32 = vld [vmem:[#allocation35_spill] sm:$0xff]  ;;  %v3361_v5 = vadd.f32 %v6352_v46, %v3360_v50  ;;  %v701_v36 = vadd.f32 %v6370_v34, %v6899_v10  ;;  %v6906_v10 = vld [vmem:[#allocation41_spill] sm:$0xff] }
 0x441   : > { %v2824_v4 = vpop.f32.mrf.mxu1 }
 0x442   : > { %v2865_v58 = vmax.f32 %v2810_v18, 0.0  ;;  %v3407_v54 = vmax.f32 %v3353_v23, 0.0  ;;  %v3410_v18 = vmax.f32 %v3361_v5, 0.0 }
 0x444   : > { %v3470_v6 = vadd.f32 %v6895_v33, %v2865_v58  ;;  %v749_v58 = vmax.f32 %v701_v36, 0.0 }
 0x445   : > { %v2722_v21 = vpop.f32.mrf.mxu0 }
 0x446   : > { %v3502_v43 = vadd.f32 %v3470_v6, %v3406_v41  ;;  %v2723_v30 = vadd.f32 %v6357_v7, %v2722_v21 }
 0x447   : > { %v3362_v28 = vpop.f32.mrf.mxu3 }
 0x448   : > { %3534 = vst [vmem:[%s6391_s24 + $0x80] sm:$0xff] %v3502_v43  ;;  %v2812_v52 = vadd.f32 %v2811_v60, %v2723_v30  ;;  %v1544_v60 = vadd.f32 %v6377_v17, %v6897_v32  ;;  %v3363_v55 = vadd.f32 %v6352_v46, %v3362_v28 }
 0x449   : > { %v2826_v44 = vpop.f32.mrf.mxu1 }
 0x44a   : > { %v2866_v51 = vmax.f32 %v2812_v52, 0.0  ;;  %v1595_v2 = vmax.f32 %v1544_v60, 0.0  ;;  %v3411_v23 = vmax.f32 %v3363_v55, 0.0 }
 0x44c   : > { %v3471_v45 = vadd.f32 %v3439_v3, %v2866_v51  ;;  %v3441_v11 = vadd.f32 %v1595_v2, %v747_v31 }
 0x44d   : > { %v2725_v47 = vpop.f32.mrf.mxu0 }
 0x44e   : > { %v3503_v15 = vadd.f32 %v3471_v45, %v3407_v54  ;;  %v2726_v57 = vadd.f32 %v6357_v7, %v2725_v47 }
 0x44f   : > { %v3365_v12 = vpop.f32.mrf.mxu3 }
 0x450   : > { %3535 = vst [vmem:[%s6391_s24 + $0x88] sm:$0xff] %v3503_v15  ;;  %v2815_v24 = vadd.f32 %v2814_v0, %v2726_v57  ;;  %v3358_v0 = vadd.f32 %v6352_v46, %v3357_v13  ;;  %v6900_v13 = vld [vmem:[#allocation38_spill] sm:$0xff]  ;;  %v3366_v51 = vadd.f32 %v6352_v46, %v3365_v12  ;;  %v6902_v57 = vld [vmem:[#allocation40_spill] sm:$0xff] }
 0x451   : > { %v2829_v15 = vpop.f32.mrf.mxu1 }
 0x452   : > { %v2867_v25 = vmax.f32 %v2815_v24, 0.0  ;;  %v3409_v39 = vmax.f32 %v3358_v0, 0.0  ;;  %v1554_v24 = vadd.f32 %v6377_v17, %v6902_v57  ;;  %v3412_v28 = vmax.f32 %v3366_v51, 0.0 }
 0x454   : > { %v3472_v62 = vadd.f32 %v6898_v59, %v2867_v25  ;;  %v1599_v25 = vmax.f32 %v1554_v24, 0.0 }
 0x455   : > { %v2727_v48 = vpop.f32.mrf.mxu0 }
 0x456   : > { %v3504_v27 = vadd.f32 %v3472_v62, %v3408_v19  ;;  %v2728_v16 = vadd.f32 %v6357_v7, %v2727_v48  ;;  %v751_v19 = vmax.f32 %v706_v38, 0.0 }
 0x457   : > { %v3367_v41 = vpop.f32.mrf.mxu3 }
 0x458   : > { %3536 = vst [vmem:[%s6391_s24 + $0x90] sm:$0xff] %v3504_v27  ;;  %v2817_v20 = vadd.f32 %v2816_v14, %v2728_v16  ;;  %v1549_v14 = vadd.f32 %v6377_v17, %v6900_v13  ;;  %v3368_v62 = vadd.f32 %v6352_v46, %v3367_v41  ;;  %v3445_v26 = vadd.f32 %v1599_v25, %v751_v19 }
 0x459   : > { %v2831_v27 = vpop.f32.mrf.mxu1 }
 0x45a   : > { %v2868_v63 = vmax.f32 %v2817_v20, 0.0  ;;  %v1597_v33 = vmax.f32 %v1549_v14, 0.0  ;;  %v3413_v16 = vmax.f32 %v3368_v62, 0.0 }
 0x45c   : > { %v3473_v9 = vadd.f32 %v3441_v11, %v2868_v63  ;;  %v3443_v30 = vadd.f32 %v1597_v33, %v749_v58 }
 0x45d   : > { %v2730_v29 = vpop.f32.mrf.mxu0 }
 0x45e   : > { %v3505_v37 = vadd.f32 %v3473_v9, %v3409_v39  ;;  %v2731_v8 = vadd.f32 %v6357_v7, %v2730_v29  ;;  %v6904_v9 = vld [vmem:[#allocation42_spill] sm:$0xff] }
 0x45f   : > { %v3370_v45 = vpop.f32.mrf.mxu3 }
 0x460   : > { %3537 = vst [vmem:[%s6391_s24 + $0x98] sm:$0xff] %v3505_v37  ;;  %v2820_v49 = vadd.f32 %v2819_v35, %v2731_v8  ;;  %v3371_v63 = vadd.f32 %v6352_v46, %v3370_v45  ;;  %v6905_v8 = vld [vmem:[#allocation2_spill] sm:$0xff]  ;;  %v6908_v45 = vld [vmem:[#allocation3_spill] sm:$0xff] }
 0x461   : > { %v2834_v13 = vpop.f32.mrf.mxu1 }
 0x462   : > { %v2869_v22 = vmax.f32 %v2820_v49, 0.0  ;;  %v3414_v29 = vmax.f32 %v3371_v63, 0.0  ;;  %v711_v49 = vadd.f32 %v6370_v34, %v6905_v8 }
 0x464   : > { %v3474_v40 = vadd.f32 %v6901_v61, %v2869_v22 }
 0x465   : > { %v2732_v53 = vpop.f32.mrf.mxu0 }
 0x466   : > { %v3506_v6 = vadd.f32 %v3474_v40, %v3410_v18  ;;  %v2733_v21 = vadd.f32 %v6357_v7, %v2732_v53  ;;  %v753_v40 = vmax.f32 %v711_v49, 0.0 }
 0x467   : > { %v3372_v31 = vpop.f32.mrf.mxu3 }
 0x468   : > { %3538 = vst [vmem:[%s6391_s24 + $0xa0] sm:$0xff] %v3506_v6  ;;  %v2822_v43 = vadd.f32 %v2821_v42, %v2733_v21  ;;  %v3373_v53 = vadd.f32 %v6352_v46, %v3372_v31 }
 0x46a   : > { %v2870_v50 = vmax.f32 %v2822_v43, 0.0  ;;  %v3415_v6 = vmax.f32 %v3373_v53, 0.0 }
 0x46c   : > { %v3475_v52 = vadd.f32 %v3443_v30, %v2870_v50 }
 0x46d   : > { %v2735_v35 = vpop.f32.mrf.mxu0 }
 0x46e   : > { %v3507_v3 = vadd.f32 %v3475_v52, %v3411_v23  ;;  %v2736_v54 = vadd.f32 %v6357_v7, %v2735_v35  ;;  %v2836_v23 = vpop.f32.mrf.mxu1  ;;  %v6907_v35 = vld [vmem:[#allocation44_spill] sm:$0xff] }
 0x46f   : > { %v3375_v5 = vpop.f32.mrf.mxu3 }
 0x470   : > { %3539 = vst [vmem:[%s6391_s24 + $0xa8] sm:$0xff] %v3507_v3  ;;  %v2825_v47 = vadd.f32 %v2824_v4, %v2736_v54  ;;  %v1559_v4 = vadd.f32 %v6377_v17, %v6904_v9  ;;  %v3376_v30 = vadd.f32 %v6352_v46, %v3375_v5  ;;  %v1564_v3 = vadd.f32 %v6377_v17, %v6907_v35  ;;  %v4401_v17 = vld [vmem:[%s6753_s12] ss:$0 sm:$0xff]  ;;  %v6911_v9 = vld [vmem:[#allocation4_spill] sm:$0xff]  ;;  %v6915_v35 = vld [vmem:[#allocation47_spill] sm:$0xff] }
 0x472   : > { %v2871_v56 = vmax.f32 %v2825_v47, 0.0  ;;  %v1601_v18 = vmax.f32 %v1559_v4, 0.0  ;;  %v3416_v51 = vmax.f32 %v3376_v30, 0.0  ;;  %v716_v47 = vadd.f32 %v6370_v34, %v6908_v45 }
 0x473   : > { %v1603_v24 = vmax.f32 %v1564_v3, 0.0 }
 0x474   : > { %v3476_v32 = vadd.f32 %v6903_v1, %v2871_v56  ;;  %v3447_v58 = vadd.f32 %v1601_v18, %v753_v40  ;;  %v755_v1 = vmax.f32 %v716_v47, 0.0 }
 0x475   : > { %v2737_v60 = vpop.f32.mrf.mxu0 }
 0x476   : > { %v3508_v42 = vadd.f32 %v3476_v32, %v3412_v28  ;;  %v2738_v59 = vadd.f32 %v6357_v7, %v2737_v60  ;;  %v2839_v19 = vpop.f32.mrf.mxu1  ;;  %v3449_v25 = vadd.f32 %v1603_v24, %v755_v1 }
 0x477   : > { %v3377_v55 = vpop.f32.mrf.mxu3 }
 0x478   : > { %3540 = vst [vmem:[%s6391_s24 + $0xb0] sm:$0xff] %v3508_v42  ;;  %v2827_v48 = vadd.f32 %v2826_v44, %v2738_v59  ;;  %v3378_v32 = vadd.f32 %v4401_v17, %v3377_v55  ;;  %v6913_v55 = vld [vmem:[#allocation48_spill] sm:$0xff] }
 0x47a   : > { %v2872_v2 = vmax.f32 %v2827_v48, 0.0  ;;  %v3417_v42 = vmax.f32 %v3378_v32, 0.0 }
 0x47c   : > { %v3477_v0 = vadd.f32 %v3445_v26, %v2872_v2 }
 0x47d   : > { %v2740_v20 = vpop.f32.mrf.mxu0 }
 0x47e   : > { %v3509_v11 = vadd.f32 %v3477_v0, %v3413_v16  ;;  %v2741_v12 = vadd.f32 %v6357_v7, %v2740_v20  ;;  %v4403_v16 = vld [vmem:[%s6747_s6] ss:$0 sm:$0xff] }
 0x47f   : > { %v3380_v56 = vpop.f32.mrf.mxu3  ;;  %v6910_v0 = vld [vmem:[#allocation46_spill] sm:$0xff] }
 0x480   : > { %3541 = vst [vmem:[%s6391_s24 + $0xb8] sm:$0xff] %v3509_v11  ;;  %v2830_v39 = vadd.f32 %v2829_v15, %v2741_v12  ;;  %v6909_v15 = vld [vmem:[#allocation43_spill] sm:$0xff]  ;;  %v3381_v31 = vadd.f32 %v4401_v17, %v3380_v56  ;;  %v1569_v20 = vadd.f32 %v4403_v16, %v6910_v0  ;;  %v2841_v12 = vpop.f32.mrf.mxu1 }
 0x482   : > { %v2873_v37 = vmax.f32 %v2830_v39, 0.0  ;;  %v3418_v11 = vmax.f32 %v3381_v31, 0.0  ;;  %v4404_v39 = vld [vmem:[%s6743_s2] ss:$0 sm:$0xff]  ;;  %v1605_v8 = vmax.f32 %v1569_v20, 0.0 }
 0x483   : > { %v721_v4 = vadd.f32 %v4404_v39, %v6911_v9 }
 0x484   : > { %v3478_v36 = vadd.f32 %v6906_v10, %v2873_v37 }
 0x485   : > { %v2742_v14 = vpop.f32.mrf.mxu0 }
 0x486   : > { %v3510_v22 = vadd.f32 %v3478_v36, %v3414_v29  ;;  %v2743_v61 = vadd.f32 %v6357_v7, %v2742_v14  ;;  %v6912_v29 = vld [vmem:[#allocation45_spill] sm:$0xff]  ;;  %v757_v36 = vmax.f32 %v721_v4, 0.0 }
 0x488   : > { %3542 = vst [vmem:[%s6391_s24 + $0xc0] sm:$0xff] %v3510_v22  ;;  %v2832_v41 = vadd.f32 %v2831_v27, %v2743_v61  ;;  %v3382_v27 = vpop.f32.mrf.mxu3  ;;  %v3451_v18 = vadd.f32 %v1605_v8, %v757_v36 }
 0x48a   : > { %v2874_v33 = vmax.f32 %v2832_v41, 0.0  ;;  %v2844_v41 = vpop.f32.mrf.mxu1 }
 0x48c   : > { %v3479_v21 = vadd.f32 %v3447_v58, %v2874_v33 }
 0x48d   : > { %v2745_v44 = vpop.f32.mrf.mxu0 }
 0x48e   : > { %v3511_v43 = vadd.f32 %v3479_v21, %v3415_v6  ;;  %v2746_v50 = vadd.f32 %v6357_v7, %v2745_v44 }
 0x490   : > { %3543 = vst [vmem:[%s6391_s24 + $0xc8] sm:$0xff] %v3511_v43  ;;  %v2835_v52 = vadd.f32 %v2834_v13, %v2746_v50  ;;  %v3383_v13 = vadd.f32 %v4401_v17, %v3382_v27  ;;  %v3385_v61 = vpop.f32.mrf.mxu3  ;;  %v1574_v43 = vadd.f32 %v4403_v16, %v6913_v55 }
 0x491   : > { %v3386_v6 = vadd.f32 %v4401_v17, %v3385_v61 }
 0x492   : > { %v2875_v54 = vmax.f32 %v2835_v52, 0.0  ;;  %v3419_v40 = vmax.f32 %v3383_v13, 0.0  ;;  %v1607_v45 = vmax.f32 %v1574_v43, 0.0 }
 0x493   : > { %v3420_v30 = vmax.f32 %v3386_v6, 0.0 }
 0x494   : > { %v3480_v38 = vadd.f32 %v6909_v15, %v2875_v54 }
 0x495   : > { %v2747_v57 = vpop.f32.mrf.mxu0 }
 0x496   : > { %v3512_v28 = vadd.f32 %v3480_v38, %v3416_v51  ;;  %v2748_v46 = vadd.f32 %v6357_v7, %v2747_v57  ;;  %v4402_v7 = vld [vmem:[%s6751_s10] ss:$0 sm:$0xff]  ;;  %v2846_v38 = vpop.f32.mrf.mxu1 }
 0x498   : > { %3544 = vst [vmem:[%s6391_s24 + $0xd0] sm:$0xff] %v3512_v28  ;;  %v2837_v60 = vadd.f32 %v2836_v23, %v2748_v46  ;;  %v6914_v23 = vld [vmem:[#allocation5_spill] sm:$0xff]  ;;  %v3387_v51 = vpop.f32.mrf.mxu3 }
 0x499   : > { %v726_v52 = vadd.f32 %v4404_v39, %v6914_v23  ;;  %v3388_v24 = vadd.f32 %v4401_v17, %v3387_v51 }
 0x49a   : > { %v2876_v34 = vmax.f32 %v2837_v60, 0.0 }
 0x49b   : > { %v759_v57 = vmax.f32 %v726_v52, 0.0  ;;  %v3421_v1 = vmax.f32 %v3388_v24, 0.0 }
 0x49c   : > { %v3481_v59 = vadd.f32 %v3449_v25, %v2876_v34 }
 0x49d   : > { %v2750_v62 = vpop.f32.mrf.mxu0  ;;  %v3453_v46 = vadd.f32 %v1607_v45, %v759_v57 }
 0x49e   : > { %v3513_v48 = vadd.f32 %v3481_v59, %v3417_v42  ;;  %v2751_v26 = vadd.f32 %v4402_v7, %v2750_v62 }
 0x4a0   : > { %3545 = vst [vmem:[%s6391_s24 + $0xd8] sm:$0xff] %v3513_v48  ;;  %v2840_v2 = vadd.f32 %v2839_v19, %v2751_v26 }
 0x4a2   : > { %v2877_v63 = vmax.f32 %v2840_v2, 0.0 }
 0x4a4   : > { %v3482_v37 = vadd.f32 %v6912_v29, %v2877_v63 }
 0x4a5   : > { %v2752_v5 = vpop.f32.mrf.mxu0 }
 0x4a6   : > { %v3514_v49 = vadd.f32 %v3482_v37, %v3418_v11  ;;  %v2753_v10 = vadd.f32 %v4402_v7, %v2752_v5 }
 0x4a8   : > { %3546 = vst [vmem:[%s6391_s24 + $0xe0] sm:$0xff] %v3514_v49  ;;  %v2842_v14 = vadd.f32 %v2841_v12, %v2753_v10 }
 0x4aa   : > { %v2878_v22 = vmax.f32 %v2842_v14, 0.0 }
 0x4ac   : > { %v3483_v53 = vadd.f32 %v3451_v18, %v2878_v22 }
 0x4ad   : > { %v2755_v58 = vpop.f32.mrf.mxu0 }
 0x4ae   : > { %v3515_v33 = vadd.f32 %v3483_v53, %v3419_v40  ;;  %v2756_v21 = vadd.f32 %v4402_v7, %v2755_v58 }
 0x4b0   : > { %3547 = vst [vmem:[%s6391_s24 + $0xe8] sm:$0xff] %v3515_v33  ;;  %v2845_v44 = vadd.f32 %v2844_v41, %v2756_v21 }
 0x4b2   : > { %v2879_v50 = vmax.f32 %v2845_v44, 0.0 }
 0x4b4   : > { %v3484_v3 = vadd.f32 %v6915_v35, %v2879_v50 }
 0x4b5   : > { %v2757_v54 = vpop.f32.mrf.mxu0 }
 0x4b6   : > { %v3516_v47 = vadd.f32 %v3484_v3, %v3420_v30  ;;  %v2758_v15 = vadd.f32 %v4402_v7, %v2757_v54 }
 0x4b8   : > { %3548 = vst [vmem:[%s6391_s24 + $0xf0] sm:$0xff] %v3516_v47  ;;  %v2847_v28 = vadd.f32 %v2846_v38, %v2758_v15 }
 0x4ba   : > { %v2880_v56 = vmax.f32 %v2847_v28, 0.0 }
 0x4bc   : > { %v3485_v32 = vadd.f32 %v3453_v46, %v2880_v56 }
 0x4be   : > { %v3517_v60 = vadd.f32 %v3485_v32, %v3421_v1 }
 0x4c0   : > { %3549 = vst [vmem:[%s6391_s24 + $0xf8] sm:$0xff] %v3517_v60 }
 0x4c1 PF: > { %s23_s25 = sadd.s32 1, %s4411_s25  }
 0x4c2   : > { %p20_p4 = scmp.ge.s32.totalorder %s23_s25, 4  }
 0x4c4   :  { %22 = sbr.rel (!%p20_p4) target bundleno = 1 (0x1), region = 102 }

</bundles_post_ra>
